<compile_context>
chip_gen: v6e
topology: v6e:2x2x1
jax: 0.10.0
libtpu: 0.0.40
codegen_flags: <defaults>
</compile_context>

<pallas_src>
import functools
import math

import jax
import jax.numpy as jnp
from jax.experimental import pallas as pl
from jax.experimental.pallas import tpu as pltpu


# ----------------------------- helpers ---------------------------------------

def _round_up(x, m):
    return (x + m - 1) // m * m


def _tile_rows(m, cap=512):
    """Row (sublane) tile: multiple of 8, capped, aims for >=2 grid steps."""
    if m <= 16:
        return _round_up(max(m, 1), 8)
    return min(cap, _round_up((m + 1) // 2, 8))


# ----------------------------- Pallas kernels ---------------------------------

def _gconv_matmul_kernel(x_ref, w_ref, b_ref, *rest, groups, relu, has_residual):
    """y = [relu]( concat_g(x_g @ w_g) + bias [+ residual] ).

    x_ref : [tm, G*Kg]   bf16 im2col patches (group-major along K)
    w_ref : [G, Kg, Ng]  bf16 weights (BN scale folded in)
    b_ref : [1, G*Ng]    f32  folded BN bias
    rest  : (residual [tm, G*Ng] bf16,)? + (out [tm, G*Ng],)
    """
    if has_residual:
        r_ref, o_ref = rest
    else:
        (o_ref,) = rest
    kg = w_ref.shape[1]
    outs = []
    for g in range(groups):                        # static, small (1 or 2)
        xg = x_ref[:, g * kg:(g + 1) * kg]
        outs.append(jnp.dot(xg, w_ref[g], preferred_element_type=jnp.float32))
    y = outs[0] if groups == 1 else jnp.concatenate(outs, axis=-1)
    y = y + b_ref[...]                             # epilogue in f32 (v5e VPU)
    if has_residual:
        y = y + r_ref[...].astype(jnp.float32)
    if relu:
        y = jnp.maximum(y, 0.0)
    o_ref[...] = y.astype(o_ref.dtype)             # narrow only at the store


def _max9_kernel(x_ref, o_ref):
    # x_ref: [9, tm, C] stacked 3x3 window taps -> elementwise max over taps.
    o_ref[...] = jnp.max(x_ref[...], axis=0)


def _avgpool_kernel(x_ref, o_ref):
    # x_ref: [1, H*W, C] -> mean over spatial axis, f32 accumulation.
    o_ref[...] = jnp.mean(x_ref[...].astype(jnp.float32), axis=1, keepdims=True)


# ------------------------------ wrappers --------------------------------------

def matmul_bn(x2d, w3, bias, residual=None, relu=True, out_dtype=jnp.bfloat16):
    """Fused grouped matmul + folded-BN bias (+residual) (+ReLU).

    x2d : [M, G*Kg]  (any float dtype; cast to bf16 for the MXU)
    w3  : [G, Kg, Ng] bf16
    bias: [G*Ng]      f32
    """
    m, ktot = x2d.shape
    g, kg, ng = w3.shape
    assert ktot == g * kg
    ntot = g * ng

    tm = _tile_rows(m)
    m_pad = _round_up(m, tm)
    x2d = x2d.astype(jnp.bfloat16)
    if m_pad != m:
        x2d = jnp.pad(x2d, ((0, m_pad - m), (0, 0)))
        if residual is not None:
            residual = jnp.pad(residual, ((0, m_pad - m), (0, 0)))

    in_specs = [
        pl.BlockSpec((tm, ktot), lambda i: (i, 0)),
        pl.BlockSpec((g, kg, ng), lambda i: (0, 0, 0)),
        pl.BlockSpec((1, ntot), lambda i: (0, 0)),
    ]
    args = [x2d, w3, bias.reshape(1, ntot).astype(jnp.float32)]
    if residual is not None:
        in_specs.append(pl.BlockSpec((tm, ntot), lambda i: (i, 0)))
        args.append(residual)

    kernel = functools.partial(_gconv_matmul_kernel, groups=g, relu=relu,
                               has_residual=residual is not None)
    out = pl.pallas_call(
        kernel,
        out_shape=jax.ShapeDtypeStruct((m_pad, ntot), out_dtype),
        grid=(m_pad // tm,),
        in_specs=in_specs,
        out_specs=pl.BlockSpec((tm, ntot), lambda i: (i, 0)),
        compiler_params=pltpu.CompilerParams(
            dimension_semantics=("parallel",)),
    )(*args)
    if m_pad != m:
        out = out[:m]
    return out


def _im2col_grouped(x, kh, kw, stride, pad, groups):
    """x: [N,H,W,C] -> cols [N*Ho*Wo, G * kh*kw*(C//G)], group-major K.

    Per-group rows are ordered (tap_kh, tap_kw, channel_in_group); weights must
    use the same order.  (If real PyTorch weights [cout, cin/g, kh, kw] are ever
    loaded, transpose to (kh, kw, cin/g) -> flatten to match.)
    """
    n, h, w, c = x.shape
    cg = c // groups
    ho = (h + 2 * pad - kh) // stride + 1
    wo = (w + 2 * pad - kw) // stride + 1
    xp = jnp.pad(x, ((0, 0), (pad, pad), (pad, pad), (0, 0))) if pad else x
    pieces = []
    for g in range(groups):
        for i in range(kh):
            for j in range(kw):
                pieces.append(xp[:, i:i + stride * ho:stride,
                                 j:j + stride * wo:stride,
                                 g * cg:(g + 1) * cg])
    cols = pieces[0] if len(pieces) == 1 else jnp.concatenate(pieces, axis=-1)
    return cols.reshape(n * ho * wo, groups * kh * kw * cg), (n, ho, wo)


def conv_bn(x, w3, bias, *, kh, kw, stride, pad, groups=1, relu=True,
            residual=None):
    """(grouped) conv -> folded BN -> optional residual add -> optional ReLU."""
    n = x.shape[0]
    cols, (_, ho, wo) = _im2col_grouped(x, kh, kw, stride, pad, groups)
    y = matmul_bn(cols, w3, bias, residual=residual, relu=relu)
    return y.reshape(n, ho, wo, -1)


def maxpool3x3_s2_p1(x):
    n, h, w, c = x.shape
    ho = (h + 2 - 3) // 2 + 1
    wo = (w + 2 - 3) // 2 + 1
    xp = jnp.pad(x, ((0, 0), (1, 1), (1, 1), (0, 0)),
                 constant_values=-jnp.inf)
    views = [xp[:, i:i + 2 * ho:2, j:j + 2 * wo:2, :]
             for i in range(3) for j in range(3)]
    stacked = jnp.stack(views, axis=0).reshape(9, n * ho * wo, c)
    m = n * ho * wo
    tm = _tile_rows(m)
    m_pad = _round_up(m, tm)
    if m_pad != m:
        stacked = jnp.pad(stacked, ((0, 0), (0, m_pad - m), (0, 0)))
    out = pl.pallas_call(
        _max9_kernel,
        out_shape=jax.ShapeDtypeStruct((m_pad, c), x.dtype),
        grid=(m_pad // tm,),
        in_specs=[pl.BlockSpec((9, tm, c), lambda i: (0, i, 0))],
        out_specs=pl.BlockSpec((tm, c), lambda i: (i, 0)),
        compiler_params=pltpu.CompilerParams(
            dimension_semantics=("parallel",)),
    )(stacked)
    return out[:m].reshape(n, ho, wo, c)


def global_avgpool(x):
    n, h, w, c = x.shape
    x3 = x.reshape(n, h * w, c)
    out = pl.pallas_call(
        _avgpool_kernel,
        out_shape=jax.ShapeDtypeStruct((n, 1, c), jnp.float32),
        grid=(n,),
        in_specs=[pl.BlockSpec((1, h * w, c), lambda i: (i, 0, 0))],
        out_specs=pl.BlockSpec((1, 1, c), lambda i: (i, 0, 0)),
        compiler_params=pltpu.CompilerParams(
            dimension_semantics=("parallel",)),
    )(x3)
    return out.reshape(n, c)


# --------------------------- parameter building --------------------------------

def _bn_affine(c, eps=1e-5):
    # Eval-mode BN after init_weights: gamma=1, beta=0, mean=0, var=1.
    gamma = jnp.ones((c,), jnp.float32)
    beta = jnp.zeros((c,), jnp.float32)
    mean = jnp.zeros((c,), jnp.float32)
    var = jnp.ones((c,), jnp.float32)
    scale = gamma / jnp.sqrt(var + eps)
    bias = beta - mean * scale
    return scale, bias


def _conv_weight(key, kh, kw, cin, cout, groups=1):
    """Kaiming-normal (fan_out, relu) weights as [G, kh*kw*cin_g, cout_g] f32."""
    cg = cin // groups
    ng = cout // groups
    std = math.sqrt(2.0 / (ng * kh * kw))
    return jax.random.normal(key, (groups, kh * kw * cg, ng), jnp.float32) * std


def _fold_bn(w, scale):
    """Fold per-output-channel BN scale into the weights, store bf16."""
    g, kg, ng = w.shape
    return (w * scale.reshape(g, 1, ng)).astype(jnp.bfloat16)


def build_resnext_params(key, layers, layers_output, groups, width_per_group,
                         base_width, num_classes, expansion=2):
    params = {}
    key, k = jax.random.split(key)
    s0, b0 = _bn_affine(64)
    params['stem_w'] = _fold_bn(_conv_weight(k, 7, 7, 3, 64, 1), s0)
    params['stem_b'] = b0

    in_chans = 64
    stages = []
    for stage_idx, (nblocks, out_chans) in enumerate(zip(layers, layers_output)):
        blocks = []
        for blk in range(nblocks):
            stride = 2 if (stage_idx > 0 and blk == 0) else 1
            key, k = jax.random.split(key)
            ks = jax.random.split(k, 4)
            width = int(out_chans * (width_per_group / base_width)) * groups
            cout3 = out_chans * expansion
            s1, b1 = _bn_affine(width)
            s2, b2 = _bn_affine(width)
            s3, b3 = _bn_affine(cout3)
            p = {
                'w1': _fold_bn(_conv_weight(ks[0], 1, 1, in_chans, width, 1), s1),
                'b1': b1,
                'w2': _fold_bn(_conv_weight(ks[1], 3, 3, width, width, groups), s2),
                'b2': b2,
                'w3': _fold_bn(_conv_weight(ks[2], 1, 1, width, cout3, 1), s3),
                'b3': b3,
            }
            if stride != 1 or in_chans != cout3:
                sd, bd = _bn_affine(cout3)
                p['wd'] = _fold_bn(_conv_weight(ks[3], 1, 1, in_chans, cout3, 1), sd)
                p['bd'] = bd
            blocks.append(p)
            in_chans = cout3
        stages.append(blocks)
    params['stages'] = stages

    key, k1, k2 = jax.random.split(key, 3)
    fc_in = layers_output[-1] * expansion
    ncp = _round_up(num_classes, 128)              # lane-dense FC output
    fcw = jax.random.normal(k1, (fc_in, num_classes), jnp.float32) / math.sqrt(fc_in)
    fcb = jax.random.normal(k2, (num_classes,), jnp.float32) * 0.01
    params['fc_w'] = jnp.pad(fcw, ((0, 0), (0, ncp - num_classes))
                             ).reshape(1, fc_in, ncp).astype(jnp.bfloat16)
    params['fc_b'] = jnp.pad(fcb, (0, ncp - num_classes))
    return params


# ------------------------------ model forward -----------------------------------

def bottleneck_forward(x, p, stride, groups):
    n, h, w, c = x.shape
    y = conv_bn(x, p['w1'], p['b1'], kh=1, kw=1, stride=1, pad=0,
                groups=1, relu=True)
    y = conv_bn(y, p['w2'], p['b2'], kh=3, kw=3, stride=stride, pad=1,
                groups=groups, relu=True)
    if 'wd' in p:
        xs = x[:, ::stride, ::stride, :]           # 1x1 strided conv sampling
        identity = matmul_bn(xs.reshape(-1, c), p['wd'], p['bd'], relu=False)
    else:
        identity = x.reshape(-1, c)
    # conv3 -> BN -> (+identity) -> ReLU, all fused into one matmul kernel.
    y = conv_bn(y, p['w3'], p['b3'], kh=1, kw=1, stride=1, pad=0,
                groups=1, relu=True, residual=identity)
    return y


def resnext_forward(x_nchw, params, *, groups, num_classes):
    x = jnp.transpose(x_nchw, (0, 2, 3, 1)).astype(jnp.bfloat16)   # NCHW -> NHWC
    x = conv_bn(x, params['stem_w'], params['stem_b'],
                kh=7, kw=7, stride=2, pad=3, groups=1, relu=True)
    x = maxpool3x3_s2_p1(x)
    for stage_idx, blocks in enumerate(params['stages']):
        for blk_idx, p in enumerate(blocks):
            stride = 2 if (stage_idx > 0 and blk_idx == 0) else 1
            x = bottleneck_forward(x, p, stride, groups)
    pooled = global_avgpool(x)                                     # [N, C] f32
    logits = matmul_bn(pooled, params['fc_w'], params['fc_b'],
                       relu=False, out_dtype=jnp.float32)
    return logits[:, :num_classes]


# ----------------------------------- main ---------------------------------------

if __name__ == "__main__":
    key = jax.random.PRNGKey(0)
    kx, kp = jax.random.split(key)

    # Small ResNeXt: BottleNeck blocks, layers=[1,1,1,1],
    # layers_output=[32,64,128,256], groups=2, width_per_group=64,
    # base_width=128, num_classes=10.
    layers = [1, 1, 1, 1]
    layers_output = [32, 64, 128, 256]
    groups = 2
    width_per_group = 64
    base_width = 128
    num_classes = 10

    x = jax.random.normal(kx, (2, 3, 32, 32), jnp.float32)   # NCHW input
    params = build_resnext_params(kp, layers, layers_output, groups,
                                  width_per_group, base_width, num_classes)

    fwd = jax.jit(functools.partial(resnext_forward, groups=groups,
                                    num_classes=num_classes))
    logits = jax.block_until_ready(fwd(x, params))
    assert logits.shape == (2, num_classes)
    assert bool(jnp.all(jnp.isfinite(logits)))
    print("KERNEL_OK")
</pallas_src>

<mosaic_0001>
module attributes {stable_mosaic.version = 11 : i64} {
  func.func @_gconv_matmul_kernel(%arg0: i32, %arg1: memref<256x147xbf16, #tpu.memory_space<vmem>>, %arg2: memref<1x147x64xbf16, #tpu.memory_space<vmem>>, %arg3: memref<1x64xf32, #tpu.memory_space<vmem>>, %arg4: memref<256x64xbf16, #tpu.memory_space<vmem>>) attributes {dimension_semantics = [#tpu.dimension_semantics<parallel>], iteration_bounds = array<i64: 2>, scalar_prefetch = 0 : i64, scratch_operands = 0 : i64, tpu.core_type = #tpu.core_type<tc>, window_params = [{transform_indices = @transform_0, window_bounds = array<i64: 256, 147>}, {pipeline_mode = #tpu.pipeline_mode<synchronous>, transform_indices = @transform_1, window_bounds = array<i64: 1, 147, 64>}, {pipeline_mode = #tpu.pipeline_mode<synchronous>, transform_indices = @transform_2, window_bounds = array<i64: 1, 64>}, {transform_indices = @transform_3, window_bounds = array<i64: 256, 64>}]} {
    %c0 = arith.constant 0 : index
    %c0_0 = arith.constant 0 : index
    %0 = vector.load %arg1[%c0, %c0_0] : memref<256x147xbf16, #tpu.memory_space<vmem>>, vector<256x147xbf16>
    %c0_1 = arith.constant 0 : index
    %c0_2 = arith.constant 0 : index
    %c0_3 = arith.constant 0 : index
    %1 = vector.load %arg2[%c0_1, %c0_2, %c0_3] : memref<1x147x64xbf16, #tpu.memory_space<vmem>>, vector<1x147x64xbf16>
    %2 = vector.shape_cast %1 : vector<1x147x64xbf16> to vector<147x64xbf16>
    %cst = arith.constant dense<0.000000e+00> : vector<256x64xf32>
    %3 = tpu.matmul %0, %2, %cst {dimension_numbers = #tpu.dot_dimension_numbers<[1], [0], [0], [1], [0, 0, 1, 1], [], []>} : vector<256x147xbf16>, vector<147x64xbf16>, vector<256x64xf32> -> vector<256x64xf32>
    %c0_4 = arith.constant 0 : index
    %c0_5 = arith.constant 0 : index
    %4 = vector.load %arg3[%c0_4, %c0_5] : memref<1x64xf32, #tpu.memory_space<vmem>>, vector<1x64xf32>
    %5 = vector.broadcast %4 : vector<1x64xf32> to vector<256x64xf32>
    %6 = arith.addf %3, %5 : vector<256x64xf32>
    %cst_6 = arith.constant 0.000000e+00 : f32
    %7 = vector.broadcast %cst_6 : f32 to vector<256x64xf32>
    %8 = arith.maximumf %6, %7 : vector<256x64xf32>
    %9 = arith.truncf %8 : vector<256x64xf32> to vector<256x64xbf16>
    %c0_7 = arith.constant 0 : index
    %c0_8 = arith.constant 0 : index
    %10 = vector.load %arg4[%c0_7, %c0_8] : memref<256x64xbf16, #tpu.memory_space<vmem>>, vector<256x64xbf16>
    tpu.vector_store %arg4[%c0_7, %c0_8], %9 {strides = array<i32>} : memref<256x64xbf16, #tpu.memory_space<vmem>>, vector<256x64xbf16>,
    return
  }
  func.func @transform_0(%arg0: i32) -> (i32, i32) {
    %c0_i32 = arith.constant 0 : i32
    %c0_i32_0 = arith.constant 0 : i32
    return %arg0, %c0_i32 : i32, i32
  }
  func.func @transform_1(%arg0: i32) -> (i32, i32, i32) {
    %c0_i32 = arith.constant 0 : i32
    %c0_i32_0 = arith.constant 0 : i32
    %c0_i32_1 = arith.constant 0 : i32
    %c0_i32_2 = arith.constant 0 : i32
    return %c0_i32, %c0_i32_0, %c0_i32_1 : i32, i32, i32
  }
  func.func @transform_2(%arg0: i32) -> (i32, i32) {
    %c0_i32 = arith.constant 0 : i32
    %c0_i32_0 = arith.constant 0 : i32
    %c0_i32_1 = arith.constant 0 : i32
    return %c0_i32, %c0_i32_0 : i32, i32
  }
  func.func @transform_3(%arg0: i32) -> (i32, i32) {
    %c0_i32 = arith.constant 0 : i32
    %c0_i32_0 = arith.constant 0 : i32
    return %arg0, %c0_i32 : i32, i32
  }
}

module attributes {stable_mosaic.version = 11 : i64} {
  func.func @_max9_kernel(%arg0: i32, %arg1: memref<9x64x64xbf16, #tpu.memory_space<vmem>>, %arg2: memref<64x64xbf16, #tpu.memory_space<vmem>>) attributes {dimension_semantics = [#tpu.dimension_semantics<parallel>], iteration_bounds = array<i64: 2>, scalar_prefetch = 0 : i64, scratch_operands = 0 : i64, tpu.core_type = #tpu.core_type<tc>, window_params = [{transform_indices = @transform_0, window_bounds = array<i64: 9, 64, 64>}, {transform_indices = @transform_1, window_bounds = array<i64: 64, 64>}]} {
    %c0 = arith.constant 0 : index
    %c0_0 = arith.constant 0 : index
    %c0_1 = arith.constant 0 : index
    %0 = vector.load %arg1[%c0, %c0_0, %c0_1] : memref<9x64x64xbf16, #tpu.memory_space<vmem>>, vector<9x64x64xbf16>
    %cst = arith.constant dense<0xFF80> : vector<64x64xbf16>
    %1 = vector.multi_reduction <maximumf>, %0, %cst [0] : vector<9x64x64xbf16> to vector<64x64xbf16>
    %c0_2 = arith.constant 0 : index
    %c0_3 = arith.constant 0 : index
    %2 = vector.load %arg2[%c0_2, %c0_3] : memref<64x64xbf16, #tpu.memory_space<vmem>>, vector<64x64xbf16>
    tpu.vector_store %arg2[%c0_2, %c0_3], %1 {strides = array<i32>} : memref<64x64xbf16, #tpu.memory_space<vmem>>, vector<64x64xbf16>,
    return
  }
  func.func @transform_0(%arg0: i32) -> (i32, i32, i32) {
    %c0_i32 = arith.constant 0 : i32
    %c0_i32_0 = arith.constant 0 : i32
    %c0_i32_1 = arith.constant 0 : i32
    return %c0_i32, %arg0, %c0_i32_0 : i32, i32, i32
  }
  func.func @transform_1(%arg0: i32) -> (i32, i32) {
    %c0_i32 = arith.constant 0 : i32
    %c0_i32_0 = arith.constant 0 : i32
    return %arg0, %c0_i32 : i32, i32
  }
}

module attributes {stable_mosaic.version = 11 : i64} {
  func.func @_gconv_matmul_kernel(%arg0: i32, %arg1: memref<64x64xbf16, #tpu.memory_space<vmem>>, %arg2: memref<1x64x32xbf16, #tpu.memory_space<vmem>>, %arg3: memref<1x32xf32, #tpu.memory_space<vmem>>, %arg4: memref<64x32xbf16, #tpu.memory_space<vmem>>) attributes {dimension_semantics = [#tpu.dimension_semantics<parallel>], iteration_bounds = array<i64: 2>, scalar_prefetch = 0 : i64, scratch_operands = 0 : i64, tpu.core_type = #tpu.core_type<tc>, window_params = [{transform_indices = @transform_0, window_bounds = array<i64: 64, 64>}, {pipeline_mode = #tpu.pipeline_mode<synchronous>, transform_indices = @transform_1, window_bounds = array<i64: 1, 64, 32>}, {pipeline_mode = #tpu.pipeline_mode<synchronous>, transform_indices = @transform_2, window_bounds = array<i64: 1, 32>}, {transform_indices = @transform_3, window_bounds = array<i64: 64, 32>}]} {
    %c0 = arith.constant 0 : index
    %c0_0 = arith.constant 0 : index
    %0 = vector.load %arg1[%c0, %c0_0] : memref<64x64xbf16, #tpu.memory_space<vmem>>, vector<64x64xbf16>
    %c0_1 = arith.constant 0 : index
    %c0_2 = arith.constant 0 : index
    %c0_3 = arith.constant 0 : index
    %1 = vector.load %arg2[%c0_1, %c0_2, %c0_3] : memref<1x64x32xbf16, #tpu.memory_space<vmem>>, vector<1x64x32xbf16>
    %2 = vector.shape_cast %1 : vector<1x64x32xbf16> to vector<64x32xbf16>
    %cst = arith.constant dense<0.000000e+00> : vector<64x32xf32>
    %3 = tpu.matmul %0, %2, %cst {dimension_numbers = #tpu.dot_dimension_numbers<[1], [0], [0], [1], [0, 0, 1, 1], [], []>} : vector<64x64xbf16>, vector<64x32xbf16>, vector<64x32xf32> -> vector<64x32xf32>
    %c0_4 = arith.constant 0 : index
    %c0_5 = arith.constant 0 : index
    %4 = vector.load %arg3[%c0_4, %c0_5] : memref<1x32xf32, #tpu.memory_space<vmem>>, vector<1x32xf32>
    %5 = vector.broadcast %4 : vector<1x32xf32> to vector<64x32xf32>
    %6 = arith.addf %3, %5 : vector<64x32xf32>
    %cst_6 = arith.constant 0.000000e+00 : f32
    %7 = vector.broadcast %cst_6 : f32 to vector<64x32xf32>
    %8 = arith.maximumf %6, %7 : vector<64x32xf32>
    %9 = arith.truncf %8 : vector<64x32xf32> to vector<64x32xbf16>
    %c0_7 = arith.constant 0 : index
    %c0_8 = arith.constant 0 : index
    %10 = vector.load %arg4[%c0_7, %c0_8] : memref<64x32xbf16, #tpu.memory_space<vmem>>, vector<64x32xbf16>
    tpu.vector_store %arg4[%c0_7, %c0_8], %9 {strides = array<i32>} : memref<64x32xbf16, #tpu.memory_space<vmem>>, vector<64x32xbf16>,
    return
  }
  func.func @transform_0(%arg0: i32) -> (i32, i32) {
    %c0_i32 = arith.constant 0 : i32
    %c0_i32_0 = arith.constant 0 : i32
    return %arg0, %c0_i32 : i32, i32
  }
  func.func @transform_1(%arg0: i32) -> (i32, i32, i32) {
    %c0_i32 = arith.constant 0 : i32
    %c0_i32_0 = arith.constant 0 : i32
    %c0_i32_1 = arith.constant 0 : i32
    %c0_i32_2 = arith.constant 0 : i32
    return %c0_i32, %c0_i32_0, %c0_i32_1 : i32, i32, i32
  }
  func.func @transform_2(%arg0: i32) -> (i32, i32) {
    %c0_i32 = arith.constant 0 : i32
    %c0_i32_0 = arith.constant 0 : i32
    %c0_i32_1 = arith.constant 0 : i32
    return %c0_i32, %c0_i32_0 : i32, i32
  }
  func.func @transform_3(%arg0: i32) -> (i32, i32) {
    %c0_i32 = arith.constant 0 : i32
    %c0_i32_0 = arith.constant 0 : i32
    return %arg0, %c0_i32 : i32, i32
  }
}

module attributes {stable_mosaic.version = 11 : i64} {
  func.func @_gconv_matmul_kernel(%arg0: i32, %arg1: memref<64x288xbf16, #tpu.memory_space<vmem>>, %arg2: memref<2x144x16xbf16, #tpu.memory_space<vmem>>, %arg3: memref<1x32xf32, #tpu.memory_space<vmem>>, %arg4: memref<64x32xbf16, #tpu.memory_space<vmem>>) attributes {dimension_semantics = [#tpu.dimension_semantics<parallel>], iteration_bounds = array<i64: 2>, scalar_prefetch = 0 : i64, scratch_operands = 0 : i64, tpu.core_type = #tpu.core_type<tc>, window_params = [{transform_indices = @transform_0, window_bounds = array<i64: 64, 288>}, {pipeline_mode = #tpu.pipeline_mode<synchronous>, transform_indices = @transform_1, window_bounds = array<i64: 2, 144, 16>}, {pipeline_mode = #tpu.pipeline_mode<synchronous>, transform_indices = @transform_2, window_bounds = array<i64: 1, 32>}, {transform_indices = @transform_3, window_bounds = array<i64: 64, 32>}]} {
    %c0 = arith.constant 0 : index
    %c0_0 = arith.constant 0 : index
    %0 = vector.load %arg1[%c0, %c0_0] : memref<64x288xbf16, #tpu.memory_space<vmem>>, vector<64x144xbf16>
    %c0_1 = arith.constant 0 : index
    %c0_2 = arith.constant 0 : index
    %c0_3 = arith.constant 0 : index
    %1 = vector.load %arg2[%c0_1, %c0_2, %c0_3] : memref<2x144x16xbf16, #tpu.memory_space<vmem>>, vector<1x144x16xbf16>
    %2 = vector.shape_cast %1 : vector<1x144x16xbf16> to vector<144x16xbf16>
    %cst = arith.constant dense<0.000000e+00> : vector<64x16xf32>
    %3 = tpu.matmul %0, %2, %cst {dimension_numbers = #tpu.dot_dimension_numbers<[1], [0], [0], [1], [0, 0, 1, 1], [], []>} : vector<64x144xbf16>, vector<144x16xbf16>, vector<64x16xf32> -> vector<64x16xf32>
    %c0_4 = arith.constant 0 : index
    %c144 = arith.constant 144 : index
    %4 = vector.load %arg1[%c0_4, %c144] : memref<64x288xbf16, #tpu.memory_space<vmem>>, vector<64x144xbf16>
    %c1 = arith.constant 1 : index
    %c0_5 = arith.constant 0 : index
    %c0_6 = arith.constant 0 : index
    %5 = vector.load %arg2[%c1, %c0_5, %c0_6] : memref<2x144x16xbf16, #tpu.memory_space<vmem>>, vector<1x144x16xbf16>
    %6 = vector.shape_cast %5 : vector<1x144x16xbf16> to vector<144x16xbf16>
    %cst_7 = arith.constant dense<0.000000e+00> : vector<64x16xf32>
    %7 = tpu.matmul %4, %6, %cst_7 {dimension_numbers = #tpu.dot_dimension_numbers<[1], [0], [0], [1], [0, 0, 1, 1], [], []>} : vector<64x144xbf16>, vector<144x16xbf16>, vector<64x16xf32> -> vector<64x16xf32>
    %8 = tpu.concatenate %3, %7 in 1 : vector<64x16xf32>, vector<64x16xf32> -> vector<64x32xf32>
    %c0_8 = arith.constant 0 : index
    %c0_9 = arith.constant 0 : index
    %9 = vector.load %arg3[%c0_8, %c0_9] : memref<1x32xf32, #tpu.memory_space<vmem>>, vector<1x32xf32>
    %10 = vector.broadcast %9 : vector<1x32xf32> to vector<64x32xf32>
    %11 = arith.addf %8, %10 : vector<64x32xf32>
    %cst_10 = arith.constant 0.000000e+00 : f32
    %12 = vector.broadcast %cst_10 : f32 to vector<64x32xf32>
    %13 = arith.maximumf %11, %12 : vector<64x32xf32>
    %14 = arith.truncf %13 : vector<64x32xf32> to vector<64x32xbf16>
    %c0_11 = arith.constant 0 : index
    %c0_12 = arith.constant 0 : index
    %15 = vector.load %arg4[%c0_11, %c0_12] : memref<64x32xbf16, #tpu.memory_space<vmem>>, vector<64x32xbf16>
    tpu.vector_store %arg4[%c0_11, %c0_12], %14 {strides = array<i32>} : memref<64x32xbf16, #tpu.memory_space<vmem>>, vector<64x32xbf16>,
    return
  }
  func.func @transform_0(%arg0: i32) -> (i32, i32) {
    %c0_i32 = arith.constant 0 : i32
    %c0_i32_0 = arith.constant 0 : i32
    return %arg0, %c0_i32 : i32, i32
  }
  func.func @transform_1(%arg0: i32) -> (i32, i32, i32) {
    %c0_i32 = arith.constant 0 : i32
    %c0_i32_0 = arith.constant 0 : i32
    %c0_i32_1 = arith.constant 0 : i32
    %c0_i32_2 = arith.constant 0 : i32
    return %c0_i32, %c0_i32_0, %c0_i32_1 : i32, i32, i32
  }
  func.func @transform_2(%arg0: i32) -> (i32, i32) {
    %c0_i32 = arith.constant 0 : i32
    %c0_i32_0 = arith.constant 0 : i32
    %c0_i32_1 = arith.constant 0 : i32
    return %c0_i32, %c0_i32_0 : i32, i32
  }
  func.func @transform_3(%arg0: i32) -> (i32, i32) {
    %c0_i32 = arith.constant 0 : i32
    %c0_i32_0 = arith.constant 0 : i32
    return %arg0, %c0_i32 : i32, i32
  }
}

module attributes {stable_mosaic.version = 11 : i64} {
  func.func @_gconv_matmul_kernel(%arg0: i32, %arg1: memref<64x32xbf16, #tpu.memory_space<vmem>>, %arg2: memref<1x32x64xbf16, #tpu.memory_space<vmem>>, %arg3: memref<1x64xf32, #tpu.memory_space<vmem>>, %arg4: memref<64x64xbf16, #tpu.memory_space<vmem>>, %arg5: memref<64x64xbf16, #tpu.memory_space<vmem>>) attributes {dimension_semantics = [#tpu.dimension_semantics<parallel>], iteration_bounds = array<i64: 2>, scalar_prefetch = 0 : i64, scratch_operands = 0 : i64, tpu.core_type = #tpu.core_type<tc>, window_params = [{transform_indices = @transform_0, window_bounds = array<i64: 64, 32>}, {pipeline_mode = #tpu.pipeline_mode<synchronous>, transform_indices = @transform_1, window_bounds = array<i64: 1, 32, 64>}, {pipeline_mode = #tpu.pipeline_mode<synchronous>, transform_indices = @transform_2, window_bounds = array<i64: 1, 64>}, {transform_indices = @transform_3, window_bounds = array<i64: 64, 64>}, {transform_indices = @transform_4, window_bounds = array<i64: 64, 64>}]} {
    %c0 = arith.constant 0 : index
    %c0_0 = arith.constant 0 : index
    %0 = vector.load %arg1[%c0, %c0_0] : memref<64x32xbf16, #tpu.memory_space<vmem>>, vector<64x32xbf16>
    %c0_1 = arith.constant 0 : index
    %c0_2 = arith.constant 0 : index
    %c0_3 = arith.constant 0 : index
    %1 = vector.load %arg2[%c0_1, %c0_2, %c0_3] : memref<1x32x64xbf16, #tpu.memory_space<vmem>>, vector<1x32x64xbf16>
    %2 = vector.shape_cast %1 : vector<1x32x64xbf16> to vector<32x64xbf16>
    %cst = arith.constant dense<0.000000e+00> : vector<64x64xf32>
    %3 = tpu.matmul %0, %2, %cst {dimension_numbers = #tpu.dot_dimension_numbers<[1], [0], [0], [1], [0, 0, 1, 1], [], []>} : vector<64x32xbf16>, vector<32x64xbf16>, vector<64x64xf32> -> vector<64x64xf32>
    %c0_4 = arith.constant 0 : index
    %c0_5 = arith.constant 0 : index
    %4 = vector.load %arg3[%c0_4, %c0_5] : memref<1x64xf32, #tpu.memory_space<vmem>>, vector<1x64xf32>
    %5 = vector.broadcast %4 : vector<1x64xf32> to vector<64x64xf32>
    %6 = arith.addf %3, %5 : vector<64x64xf32>
    %c0_6 = arith.constant 0 : index
    %c0_7 = arith.constant 0 : index
    %7 = vector.load %arg4[%c0_6, %c0_7] : memref<64x64xbf16, #tpu.memory_space<vmem>>, vector<64x64xbf16>
    %8 = arith.extf %7 : vector<64x64xbf16> to vector<64x64xf32>
    %9 = arith.addf %6, %8 : vector<64x64xf32>
    %cst_8 = arith.constant 0.000000e+00 : f32
    %10 = vector.broadcast %cst_8 : f32 to vector<64x64xf32>
    %11 = arith.maximumf %9, %10 : vector<64x64xf32>
    %12 = arith.truncf %11 : vector<64x64xf32> to vector<64x64xbf16>
    %c0_9 = arith.constant 0 : index
    %c0_10 = arith.constant 0 : index
    %13 = vector.load %arg5[%c0_9, %c0_10] : memref<64x64xbf16, #tpu.memory_space<vmem>>, vector<64x64xbf16>
    tpu.vector_store %arg5[%c0_9, %c0_10], %12 {strides = array<i32>} : memref<64x64xbf16, #tpu.memory_space<vmem>>, vector<64x64xbf16>,
    return
  }
  func.func @transform_0(%arg0: i32) -> (i32, i32) {
    %c0_i32 = arith.constant 0 : i32
    %c0_i32_0 = arith.constant 0 : i32
    return %arg0, %c0_i32 : i32, i32
  }
  func.func @transform_1(%arg0: i32) -> (i32, i32, i32) {
    %c0_i32 = arith.constant 0 : i32
    %c0_i32_0 = arith.constant 0 : i32
    %c0_i32_1 = arith.constant 0 : i32
    %c0_i32_2 = arith.constant 0 : i32
    return %c0_i32, %c0_i32_0, %c0_i32_1 : i32, i32, i32
  }
  func.func @transform_2(%arg0: i32) -> (i32, i32) {
    %c0_i32 = arith.constant 0 : i32
    %c0_i32_0 = arith.constant 0 : i32
    %c0_i32_1 = arith.constant 0 : i32
    return %c0_i32, %c0_i32_0 : i32, i32
  }
  func.func @transform_3(%arg0: i32) -> (i32, i32) {
    %c0_i32 = arith.constant 0 : i32
    %c0_i32_0 = arith.constant 0 : i32
    return %arg0, %c0_i32 : i32, i32
  }
  func.func @transform_4(%arg0: i32) -> (i32, i32) {
    %c0_i32 = arith.constant 0 : i32
    %c0_i32_0 = arith.constant 0 : i32
    return %arg0, %c0_i32 : i32, i32
  }
}

module attributes {stable_mosaic.version = 11 : i64} {
  func.func @_gconv_matmul_kernel(%arg0: i32, %arg1: memref<64x64xbf16, #tpu.memory_space<vmem>>, %arg2: memref<1x64x64xbf16, #tpu.memory_space<vmem>>, %arg3: memref<1x64xf32, #tpu.memory_space<vmem>>, %arg4: memref<64x64xbf16, #tpu.memory_space<vmem>>) attributes {dimension_semantics = [#tpu.dimension_semantics<parallel>], iteration_bounds = array<i64: 2>, scalar_prefetch = 0 : i64, scratch_operands = 0 : i64, tpu.core_type = #tpu.core_type<tc>, window_params = [{transform_indices = @transform_0, window_bounds = array<i64: 64, 64>}, {pipeline_mode = #tpu.pipeline_mode<synchronous>, transform_indices = @transform_1, window_bounds = array<i64: 1, 64, 64>}, {pipeline_mode = #tpu.pipeline_mode<synchronous>, transform_indices = @transform_2, window_bounds = array<i64: 1, 64>}, {transform_indices = @transform_3, window_bounds = array<i64: 64, 64>}]} {
    %c0 = arith.constant 0 : index
    %c0_0 = arith.constant 0 : index
    %0 = vector.load %arg1[%c0, %c0_0] : memref<64x64xbf16, #tpu.memory_space<vmem>>, vector<64x64xbf16>
    %c0_1 = arith.constant 0 : index
    %c0_2 = arith.constant 0 : index
    %c0_3 = arith.constant 0 : index
    %1 = vector.load %arg2[%c0_1, %c0_2, %c0_3] : memref<1x64x64xbf16, #tpu.memory_space<vmem>>, vector<1x64x64xbf16>
    %2 = vector.shape_cast %1 : vector<1x64x64xbf16> to vector<64x64xbf16>
    %cst = arith.constant dense<0.000000e+00> : vector<64x64xf32>
    %3 = tpu.matmul %0, %2, %cst {dimension_numbers = #tpu.dot_dimension_numbers<[1], [0], [0], [1], [0, 0, 1, 1], [], []>} : vector<64x64xbf16>, vector<64x64xbf16>, vector<64x64xf32> -> vector<64x64xf32>
    %c0_4 = arith.constant 0 : index
    %c0_5 = arith.constant 0 : index
    %4 = vector.load %arg3[%c0_4, %c0_5] : memref<1x64xf32, #tpu.memory_space<vmem>>, vector<1x64xf32>
    %5 = vector.broadcast %4 : vector<1x64xf32> to vector<64x64xf32>
    %6 = arith.addf %3, %5 : vector<64x64xf32>
    %cst_6 = arith.constant 0.000000e+00 : f32
    %7 = vector.broadcast %cst_6 : f32 to vector<64x64xf32>
    %8 = arith.maximumf %6, %7 : vector<64x64xf32>
    %9 = arith.truncf %8 : vector<64x64xf32> to vector<64x64xbf16>
    %c0_7 = arith.constant 0 : index
    %c0_8 = arith.constant 0 : index
    %10 = vector.load %arg4[%c0_7, %c0_8] : memref<64x64xbf16, #tpu.memory_space<vmem>>, vector<64x64xbf16>
    tpu.vector_store %arg4[%c0_7, %c0_8], %9 {strides = array<i32>} : memref<64x64xbf16, #tpu.memory_space<vmem>>, vector<64x64xbf16>,
    return
  }
  func.func @transform_0(%arg0: i32) -> (i32, i32) {
    %c0_i32 = arith.constant 0 : i32
    %c0_i32_0 = arith.constant 0 : i32
    return %arg0, %c0_i32 : i32, i32
  }
  func.func @transform_1(%arg0: i32) -> (i32, i32, i32) {
    %c0_i32 = arith.constant 0 : i32
    %c0_i32_0 = arith.constant 0 : i32
    %c0_i32_1 = arith.constant 0 : i32
    %c0_i32_2 = arith.constant 0 : i32
    return %c0_i32, %c0_i32_0, %c0_i32_1 : i32, i32, i32
  }
  func.func @transform_2(%arg0: i32) -> (i32, i32) {
    %c0_i32 = arith.constant 0 : i32
    %c0_i32_0 = arith.constant 0 : i32
    %c0_i32_1 = arith.constant 0 : i32
    return %c0_i32, %c0_i32_0 : i32, i32
  }
  func.func @transform_3(%arg0: i32) -> (i32, i32) {
    %c0_i32 = arith.constant 0 : i32
    %c0_i32_0 = arith.constant 0 : i32
    return %arg0, %c0_i32 : i32, i32
  }
}

module attributes {stable_mosaic.version = 11 : i64} {
  func.func @_gconv_matmul_kernel(%arg0: i32, %arg1: memref<16x576xbf16, #tpu.memory_space<vmem>>, %arg2: memref<2x288x32xbf16, #tpu.memory_space<vmem>>, %arg3: memref<1x64xf32, #tpu.memory_space<vmem>>, %arg4: memref<16x64xbf16, #tpu.memory_space<vmem>>) attributes {dimension_semantics = [#tpu.dimension_semantics<parallel>], iteration_bounds = array<i64: 2>, scalar_prefetch = 0 : i64, scratch_operands = 0 : i64, tpu.core_type = #tpu.core_type<tc>, window_params = [{transform_indices = @transform_0, window_bounds = array<i64: 16, 576>}, {pipeline_mode = #tpu.pipeline_mode<synchronous>, transform_indices = @transform_1, window_bounds = array<i64: 2, 288, 32>}, {pipeline_mode = #tpu.pipeline_mode<synchronous>, transform_indices = @transform_2, window_bounds = array<i64: 1, 64>}, {transform_indices = @transform_3, window_bounds = array<i64: 16, 64>}]} {
    %c0 = arith.constant 0 : index
    %c0_0 = arith.constant 0 : index
    %0 = vector.load %arg1[%c0, %c0_0] : memref<16x576xbf16, #tpu.memory_space<vmem>>, vector<16x288xbf16>
    %c0_1 = arith.constant 0 : index
    %c0_2 = arith.constant 0 : index
    %c0_3 = arith.constant 0 : index
    %1 = vector.load %arg2[%c0_1, %c0_2, %c0_3] : memref<2x288x32xbf16, #tpu.memory_space<vmem>>, vector<1x288x32xbf16>
    %2 = vector.shape_cast %1 : vector<1x288x32xbf16> to vector<288x32xbf16>
    %cst = arith.constant dense<0.000000e+00> : vector<16x32xf32>
    %3 = tpu.matmul %0, %2, %cst {dimension_numbers = #tpu.dot_dimension_numbers<[1], [0], [0], [1], [0, 0, 1, 1], [], []>} : vector<16x288xbf16>, vector<288x32xbf16>, vector<16x32xf32> -> vector<16x32xf32>
    %c0_4 = arith.constant 0 : index
    %c288 = arith.constant 288 : index
    %4 = vector.load %arg1[%c0_4, %c288] : memref<16x576xbf16, #tpu.memory_space<vmem>>, vector<16x288xbf16>
    %c1 = arith.constant 1 : index
    %c0_5 = arith.constant 0 : index
    %c0_6 = arith.constant 0 : index
    %5 = vector.load %arg2[%c1, %c0_5, %c0_6] : memref<2x288x32xbf16, #tpu.memory_space<vmem>>, vector<1x288x32xbf16>
    %6 = vector.shape_cast %5 : vector<1x288x32xbf16> to vector<288x32xbf16>
    %cst_7 = arith.constant dense<0.000000e+00> : vector<16x32xf32>
    %7 = tpu.matmul %4, %6, %cst_7 {dimension_numbers = #tpu.dot_dimension_numbers<[1], [0], [0], [1], [0, 0, 1, 1], [], []>} : vector<16x288xbf16>, vector<288x32xbf16>, vector<16x32xf32> -> vector<16x32xf32>
    %8 = tpu.concatenate %3, %7 in 1 : vector<16x32xf32>, vector<16x32xf32> -> vector<16x64xf32>
    %c0_8 = arith.constant 0 : index
    %c0_9 = arith.constant 0 : index
    %9 = vector.load %arg3[%c0_8, %c0_9] : memref<1x64xf32, #tpu.memory_space<vmem>>, vector<1x64xf32>
    %10 = vector.broadcast %9 : vector<1x64xf32> to vector<16x64xf32>
    %11 = arith.addf %8, %10 : vector<16x64xf32>
    %cst_10 = arith.constant 0.000000e+00 : f32
    %12 = vector.broadcast %cst_10 : f32 to vector<16x64xf32>
    %13 = arith.maximumf %11, %12 : vector<16x64xf32>
    %14 = arith.truncf %13 : vector<16x64xf32> to vector<16x64xbf16>
    %c0_11 = arith.constant 0 : index
    %c0_12 = arith.constant 0 : index
    %15 = vector.load %arg4[%c0_11, %c0_12] : memref<16x64xbf16, #tpu.memory_space<vmem>>, vector<16x64xbf16>
    tpu.vector_store %arg4[%c0_11, %c0_12], %14 {strides = array<i32>} : memref<16x64xbf16, #tpu.memory_space<vmem>>, vector<16x64xbf16>,
    return
  }
  func.func @transform_0(%arg0: i32) -> (i32, i32) {
    %c0_i32 = arith.constant 0 : i32
    %c0_i32_0 = arith.constant 0 : i32
    return %arg0, %c0_i32 : i32, i32
  }
  func.func @transform_1(%arg0: i32) -> (i32, i32, i32) {
    %c0_i32 = arith.constant 0 : i32
    %c0_i32_0 = arith.constant 0 : i32
    %c0_i32_1 = arith.constant 0 : i32
    %c0_i32_2 = arith.constant 0 : i32
    return %c0_i32, %c0_i32_0, %c0_i32_1 : i32, i32, i32
  }
  func.func @transform_2(%arg0: i32) -> (i32, i32) {
    %c0_i32 = arith.constant 0 : i32
    %c0_i32_0 = arith.constant 0 : i32
    %c0_i32_1 = arith.constant 0 : i32
    return %c0_i32, %c0_i32_0 : i32, i32
  }
  func.func @transform_3(%arg0: i32) -> (i32, i32) {
    %c0_i32 = arith.constant 0 : i32
    %c0_i32_0 = arith.constant 0 : i32
    return %arg0, %c0_i32 : i32, i32
  }
}

module attributes {stable_mosaic.version = 11 : i64} {
  func.func @_gconv_matmul_kernel(%arg0: i32, %arg1: memref<16x64xbf16, #tpu.memory_space<vmem>>, %arg2: memref<1x64x128xbf16, #tpu.memory_space<vmem>>, %arg3: memref<1x128xf32, #tpu.memory_space<vmem>>, %arg4: memref<16x128xbf16, #tpu.memory_space<vmem>>, %arg5: memref<16x128xbf16, #tpu.memory_space<vmem>>) attributes {dimension_semantics = [#tpu.dimension_semantics<parallel>], iteration_bounds = array<i64: 2>, scalar_prefetch = 0 : i64, scratch_operands = 0 : i64, tpu.core_type = #tpu.core_type<tc>, window_params = [{transform_indices = @transform_0, window_bounds = array<i64: 16, 64>}, {pipeline_mode = #tpu.pipeline_mode<synchronous>, transform_indices = @transform_1, window_bounds = array<i64: 1, 64, 128>}, {pipeline_mode = #tpu.pipeline_mode<synchronous>, transform_indices = @transform_2, window_bounds = array<i64: 1, 128>}, {transform_indices = @transform_3, window_bounds = array<i64: 16, 128>}, {transform_indices = @transform_4, window_bounds = array<i64: 16, 128>}]} {
    %c0 = arith.constant 0 : index
    %c0_0 = arith.constant 0 : index
    %0 = vector.load %arg1[%c0, %c0_0] : memref<16x64xbf16, #tpu.memory_space<vmem>>, vector<16x64xbf16>
    %c0_1 = arith.constant 0 : index
    %c0_2 = arith.constant 0 : index
    %c0_3 = arith.constant 0 : index
    %1 = vector.load %arg2[%c0_1, %c0_2, %c0_3] : memref<1x64x128xbf16, #tpu.memory_space<vmem>>, vector<1x64x128xbf16>
    %2 = vector.shape_cast %1 : vector<1x64x128xbf16> to vector<64x128xbf16>
    %cst = arith.constant dense<0.000000e+00> : vector<16x128xf32>
    %3 = tpu.matmul %0, %2, %cst {dimension_numbers = #tpu.dot_dimension_numbers<[1], [0], [0], [1], [0, 0, 1, 1], [], []>} : vector<16x64xbf16>, vector<64x128xbf16>, vector<16x128xf32> -> vector<16x128xf32>
    %c0_4 = arith.constant 0 : index
    %c0_5 = arith.constant 0 : index
    %4 = vector.load %arg3[%c0_4, %c0_5] : memref<1x128xf32, #tpu.memory_space<vmem>>, vector<1x128xf32>
    %5 = vector.broadcast %4 : vector<1x128xf32> to vector<16x128xf32>
    %6 = arith.addf %3, %5 : vector<16x128xf32>
    %c0_6 = arith.constant 0 : index
    %c0_7 = arith.constant 0 : index
    %7 = vector.load %arg4[%c0_6, %c0_7] : memref<16x128xbf16, #tpu.memory_space<vmem>>, vector<16x128xbf16>
    %8 = arith.extf %7 : vector<16x128xbf16> to vector<16x128xf32>
    %9 = arith.addf %6, %8 : vector<16x128xf32>
    %cst_8 = arith.constant 0.000000e+00 : f32
    %10 = vector.broadcast %cst_8 : f32 to vector<16x128xf32>
    %11 = arith.maximumf %9, %10 : vector<16x128xf32>
    %12 = arith.truncf %11 : vector<16x128xf32> to vector<16x128xbf16>
    %c0_9 = arith.constant 0 : index
    %c0_10 = arith.constant 0 : index
    %13 = vector.load %arg5[%c0_9, %c0_10] : memref<16x128xbf16, #tpu.memory_space<vmem>>, vector<16x128xbf16>
    tpu.vector_store %arg5[%c0_9, %c0_10], %12 {strides = array<i32>} : memref<16x128xbf16, #tpu.memory_space<vmem>>, vector<16x128xbf16>,
    return
  }
  func.func @transform_0(%arg0: i32) -> (i32, i32) {
    %c0_i32 = arith.constant 0 : i32
    %c0_i32_0 = arith.constant 0 : i32
    return %arg0, %c0_i32 : i32, i32
  }
  func.func @transform_1(%arg0: i32) -> (i32, i32, i32) {
    %c0_i32 = arith.constant 0 : i32
    %c0_i32_0 = arith.constant 0 : i32
    %c0_i32_1 = arith.constant 0 : i32
    %c0_i32_2 = arith.constant 0 : i32
    return %c0_i32, %c0_i32_0, %c0_i32_1 : i32, i32, i32
  }
  func.func @transform_2(%arg0: i32) -> (i32, i32) {
    %c0_i32 = arith.constant 0 : i32
    %c0_i32_0 = arith.constant 0 : i32
    %c0_i32_1 = arith.constant 0 : i32
    return %c0_i32, %c0_i32_0 : i32, i32
  }
  func.func @transform_3(%arg0: i32) -> (i32, i32) {
    %c0_i32 = arith.constant 0 : i32
    %c0_i32_0 = arith.constant 0 : i32
    return %arg0, %c0_i32 : i32, i32
  }
  func.func @transform_4(%arg0: i32) -> (i32, i32) {
    %c0_i32 = arith.constant 0 : i32
    %c0_i32_0 = arith.constant 0 : i32
    return %arg0, %c0_i32 : i32, i32
  }
}

module attributes {stable_mosaic.version = 11 : i64} {
  func.func @_gconv_matmul_kernel(%arg0: i32, %arg1: memref<16x64xbf16, #tpu.memory_space<vmem>>, %arg2: memref<1x64x128xbf16, #tpu.memory_space<vmem>>, %arg3: memref<1x128xf32, #tpu.memory_space<vmem>>, %arg4: memref<16x128xbf16, #tpu.memory_space<vmem>>) attributes {dimension_semantics = [#tpu.dimension_semantics<parallel>], iteration_bounds = array<i64: 2>, scalar_prefetch = 0 : i64, scratch_operands = 0 : i64, tpu.core_type = #tpu.core_type<tc>, window_params = [{transform_indices = @transform_0, window_bounds = array<i64: 16, 64>}, {pipeline_mode = #tpu.pipeline_mode<synchronous>, transform_indices = @transform_1, window_bounds = array<i64: 1, 64, 128>}, {pipeline_mode = #tpu.pipeline_mode<synchronous>, transform_indices = @transform_2, window_bounds = array<i64: 1, 128>}, {transform_indices = @transform_3, window_bounds = array<i64: 16, 128>}]} {
    %c0 = arith.constant 0 : index
    %c0_0 = arith.constant 0 : index
    %0 = vector.load %arg1[%c0, %c0_0] : memref<16x64xbf16, #tpu.memory_space<vmem>>, vector<16x64xbf16>
    %c0_1 = arith.constant 0 : index
    %c0_2 = arith.constant 0 : index
    %c0_3 = arith.constant 0 : index
    %1 = vector.load %arg2[%c0_1, %c0_2, %c0_3] : memref<1x64x128xbf16, #tpu.memory_space<vmem>>, vector<1x64x128xbf16>
    %2 = vector.shape_cast %1 : vector<1x64x128xbf16> to vector<64x128xbf16>
    %cst = arith.constant dense<0.000000e+00> : vector<16x128xf32>
    %3 = tpu.matmul %0, %2, %cst {dimension_numbers = #tpu.dot_dimension_numbers<[1], [0], [0], [1], [0, 0, 1, 1], [], []>} : vector<16x64xbf16>, vector<64x128xbf16>, vector<16x128xf32> -> vector<16x128xf32>
    %c0_4 = arith.constant 0 : index
    %c0_5 = arith.constant 0 : index
    %4 = vector.load %arg3[%c0_4, %c0_5] : memref<1x128xf32, #tpu.memory_space<vmem>>, vector<1x128xf32>
    %5 = vector.broadcast %4 : vector<1x128xf32> to vector<16x128xf32>
    %6 = arith.addf %3, %5 : vector<16x128xf32>
    %7 = arith.truncf %6 : vector<16x128xf32> to vector<16x128xbf16>
    %c0_6 = arith.constant 0 : index
    %c0_7 = arith.constant 0 : index
    %8 = vector.load %arg4[%c0_6, %c0_7] : memref<16x128xbf16, #tpu.memory_space<vmem>>, vector<16x128xbf16>
    tpu.vector_store %arg4[%c0_6, %c0_7], %7 {strides = array<i32>} : memref<16x128xbf16, #tpu.memory_space<vmem>>, vector<16x128xbf16>,
    return
  }
  func.func @transform_0(%arg0: i32) -> (i32, i32) {
    %c0_i32 = arith.constant 0 : i32
    %c0_i32_0 = arith.constant 0 : i32
    return %arg0, %c0_i32 : i32, i32
  }
  func.func @transform_1(%arg0: i32) -> (i32, i32, i32) {
    %c0_i32 = arith.constant 0 : i32
    %c0_i32_0 = arith.constant 0 : i32
    %c0_i32_1 = arith.constant 0 : i32
    %c0_i32_2 = arith.constant 0 : i32
    return %c0_i32, %c0_i32_0, %c0_i32_1 : i32, i32, i32
  }
  func.func @transform_2(%arg0: i32) -> (i32, i32) {
    %c0_i32 = arith.constant 0 : i32
    %c0_i32_0 = arith.constant 0 : i32
    %c0_i32_1 = arith.constant 0 : i32
    return %c0_i32, %c0_i32_0 : i32, i32
  }
  func.func @transform_3(%arg0: i32) -> (i32, i32) {
    %c0_i32 = arith.constant 0 : i32
    %c0_i32_0 = arith.constant 0 : i32
    return %arg0, %c0_i32 : i32, i32
  }
}

module attributes {stable_mosaic.version = 11 : i64} {
  func.func @_gconv_matmul_kernel(%arg0: i32, %arg1: memref<16x128xbf16, #tpu.memory_space<vmem>>, %arg2: memref<1x128x128xbf16, #tpu.memory_space<vmem>>, %arg3: memref<1x128xf32, #tpu.memory_space<vmem>>, %arg4: memref<16x128xbf16, #tpu.memory_space<vmem>>) attributes {dimension_semantics = [#tpu.dimension_semantics<parallel>], iteration_bounds = array<i64: 2>, scalar_prefetch = 0 : i64, scratch_operands = 0 : i64, tpu.core_type = #tpu.core_type<tc>, window_params = [{transform_indices = @transform_0, window_bounds = array<i64: 16, 128>}, {pipeline_mode = #tpu.pipeline_mode<synchronous>, transform_indices = @transform_1, window_bounds = array<i64: 1, 128, 128>}, {pipeline_mode = #tpu.pipeline_mode<synchronous>, transform_indices = @transform_2, window_bounds = array<i64: 1, 128>}, {transform_indices = @transform_3, window_bounds = array<i64: 16, 128>}]} {
    %c0 = arith.constant 0 : index
    %c0_0 = arith.constant 0 : index
    %0 = vector.load %arg1[%c0, %c0_0] : memref<16x128xbf16, #tpu.memory_space<vmem>>, vector<16x128xbf16>
    %c0_1 = arith.constant 0 : index
    %c0_2 = arith.constant 0 : index
    %c0_3 = arith.constant 0 : index
    %1 = vector.load %arg2[%c0_1, %c0_2, %c0_3] : memref<1x128x128xbf16, #tpu.memory_space<vmem>>, vector<1x128x128xbf16>
    %2 = vector.shape_cast %1 : vector<1x128x128xbf16> to vector<128x128xbf16>
    %cst = arith.constant dense<0.000000e+00> : vector<16x128xf32>
    %3 = tpu.matmul %0, %2, %cst {dimension_numbers = #tpu.dot_dimension_numbers<[1], [0], [0], [1], [0, 0, 1, 1], [], []>} : vector<16x128xbf16>, vector<128x128xbf16>, vector<16x128xf32> -> vector<16x128xf32>
    %c0_4 = arith.constant 0 : index
    %c0_5 = arith.constant 0 : index
    %4 = vector.load %arg3[%c0_4, %c0_5] : memref<1x128xf32, #tpu.memory_space<vmem>>, vector<1x128xf32>
    %5 = vector.broadcast %4 : vector<1x128xf32> to vector<16x128xf32>
    %6 = arith.addf %3, %5 : vector<16x128xf32>
    %cst_6 = arith.constant 0.000000e+00 : f32
    %7 = vector.broadcast %cst_6 : f32 to vector<16x128xf32>
    %8 = arith.maximumf %6, %7 : vector<16x128xf32>
    %9 = arith.truncf %8 : vector<16x128xf32> to vector<16x128xbf16>
    %c0_7 = arith.constant 0 : index
    %c0_8 = arith.constant 0 : index
    %10 = vector.load %arg4[%c0_7, %c0_8] : memref<16x128xbf16, #tpu.memory_space<vmem>>, vector<16x128xbf16>
    tpu.vector_store %arg4[%c0_7, %c0_8], %9 {strides = array<i32>} : memref<16x128xbf16, #tpu.memory_space<vmem>>, vector<16x128xbf16>,
    return
  }
  func.func @transform_0(%arg0: i32) -> (i32, i32) {
    %c0_i32 = arith.constant 0 : i32
    %c0_i32_0 = arith.constant 0 : i32
    return %arg0, %c0_i32 : i32, i32
  }
  func.func @transform_1(%arg0: i32) -> (i32, i32, i32) {
    %c0_i32 = arith.constant 0 : i32
    %c0_i32_0 = arith.constant 0 : i32
    %c0_i32_1 = arith.constant 0 : i32
    %c0_i32_2 = arith.constant 0 : i32
    return %c0_i32, %c0_i32_0, %c0_i32_1 : i32, i32, i32
  }
  func.func @transform_2(%arg0: i32) -> (i32, i32) {
    %c0_i32 = arith.constant 0 : i32
    %c0_i32_0 = arith.constant 0 : i32
    %c0_i32_1 = arith.constant 0 : i32
    return %c0_i32, %c0_i32_0 : i32, i32
  }
  func.func @transform_3(%arg0: i32) -> (i32, i32) {
    %c0_i32 = arith.constant 0 : i32
    %c0_i32_0 = arith.constant 0 : i32
    return %arg0, %c0_i32 : i32, i32
  }
}

module attributes {stable_mosaic.version = 11 : i64} {
  func.func @_gconv_matmul_kernel(%arg0: i32, %arg1: memref<8x128xbf16, #tpu.memory_space<vmem>>, %arg2: memref<1x128x256xbf16, #tpu.memory_space<vmem>>, %arg3: memref<1x256xf32, #tpu.memory_space<vmem>>, %arg4: memref<8x256xbf16, #tpu.memory_space<vmem>>) attributes {dimension_semantics = [#tpu.dimension_semantics<parallel>], iteration_bounds = array<i64: 1>, scalar_prefetch = 0 : i64, scratch_operands = 0 : i64, tpu.core_type = #tpu.core_type<tc>, window_params = [{transform_indices = @transform_0, window_bounds = array<i64: 8, 128>}, {pipeline_mode = #tpu.pipeline_mode<synchronous>, transform_indices = @transform_1, window_bounds = array<i64: 1, 128, 256>}, {pipeline_mode = #tpu.pipeline_mode<synchronous>, transform_indices = @transform_2, window_bounds = array<i64: 1, 256>}, {transform_indices = @transform_3, window_bounds = array<i64: 8, 256>}]} {
    %c0 = arith.constant 0 : index
    %c0_0 = arith.constant 0 : index
    %0 = vector.load %arg1[%c0, %c0_0] : memref<8x128xbf16, #tpu.memory_space<vmem>>, vector<8x128xbf16>
    %c0_1 = arith.constant 0 : index
    %c0_2 = arith.constant 0 : index
    %c0_3 = arith.constant 0 : index
    %1 = vector.load %arg2[%c0_1, %c0_2, %c0_3] : memref<1x128x256xbf16, #tpu.memory_space<vmem>>, vector<1x128x256xbf16>
    %2 = vector.shape_cast %1 : vector<1x128x256xbf16> to vector<128x256xbf16>
    %cst = arith.constant dense<0.000000e+00> : vector<8x256xf32>
    %3 = tpu.matmul %0, %2, %cst {dimension_numbers = #tpu.dot_dimension_numbers<[1], [0], [0], [1], [0, 0, 1, 1], [], []>} : vector<8x128xbf16>, vector<128x256xbf16>, vector<8x256xf32> -> vector<8x256xf32>
    %c0_4 = arith.constant 0 : index
    %c0_5 = arith.constant 0 : index
    %4 = vector.load %arg3[%c0_4, %c0_5] : memref<1x256xf32, #tpu.memory_space<vmem>>, vector<1x256xf32>
    %5 = vector.broadcast %4 : vector<1x256xf32> to vector<8x256xf32>
    %6 = arith.addf %3, %5 : vector<8x256xf32>
    %7 = arith.truncf %6 : vector<8x256xf32> to vector<8x256xbf16>
    %c0_6 = arith.constant 0 : index
    %c0_7 = arith.constant 0 : index
    %8 = vector.load %arg4[%c0_6, %c0_7] : memref<8x256xbf16, #tpu.memory_space<vmem>>, vector<8x256xbf16>
    tpu.vector_store %arg4[%c0_6, %c0_7], %7 {strides = array<i32>} : memref<8x256xbf16, #tpu.memory_space<vmem>>, vector<8x256xbf16>,
    return
  }
  func.func @transform_0(%arg0: i32) -> (i32, i32) {
    %c0_i32 = arith.constant 0 : i32
    %c0_i32_0 = arith.constant 0 : i32
    return %arg0, %c0_i32 : i32, i32
  }
  func.func @transform_1(%arg0: i32) -> (i32, i32, i32) {
    %c0_i32 = arith.constant 0 : i32
    %c0_i32_0 = arith.constant 0 : i32
    %c0_i32_1 = arith.constant 0 : i32
    %c0_i32_2 = arith.constant 0 : i32
    return %c0_i32, %c0_i32_0, %c0_i32_1 : i32, i32, i32
  }
  func.func @transform_2(%arg0: i32) -> (i32, i32) {
    %c0_i32 = arith.constant 0 : i32
    %c0_i32_0 = arith.constant 0 : i32
    %c0_i32_1 = arith.constant 0 : i32
    return %c0_i32, %c0_i32_0 : i32, i32
  }
  func.func @transform_3(%arg0: i32) -> (i32, i32) {
    %c0_i32 = arith.constant 0 : i32
    %c0_i32_0 = arith.constant 0 : i32
    return %arg0, %c0_i32 : i32, i32
  }
}

module attributes {stable_mosaic.version = 11 : i64} {
  func.func @_gconv_matmul_kernel(%arg0: i32, %arg1: memref<8x1152xbf16, #tpu.memory_space<vmem>>, %arg2: memref<2x576x64xbf16, #tpu.memory_space<vmem>>, %arg3: memref<1x128xf32, #tpu.memory_space<vmem>>, %arg4: memref<8x128xbf16, #tpu.memory_space<vmem>>) attributes {dimension_semantics = [#tpu.dimension_semantics<parallel>], iteration_bounds = array<i64: 1>, scalar_prefetch = 0 : i64, scratch_operands = 0 : i64, tpu.core_type = #tpu.core_type<tc>, window_params = [{transform_indices = @transform_0, window_bounds = array<i64: 8, 1152>}, {pipeline_mode = #tpu.pipeline_mode<synchronous>, transform_indices = @transform_1, window_bounds = array<i64: 2, 576, 64>}, {pipeline_mode = #tpu.pipeline_mode<synchronous>, transform_indices = @transform_2, window_bounds = array<i64: 1, 128>}, {transform_indices = @transform_3, window_bounds = array<i64: 8, 128>}]} {
    %c0 = arith.constant 0 : index
    %c0_0 = arith.constant 0 : index
    %0 = vector.load %arg1[%c0, %c0_0] : memref<8x1152xbf16, #tpu.memory_space<vmem>>, vector<8x576xbf16>
    %c0_1 = arith.constant 0 : index
    %c0_2 = arith.constant 0 : index
    %c0_3 = arith.constant 0 : index
    %1 = vector.load %arg2[%c0_1, %c0_2, %c0_3] : memref<2x576x64xbf16, #tpu.memory_space<vmem>>, vector<1x576x64xbf16>
    %2 = vector.shape_cast %1 : vector<1x576x64xbf16> to vector<576x64xbf16>
    %cst = arith.constant dense<0.000000e+00> : vector<8x64xf32>
    %3 = tpu.matmul %0, %2, %cst {dimension_numbers = #tpu.dot_dimension_numbers<[1], [0], [0], [1], [0, 0, 1, 1], [], []>} : vector<8x576xbf16>, vector<576x64xbf16>, vector<8x64xf32> -> vector<8x64xf32>
    %c0_4 = arith.constant 0 : index
    %c576 = arith.constant 576 : index
    %4 = vector.load %arg1[%c0_4, %c576] : memref<8x1152xbf16, #tpu.memory_space<vmem>>, vector<8x576xbf16>
    %c1 = arith.constant 1 : index
    %c0_5 = arith.constant 0 : index
    %c0_6 = arith.constant 0 : index
    %5 = vector.load %arg2[%c1, %c0_5, %c0_6] : memref<2x576x64xbf16, #tpu.memory_space<vmem>>, vector<1x576x64xbf16>
    %6 = vector.shape_cast %5 : vector<1x576x64xbf16> to vector<576x64xbf16>
    %cst_7 = arith.constant dense<0.000000e+00> : vector<8x64xf32>
    %7 = tpu.matmul %4, %6, %cst_7 {dimension_numbers = #tpu.dot_dimension_numbers<[1], [0], [0], [1], [0, 0, 1, 1], [], []>} : vector<8x576xbf16>, vector<576x64xbf16>, vector<8x64xf32> -> vector<8x64xf32>
    %8 = tpu.concatenate %3, %7 in 1 : vector<8x64xf32>, vector<8x64xf32> -> vector<8x128xf32>
    %c0_8 = arith.constant 0 : index
    %c0_9 = arith.constant 0 : index
    %9 = vector.load %arg3[%c0_8, %c0_9] : memref<1x128xf32, #tpu.memory_space<vmem>>, vector<1x128xf32>
    %10 = vector.broadcast %9 : vector<1x128xf32> to vector<8x128xf32>
    %11 = arith.addf %8, %10 : vector<8x128xf32>
    %cst_10 = arith.constant 0.000000e+00 : f32
    %12 = vector.broadcast %cst_10 : f32 to vector<8x128xf32>
    %13 = arith.maximumf %11, %12 : vector<8x128xf32>
    %14 = arith.truncf %13 : vector<8x128xf32> to vector<8x128xbf16>
    %c0_11 = arith.constant 0 : index
    %c0_12 = arith.constant 0 : index
    %15 = vector.load %arg4[%c0_11, %c0_12] : memref<8x128xbf16, #tpu.memory_space<vmem>>, vector<8x128xbf16>
    tpu.vector_store %arg4[%c0_11, %c0_12], %14 {strides = array<i32>} : memref<8x128xbf16, #tpu.memory_space<vmem>>, vector<8x128xbf16>,
    return
  }
  func.func @transform_0(%arg0: i32) -> (i32, i32) {
    %c0_i32 = arith.constant 0 : i32
    %c0_i32_0 = arith.constant 0 : i32
    return %arg0, %c0_i32 : i32, i32
  }
  func.func @transform_1(%arg0: i32) -> (i32, i32, i32) {
    %c0_i32 = arith.constant 0 : i32
    %c0_i32_0 = arith.constant 0 : i32
    %c0_i32_1 = arith.constant 0 : i32
    %c0_i32_2 = arith.constant 0 : i32
    return %c0_i32, %c0_i32_0, %c0_i32_1 : i32, i32, i32
  }
  func.func @transform_2(%arg0: i32) -> (i32, i32) {
    %c0_i32 = arith.constant 0 : i32
    %c0_i32_0 = arith.constant 0 : i32
    %c0_i32_1 = arith.constant 0 : i32
    return %c0_i32, %c0_i32_0 : i32, i32
  }
  func.func @transform_3(%arg0: i32) -> (i32, i32) {
    %c0_i32 = arith.constant 0 : i32
    %c0_i32_0 = arith.constant 0 : i32
    return %arg0, %c0_i32 : i32, i32
  }
}

module attributes {stable_mosaic.version = 11 : i64} {
  func.func @_gconv_matmul_kernel(%arg0: i32, %arg1: memref<8x128xbf16, #tpu.memory_space<vmem>>, %arg2: memref<1x128x256xbf16, #tpu.memory_space<vmem>>, %arg3: memref<1x256xf32, #tpu.memory_space<vmem>>, %arg4: memref<8x256xbf16, #tpu.memory_space<vmem>>, %arg5: memref<8x256xbf16, #tpu.memory_space<vmem>>) attributes {dimension_semantics = [#tpu.dimension_semantics<parallel>], iteration_bounds = array<i64: 1>, scalar_prefetch = 0 : i64, scratch_operands = 0 : i64, tpu.core_type = #tpu.core_type<tc>, window_params = [{transform_indices = @transform_0, window_bounds = array<i64: 8, 128>}, {pipeline_mode = #tpu.pipeline_mode<synchronous>, transform_indices = @transform_1, window_bounds = array<i64: 1, 128, 256>}, {pipeline_mode = #tpu.pipeline_mode<synchronous>, transform_indices = @transform_2, window_bounds = array<i64: 1, 256>}, {transform_indices = @transform_3, window_bounds = array<i64: 8, 256>}, {transform_indices = @transform_4, window_bounds = array<i64: 8, 256>}]} {
    %c0 = arith.constant 0 : index
    %c0_0 = arith.constant 0 : index
    %0 = vector.load %arg1[%c0, %c0_0] : memref<8x128xbf16, #tpu.memory_space<vmem>>, vector<8x128xbf16>
    %c0_1 = arith.constant 0 : index
    %c0_2 = arith.constant 0 : index
    %c0_3 = arith.constant 0 : index
    %1 = vector.load %arg2[%c0_1, %c0_2, %c0_3] : memref<1x128x256xbf16, #tpu.memory_space<vmem>>, vector<1x128x256xbf16>
    %2 = vector.shape_cast %1 : vector<1x128x256xbf16> to vector<128x256xbf16>
    %cst = arith.constant dense<0.000000e+00> : vector<8x256xf32>
    %3 = tpu.matmul %0, %2, %cst {dimension_numbers = #tpu.dot_dimension_numbers<[1], [0], [0], [1], [0, 0, 1, 1], [], []>} : vector<8x128xbf16>, vector<128x256xbf16>, vector<8x256xf32> -> vector<8x256xf32>
    %c0_4 = arith.constant 0 : index
    %c0_5 = arith.constant 0 : index
    %4 = vector.load %arg3[%c0_4, %c0_5] : memref<1x256xf32, #tpu.memory_space<vmem>>, vector<1x256xf32>
    %5 = vector.broadcast %4 : vector<1x256xf32> to vector<8x256xf32>
    %6 = arith.addf %3, %5 : vector<8x256xf32>
    %c0_6 = arith.constant 0 : index
    %c0_7 = arith.constant 0 : index
    %7 = vector.load %arg4[%c0_6, %c0_7] : memref<8x256xbf16, #tpu.memory_space<vmem>>, vector<8x256xbf16>
    %8 = arith.extf %7 : vector<8x256xbf16> to vector<8x256xf32>
    %9 = arith.addf %6, %8 : vector<8x256xf32>
    %cst_8 = arith.constant 0.000000e+00 : f32
    %10 = vector.broadcast %cst_8 : f32 to vector<8x256xf32>
    %11 = arith.maximumf %9, %10 : vector<8x256xf32>
    %12 = arith.truncf %11 : vector<8x256xf32> to vector<8x256xbf16>
    %c0_9 = arith.constant 0 : index
    %c0_10 = arith.constant 0 : index
    %13 = vector.load %arg5[%c0_9, %c0_10] : memref<8x256xbf16, #tpu.memory_space<vmem>>, vector<8x256xbf16>
    tpu.vector_store %arg5[%c0_9, %c0_10], %12 {strides = array<i32>} : memref<8x256xbf16, #tpu.memory_space<vmem>>, vector<8x256xbf16>,
    return
  }
  func.func @transform_0(%arg0: i32) -> (i32, i32) {
    %c0_i32 = arith.constant 0 : i32
    %c0_i32_0 = arith.constant 0 : i32
    return %arg0, %c0_i32 : i32, i32
  }
  func.func @transform_1(%arg0: i32) -> (i32, i32, i32) {
    %c0_i32 = arith.constant 0 : i32
    %c0_i32_0 = arith.constant 0 : i32
    %c0_i32_1 = arith.constant 0 : i32
    %c0_i32_2 = arith.constant 0 : i32
    return %c0_i32, %c0_i32_0, %c0_i32_1 : i32, i32, i32
  }
  func.func @transform_2(%arg0: i32) -> (i32, i32) {
    %c0_i32 = arith.constant 0 : i32
    %c0_i32_0 = arith.constant 0 : i32
    %c0_i32_1 = arith.constant 0 : i32
    return %c0_i32, %c0_i32_0 : i32, i32
  }
  func.func @transform_3(%arg0: i32) -> (i32, i32) {
    %c0_i32 = arith.constant 0 : i32
    %c0_i32_0 = arith.constant 0 : i32
    return %arg0, %c0_i32 : i32, i32
  }
  func.func @transform_4(%arg0: i32) -> (i32, i32) {
    %c0_i32 = arith.constant 0 : i32
    %c0_i32_0 = arith.constant 0 : i32
    return %arg0, %c0_i32 : i32, i32
  }
}

module attributes {stable_mosaic.version = 11 : i64} {
  func.func @_gconv_matmul_kernel(%arg0: i32, %arg1: memref<8x256xbf16, #tpu.memory_space<vmem>>, %arg2: memref<1x256x256xbf16, #tpu.memory_space<vmem>>, %arg3: memref<1x256xf32, #tpu.memory_space<vmem>>, %arg4: memref<8x256xbf16, #tpu.memory_space<vmem>>) attributes {dimension_semantics = [#tpu.dimension_semantics<parallel>], iteration_bounds = array<i64: 1>, scalar_prefetch = 0 : i64, scratch_operands = 0 : i64, tpu.core_type = #tpu.core_type<tc>, window_params = [{transform_indices = @transform_0, window_bounds = array<i64: 8, 256>}, {pipeline_mode = #tpu.pipeline_mode<synchronous>, transform_indices = @transform_1, window_bounds = array<i64: 1, 256, 256>}, {pipeline_mode = #tpu.pipeline_mode<synchronous>, transform_indices = @transform_2, window_bounds = array<i64: 1, 256>}, {transform_indices = @transform_3, window_bounds = array<i64: 8, 256>}]} {
    %c0 = arith.constant 0 : index
    %c0_0 = arith.constant 0 : index
    %0 = vector.load %arg1[%c0, %c0_0] : memref<8x256xbf16, #tpu.memory_space<vmem>>, vector<8x256xbf16>
    %c0_1 = arith.constant 0 : index
    %c0_2 = arith.constant 0 : index
    %c0_3 = arith.constant 0 : index
    %1 = vector.load %arg2[%c0_1, %c0_2, %c0_3] : memref<1x256x256xbf16, #tpu.memory_space<vmem>>, vector<1x256x256xbf16>
    %2 = vector.shape_cast %1 : vector<1x256x256xbf16> to vector<256x256xbf16>
    %cst = arith.constant dense<0.000000e+00> : vector<8x256xf32>
    %3 = tpu.matmul %0, %2, %cst {dimension_numbers = #tpu.dot_dimension_numbers<[1], [0], [0], [1], [0, 0, 1, 1], [], []>} : vector<8x256xbf16>, vector<256x256xbf16>, vector<8x256xf32> -> vector<8x256xf32>
    %c0_4 = arith.constant 0 : index
    %c0_5 = arith.constant 0 : index
    %4 = vector.load %arg3[%c0_4, %c0_5] : memref<1x256xf32, #tpu.memory_space<vmem>>, vector<1x256xf32>
    %5 = vector.broadcast %4 : vector<1x256xf32> to vector<8x256xf32>
    %6 = arith.addf %3, %5 : vector<8x256xf32>
    %cst_6 = arith.constant 0.000000e+00 : f32
    %7 = vector.broadcast %cst_6 : f32 to vector<8x256xf32>
    %8 = arith.maximumf %6, %7 : vector<8x256xf32>
    %9 = arith.truncf %8 : vector<8x256xf32> to vector<8x256xbf16>
    %c0_7 = arith.constant 0 : index
    %c0_8 = arith.constant 0 : index
    %10 = vector.load %arg4[%c0_7, %c0_8] : memref<8x256xbf16, #tpu.memory_space<vmem>>, vector<8x256xbf16>
    tpu.vector_store %arg4[%c0_7, %c0_8], %9 {strides = array<i32>} : memref<8x256xbf16, #tpu.memory_space<vmem>>, vector<8x256xbf16>,
    return
  }
  func.func @transform_0(%arg0: i32) -> (i32, i32) {
    %c0_i32 = arith.constant 0 : i32
    %c0_i32_0 = arith.constant 0 : i32
    return %arg0, %c0_i32 : i32, i32
  }
  func.func @transform_1(%arg0: i32) -> (i32, i32, i32) {
    %c0_i32 = arith.constant 0 : i32
    %c0_i32_0 = arith.constant 0 : i32
    %c0_i32_1 = arith.constant 0 : i32
    %c0_i32_2 = arith.constant 0 : i32
    return %c0_i32, %c0_i32_0, %c0_i32_1 : i32, i32, i32
  }
  func.func @transform_2(%arg0: i32) -> (i32, i32) {
    %c0_i32 = arith.constant 0 : i32
    %c0_i32_0 = arith.constant 0 : i32
    %c0_i32_1 = arith.constant 0 : i32
    return %c0_i32, %c0_i32_0 : i32, i32
  }
  func.func @transform_3(%arg0: i32) -> (i32, i32) {
    %c0_i32 = arith.constant 0 : i32
    %c0_i32_0 = arith.constant 0 : i32
    return %arg0, %c0_i32 : i32, i32
  }
}

module attributes {stable_mosaic.version = 11 : i64} {
  func.func @_gconv_matmul_kernel(%arg0: i32, %arg1: memref<8x2304xbf16, #tpu.memory_space<vmem>>, %arg2: memref<2x1152x128xbf16, #tpu.memory_space<vmem>>, %arg3: memref<1x256xf32, #tpu.memory_space<vmem>>, %arg4: memref<8x256xbf16, #tpu.memory_space<vmem>>) attributes {dimension_semantics = [#tpu.dimension_semantics<parallel>], iteration_bounds = array<i64: 1>, scalar_prefetch = 0 : i64, scratch_operands = 0 : i64, tpu.core_type = #tpu.core_type<tc>, window_params = [{transform_indices = @transform_0, window_bounds = array<i64: 8, 2304>}, {pipeline_mode = #tpu.pipeline_mode<synchronous>, transform_indices = @transform_1, window_bounds = array<i64: 2, 1152, 128>}, {pipeline_mode = #tpu.pipeline_mode<synchronous>, transform_indices = @transform_2, window_bounds = array<i64: 1, 256>}, {transform_indices = @transform_3, window_bounds = array<i64: 8, 256>}]} {
    %c0 = arith.constant 0 : index
    %c0_0 = arith.constant 0 : index
    %0 = vector.load %arg1[%c0, %c0_0] : memref<8x2304xbf16, #tpu.memory_space<vmem>>, vector<8x1152xbf16>
    %c0_1 = arith.constant 0 : index
    %c0_2 = arith.constant 0 : index
    %c0_3 = arith.constant 0 : index
    %1 = vector.load %arg2[%c0_1, %c0_2, %c0_3] : memref<2x1152x128xbf16, #tpu.memory_space<vmem>>, vector<1x1152x128xbf16>
    %2 = vector.shape_cast %1 : vector<1x1152x128xbf16> to vector<1152x128xbf16>
    %cst = arith.constant dense<0.000000e+00> : vector<8x128xf32>
    %3 = tpu.matmul %0, %2, %cst {dimension_numbers = #tpu.dot_dimension_numbers<[1], [0], [0], [1], [0, 0, 1, 1], [], []>} : vector<8x1152xbf16>, vector<1152x128xbf16>, vector<8x128xf32> -> vector<8x128xf32>
    %c0_4 = arith.constant 0 : index
    %c1152 = arith.constant 1152 : index
    %4 = vector.load %arg1[%c0_4, %c1152] : memref<8x2304xbf16, #tpu.memory_space<vmem>>, vector<8x1152xbf16>
    %c1 = arith.constant 1 : index
    %c0_5 = arith.constant 0 : index
    %c0_6 = arith.constant 0 : index
    %5 = vector.load %arg2[%c1, %c0_5, %c0_6] : memref<2x1152x128xbf16, #tpu.memory_space<vmem>>, vector<1x1152x128xbf16>
    %6 = vector.shape_cast %5 : vector<1x1152x128xbf16> to vector<1152x128xbf16>
    %cst_7 = arith.constant dense<0.000000e+00> : vector<8x128xf32>
    %7 = tpu.matmul %4, %6, %cst_7 {dimension_numbers = #tpu.dot_dimension_numbers<[1], [0], [0], [1], [0, 0, 1, 1], [], []>} : vector<8x1152xbf16>, vector<1152x128xbf16>, vector<8x128xf32> -> vector<8x128xf32>
    %8 = tpu.concatenate %3, %7 in 1 : vector<8x128xf32>, vector<8x128xf32> -> vector<8x256xf32>
    %c0_8 = arith.constant 0 : index
    %c0_9 = arith.constant 0 : index
    %9 = vector.load %arg3[%c0_8, %c0_9] : memref<1x256xf32, #tpu.memory_space<vmem>>, vector<1x256xf32>
    %10 = vector.broadcast %9 : vector<1x256xf32> to vector<8x256xf32>
    %11 = arith.addf %8, %10 : vector<8x256xf32>
    %cst_10 = arith.constant 0.000000e+00 : f32
    %12 = vector.broadcast %cst_10 : f32 to vector<8x256xf32>
    %13 = arith.maximumf %11, %12 : vector<8x256xf32>
    %14 = arith.truncf %13 : vector<8x256xf32> to vector<8x256xbf16>
    %c0_11 = arith.constant 0 : index
    %c0_12 = arith.constant 0 : index
    %15 = vector.load %arg4[%c0_11, %c0_12] : memref<8x256xbf16, #tpu.memory_space<vmem>>, vector<8x256xbf16>
    tpu.vector_store %arg4[%c0_11, %c0_12], %14 {strides = array<i32>} : memref<8x256xbf16, #tpu.memory_space<vmem>>, vector<8x256xbf16>,
    return
  }
  func.func @transform_0(%arg0: i32) -> (i32, i32) {
    %c0_i32 = arith.constant 0 : i32
    %c0_i32_0 = arith.constant 0 : i32
    return %arg0, %c0_i32 : i32, i32
  }
  func.func @transform_1(%arg0: i32) -> (i32, i32, i32) {
    %c0_i32 = arith.constant 0 : i32
    %c0_i32_0 = arith.constant 0 : i32
    %c0_i32_1 = arith.constant 0 : i32
    %c0_i32_2 = arith.constant 0 : i32
    return %c0_i32, %c0_i32_0, %c0_i32_1 : i32, i32, i32
  }
  func.func @transform_2(%arg0: i32) -> (i32, i32) {
    %c0_i32 = arith.constant 0 : i32
    %c0_i32_0 = arith.constant 0 : i32
    %c0_i32_1 = arith.constant 0 : i32
    return %c0_i32, %c0_i32_0 : i32, i32
  }
  func.func @transform_3(%arg0: i32) -> (i32, i32) {
    %c0_i32 = arith.constant 0 : i32
    %c0_i32_0 = arith.constant 0 : i32
    return %arg0, %c0_i32 : i32, i32
  }
}

module attributes {stable_mosaic.version = 11 : i64} {
  func.func @_gconv_matmul_kernel(%arg0: i32, %arg1: memref<8x256xbf16, #tpu.memory_space<vmem>>, %arg2: memref<1x256x512xbf16, #tpu.memory_space<vmem>>, %arg3: memref<1x512xf32, #tpu.memory_space<vmem>>, %arg4: memref<8x512xbf16, #tpu.memory_space<vmem>>) attributes {dimension_semantics = [#tpu.dimension_semantics<parallel>], iteration_bounds = array<i64: 1>, scalar_prefetch = 0 : i64, scratch_operands = 0 : i64, tpu.core_type = #tpu.core_type<tc>, window_params = [{transform_indices = @transform_0, window_bounds = array<i64: 8, 256>}, {pipeline_mode = #tpu.pipeline_mode<synchronous>, transform_indices = @transform_1, window_bounds = array<i64: 1, 256, 512>}, {pipeline_mode = #tpu.pipeline_mode<synchronous>, transform_indices = @transform_2, window_bounds = array<i64: 1, 512>}, {transform_indices = @transform_3, window_bounds = array<i64: 8, 512>}]} {
    %c0 = arith.constant 0 : index
    %c0_0 = arith.constant 0 : index
    %0 = vector.load %arg1[%c0, %c0_0] : memref<8x256xbf16, #tpu.memory_space<vmem>>, vector<8x256xbf16>
    %c0_1 = arith.constant 0 : index
    %c0_2 = arith.constant 0 : index
    %c0_3 = arith.constant 0 : index
    %1 = vector.load %arg2[%c0_1, %c0_2, %c0_3] : memref<1x256x512xbf16, #tpu.memory_space<vmem>>, vector<1x256x512xbf16>
    %2 = vector.shape_cast %1 : vector<1x256x512xbf16> to vector<256x512xbf16>
    %cst = arith.constant dense<0.000000e+00> : vector<8x512xf32>
    %3 = tpu.matmul %0, %2, %cst {dimension_numbers = #tpu.dot_dimension_numbers<[1], [0], [0], [1], [0, 0, 1, 1], [], []>} : vector<8x256xbf16>, vector<256x512xbf16>, vector<8x512xf32> -> vector<8x512xf32>
    %c0_4 = arith.constant 0 : index
    %c0_5 = arith.constant 0 : index
    %4 = vector.load %arg3[%c0_4, %c0_5] : memref<1x512xf32, #tpu.memory_space<vmem>>, vector<1x512xf32>
    %5 = vector.broadcast %4 : vector<1x512xf32> to vector<8x512xf32>
    %6 = arith.addf %3, %5 : vector<8x512xf32>
    %7 = arith.truncf %6 : vector<8x512xf32> to vector<8x512xbf16>
    %c0_6 = arith.constant 0 : index
    %c0_7 = arith.constant 0 : index
    %8 = vector.load %arg4[%c0_6, %c0_7] : memref<8x512xbf16, #tpu.memory_space<vmem>>, vector<8x512xbf16>
    tpu.vector_store %arg4[%c0_6, %c0_7], %7 {strides = array<i32>} : memref<8x512xbf16, #tpu.memory_space<vmem>>, vector<8x512xbf16>,
    return
  }
  func.func @transform_0(%arg0: i32) -> (i32, i32) {
    %c0_i32 = arith.constant 0 : i32
    %c0_i32_0 = arith.constant 0 : i32
    return %arg0, %c0_i32 : i32, i32
  }
  func.func @transform_1(%arg0: i32) -> (i32, i32, i32) {
    %c0_i32 = arith.constant 0 : i32
    %c0_i32_0 = arith.constant 0 : i32
    %c0_i32_1 = arith.constant 0 : i32
    %c0_i32_2 = arith.constant 0 : i32
    return %c0_i32, %c0_i32_0, %c0_i32_1 : i32, i32, i32
  }
  func.func @transform_2(%arg0: i32) -> (i32, i32) {
    %c0_i32 = arith.constant 0 : i32
    %c0_i32_0 = arith.constant 0 : i32
    %c0_i32_1 = arith.constant 0 : i32
    return %c0_i32, %c0_i32_0 : i32, i32
  }
  func.func @transform_3(%arg0: i32) -> (i32, i32) {
    %c0_i32 = arith.constant 0 : i32
    %c0_i32_0 = arith.constant 0 : i32
    return %arg0, %c0_i32 : i32, i32
  }
}

module attributes {stable_mosaic.version = 11 : i64} {
  func.func @_gconv_matmul_kernel(%arg0: i32, %arg1: memref<8x256xbf16, #tpu.memory_space<vmem>>, %arg2: memref<1x256x512xbf16, #tpu.memory_space<vmem>>, %arg3: memref<1x512xf32, #tpu.memory_space<vmem>>, %arg4: memref<8x512xbf16, #tpu.memory_space<vmem>>, %arg5: memref<8x512xbf16, #tpu.memory_space<vmem>>) attributes {dimension_semantics = [#tpu.dimension_semantics<parallel>], iteration_bounds = array<i64: 1>, scalar_prefetch = 0 : i64, scratch_operands = 0 : i64, tpu.core_type = #tpu.core_type<tc>, window_params = [{transform_indices = @transform_0, window_bounds = array<i64: 8, 256>}, {pipeline_mode = #tpu.pipeline_mode<synchronous>, transform_indices = @transform_1, window_bounds = array<i64: 1, 256, 512>}, {pipeline_mode = #tpu.pipeline_mode<synchronous>, transform_indices = @transform_2, window_bounds = array<i64: 1, 512>}, {transform_indices = @transform_3, window_bounds = array<i64: 8, 512>}, {transform_indices = @transform_4, window_bounds = array<i64: 8, 512>}]} {
    %c0 = arith.constant 0 : index
    %c0_0 = arith.constant 0 : index
    %0 = vector.load %arg1[%c0, %c0_0] : memref<8x256xbf16, #tpu.memory_space<vmem>>, vector<8x256xbf16>
    %c0_1 = arith.constant 0 : index
    %c0_2 = arith.constant 0 : index
    %c0_3 = arith.constant 0 : index
    %1 = vector.load %arg2[%c0_1, %c0_2, %c0_3] : memref<1x256x512xbf16, #tpu.memory_space<vmem>>, vector<1x256x512xbf16>
    %2 = vector.shape_cast %1 : vector<1x256x512xbf16> to vector<256x512xbf16>
    %cst = arith.constant dense<0.000000e+00> : vector<8x512xf32>
    %3 = tpu.matmul %0, %2, %cst {dimension_numbers = #tpu.dot_dimension_numbers<[1], [0], [0], [1], [0, 0, 1, 1], [], []>} : vector<8x256xbf16>, vector<256x512xbf16>, vector<8x512xf32> -> vector<8x512xf32>
    %c0_4 = arith.constant 0 : index
    %c0_5 = arith.constant 0 : index
    %4 = vector.load %arg3[%c0_4, %c0_5] : memref<1x512xf32, #tpu.memory_space<vmem>>, vector<1x512xf32>
    %5 = vector.broadcast %4 : vector<1x512xf32> to vector<8x512xf32>
    %6 = arith.addf %3, %5 : vector<8x512xf32>
    %c0_6 = arith.constant 0 : index
    %c0_7 = arith.constant 0 : index
    %7 = vector.load %arg4[%c0_6, %c0_7] : memref<8x512xbf16, #tpu.memory_space<vmem>>, vector<8x512xbf16>
    %8 = arith.extf %7 : vector<8x512xbf16> to vector<8x512xf32>
    %9 = arith.addf %6, %8 : vector<8x512xf32>
    %cst_8 = arith.constant 0.000000e+00 : f32
    %10 = vector.broadcast %cst_8 : f32 to vector<8x512xf32>
    %11 = arith.maximumf %9, %10 : vector<8x512xf32>
    %12 = arith.truncf %11 : vector<8x512xf32> to vector<8x512xbf16>
    %c0_9 = arith.constant 0 : index
    %c0_10 = arith.constant 0 : index
    %13 = vector.load %arg5[%c0_9, %c0_10] : memref<8x512xbf16, #tpu.memory_space<vmem>>, vector<8x512xbf16>
    tpu.vector_store %arg5[%c0_9, %c0_10], %12 {strides = array<i32>} : memref<8x512xbf16, #tpu.memory_space<vmem>>, vector<8x512xbf16>,
    return
  }
  func.func @transform_0(%arg0: i32) -> (i32, i32) {
    %c0_i32 = arith.constant 0 : i32
    %c0_i32_0 = arith.constant 0 : i32
    return %arg0, %c0_i32 : i32, i32
  }
  func.func @transform_1(%arg0: i32) -> (i32, i32, i32) {
    %c0_i32 = arith.constant 0 : i32
    %c0_i32_0 = arith.constant 0 : i32
    %c0_i32_1 = arith.constant 0 : i32
    %c0_i32_2 = arith.constant 0 : i32
    return %c0_i32, %c0_i32_0, %c0_i32_1 : i32, i32, i32
  }
  func.func @transform_2(%arg0: i32) -> (i32, i32) {
    %c0_i32 = arith.constant 0 : i32
    %c0_i32_0 = arith.constant 0 : i32
    %c0_i32_1 = arith.constant 0 : i32
    return %c0_i32, %c0_i32_0 : i32, i32
  }
  func.func @transform_3(%arg0: i32) -> (i32, i32) {
    %c0_i32 = arith.constant 0 : i32
    %c0_i32_0 = arith.constant 0 : i32
    return %arg0, %c0_i32 : i32, i32
  }
  func.func @transform_4(%arg0: i32) -> (i32, i32) {
    %c0_i32 = arith.constant 0 : i32
    %c0_i32_0 = arith.constant 0 : i32
    return %arg0, %c0_i32 : i32, i32
  }
}

module attributes {stable_mosaic.version = 11 : i64} {
  func.func @_avgpool_kernel(%arg0: i32, %arg1: memref<1x1x512xbf16, #tpu.memory_space<vmem>>, %arg2: memref<1x1x512xf32, #tpu.memory_space<vmem>>) attributes {dimension_semantics = [#tpu.dimension_semantics<parallel>], iteration_bounds = array<i64: 2>, scalar_prefetch = 0 : i64, scratch_operands = 0 : i64, tpu.core_type = #tpu.core_type<tc>, window_params = [{transform_indices = @transform_0, window_bounds = array<i64: 1, 1, 512>}, {transform_indices = @transform_1, window_bounds = array<i64: 1, 1, 512>}]} {
    %c0 = arith.constant 0 : index
    %c0_0 = arith.constant 0 : index
    %c0_1 = arith.constant 0 : index
    %0 = vector.load %arg1[%c0, %c0_0, %c0_1] : memref<1x1x512xbf16, #tpu.memory_space<vmem>>, vector<1x1x512xbf16>
    %1 = arith.extf %0 : vector<1x1x512xbf16> to vector<1x1x512xf32>
    %cst = arith.constant dense<0.000000e+00> : vector<1x512xf32>
    %2 = vector.multi_reduction <add>, %1, %cst [1] : vector<1x1x512xf32> to vector<1x512xf32>
    %3 = vector.shape_cast %2 : vector<1x512xf32> to vector<1x1x512xf32>
    %cst_2 = arith.constant 1.000000e+00 : f32
    %4 = vector.broadcast %cst_2 : f32 to vector<1x1x512xf32>
    %5 = arith.divf %3, %4 : vector<1x1x512xf32>
    %c0_3 = arith.constant 0 : index
    %c0_4 = arith.constant 0 : index
    %c0_5 = arith.constant 0 : index
    %6 = vector.load %arg2[%c0_3, %c0_4, %c0_5] : memref<1x1x512xf32, #tpu.memory_space<vmem>>, vector<1x1x512xf32>
    tpu.vector_store %arg2[%c0_3, %c0_4, %c0_5], %5 {strides = array<i32>} : memref<1x1x512xf32, #tpu.memory_space<vmem>>, vector<1x1x512xf32>,
    return
  }
  func.func @transform_0(%arg0: i32) -> (i32, i32, i32) {
    %c0_i32 = arith.constant 0 : i32
    %c0_i32_0 = arith.constant 0 : i32
    %c0_i32_1 = arith.constant 0 : i32
    return %arg0, %c0_i32, %c0_i32_0 : i32, i32, i32
  }
  func.func @transform_1(%arg0: i32) -> (i32, i32, i32) {
    %c0_i32 = arith.constant 0 : i32
    %c0_i32_0 = arith.constant 0 : i32
    %c0_i32_1 = arith.constant 0 : i32
    return %arg0, %c0_i32, %c0_i32_0 : i32, i32, i32
  }
}

module attributes {stable_mosaic.version = 11 : i64} {
  func.func @_gconv_matmul_kernel(%arg0: i32, %arg1: memref<8x512xbf16, #tpu.memory_space<vmem>>, %arg2: memref<1x512x128xbf16, #tpu.memory_space<vmem>>, %arg3: memref<1x128xf32, #tpu.memory_space<vmem>>, %arg4: memref<8x128xf32, #tpu.memory_space<vmem>>) attributes {dimension_semantics = [#tpu.dimension_semantics<parallel>], iteration_bounds = array<i64: 1>, scalar_prefetch = 0 : i64, scratch_operands = 0 : i64, tpu.core_type = #tpu.core_type<tc>, window_params = [{transform_indices = @transform_0, window_bounds = array<i64: 8, 512>}, {pipeline_mode = #tpu.pipeline_mode<synchronous>, transform_indices = @transform_1, window_bounds = array<i64: 1, 512, 128>}, {pipeline_mode = #tpu.pipeline_mode<synchronous>, transform_indices = @transform_2, window_bounds = array<i64: 1, 128>}, {transform_indices = @transform_3, window_bounds = array<i64: 8, 128>}]} {
    %c0 = arith.constant 0 : index
    %c0_0 = arith.constant 0 : index
    %0 = vector.load %arg1[%c0, %c0_0] : memref<8x512xbf16, #tpu.memory_space<vmem>>, vector<8x512xbf16>
    %c0_1 = arith.constant 0 : index
    %c0_2 = arith.constant 0 : index
    %c0_3 = arith.constant 0 : index
    %1 = vector.load %arg2[%c0_1, %c0_2, %c0_3] : memref<1x512x128xbf16, #tpu.memory_space<vmem>>, vector<1x512x128xbf16>
    %2 = vector.shape_cast %1 : vector<1x512x128xbf16> to vector<512x128xbf16>
    %cst = arith.constant dense<0.000000e+00> : vector<8x128xf32>
    %3 = tpu.matmul %0, %2, %cst {dimension_numbers = #tpu.dot_dimension_numbers<[1], [0], [0], [1], [0, 0, 1, 1], [], []>} : vector<8x512xbf16>, vector<512x128xbf16>, vector<8x128xf32> -> vector<8x128xf32>
    %c0_4 = arith.constant 0 : index
    %c0_5 = arith.constant 0 : index
    %4 = vector.load %arg3[%c0_4, %c0_5] : memref<1x128xf32, #tpu.memory_space<vmem>>, vector<1x128xf32>
    %5 = vector.broadcast %4 : vector<1x128xf32> to vector<8x128xf32>
    %6 = arith.addf %3, %5 : vector<8x128xf32>
    %c0_6 = arith.constant 0 : index
    %c0_7 = arith.constant 0 : index
    %7 = vector.load %arg4[%c0_6, %c0_7] : memref<8x128xf32, #tpu.memory_space<vmem>>, vector<8x128xf32>
    tpu.vector_store %arg4[%c0_6, %c0_7], %6 {strides = array<i32>} : memref<8x128xf32, #tpu.memory_space<vmem>>, vector<8x128xf32>,
    return
  }
  func.func @transform_0(%arg0: i32) -> (i32, i32) {
    %c0_i32 = arith.constant 0 : i32
    %c0_i32_0 = arith.constant 0 : i32
    return %arg0, %c0_i32 : i32, i32
  }
  func.func @transform_1(%arg0: i32) -> (i32, i32, i32) {
    %c0_i32 = arith.constant 0 : i32
    %c0_i32_0 = arith.constant 0 : i32
    %c0_i32_1 = arith.constant 0 : i32
    %c0_i32_2 = arith.constant 0 : i32
    return %c0_i32, %c0_i32_0, %c0_i32_1 : i32, i32, i32
  }
  func.func @transform_2(%arg0: i32) -> (i32, i32) {
    %c0_i32 = arith.constant 0 : i32
    %c0_i32_0 = arith.constant 0 : i32
    %c0_i32_1 = arith.constant 0 : i32
    return %c0_i32, %c0_i32_0 : i32, i32
  }
  func.func @transform_3(%arg0: i32) -> (i32, i32) {
    %c0_i32 = arith.constant 0 : i32
    %c0_i32_0 = arith.constant 0 : i32
    return %arg0, %c0_i32 : i32, i32
  }
}

</mosaic_0001>

<bundles_post_ra>
// kernel: resnext_forward.21
= control target key start
LH: loop header
LB: loop body
LE: loop exit
PB: predicated region body
PF: predicated region fallthrough
CT: control target
= control target key end

     0   :  { %s541_s12 = smov 0   ;;  %s602_s0 = inlined_call_operand.vmem [shape: bf16[128,64], index: 0, kind: input, shape index: {}]   ;;  %s603_s1 = inlined_call_operand.vmem [shape: bf16[1,64,32], index: 1, kind: input, shape index: {}]   ;;  %s604_s2 = inlined_call_operand.vmem [shape: f32[1,32], index: 2, kind: input, shape index: {}]   ;;  %s605_s3 = inlined_call_operand.vmem [shape: bf16[128,32], index: 3, kind: output, shape index: {}]  }
   0x1 LB: > { %s425_s13 = sadd.s32 4294967295, %s519_s12   ;;  %p429_p0 = scmp.ge.s32.totalorder %s519_s12, 1  ;;  %s519_s12 = sphi %s541_s12, %s13_s12  }
   0x2   : > { %p138_p1 = scmp.lt.s32.totalorder %s519_s12, 3 }
   0x4   : > { %p139_p2 = pnand %p429_p0, %p138_p1 }
   0x5   : > { %s430_s16 = sshll.u32 (!%p139_p2), %s425_s13, 3 }
   0x6   : > { %142 = sbr.rel (%p139_p2) target bundleno = 235 (0xeb), region = 32  ;;  %p163_p3 = scmp.lt.s32.totalorder (!%p139_p2), %s430_s16, 15 }
   0xb   : > { %v505_v0 = vld [vmem:[%s603_s1 + $0x18] sm:$0xff]   ;;  %v506_v1 = vld [vmem:[%s603_s1 + $0x10] sm:$0xff]   ;;  %s607_s16 = smov (!%p163_p3, %s430_s16), 15  ;;  %v507_v2 = vld [vmem:[%s603_s1 + $0x8] sm:$0xff]   ;;  %vm242_vm0 = vcmask 523264   ;;  %vm360_vm1 = vcmask 257024  }
   0xc   : > { %473 = vmatprep.subr.bf16.mxu0 %v505_v0  ;;  %489 = vmatprep.subr.bf16.mxu1 %v505_v0  ;;  %s431_s21 = sshll.u32 %s607_s16, 2  ;;  %v508_v3 = vld [vmem:[%s603_s1] sm:$0xff]  }
   0xd   : > { %474 = vmatpush3.bf16.msra.mxu0 %v505_v0  ;;  %493 = vmatpush3.bf16.msra.mxu1 %v505_v0  ;;  %s166_s26 = scalar_lea.vmem %s602_s0, %s431_s21  ;;  %v434_v8 = vld [vmem:[%s604_s2] ss:$0 sm:$0xff]  ;;  %s581_s4 = scalar_lea.vmem %s605_s3, %s431_s21 }
   0xe   : > { %475 = vmatprep.subr.bf16.mxu0 %v506_v1  ;;  %490 = vmatprep.subr.bf16.mxu1 %v506_v1  ;;  %v509_v4 = vld [vmem:[%s166_s26] sm:$0xff]   ;;  %v510_v5 = vld [vmem:[%s166_s26 + $0x10] sm:$0xff]   ;;  %v511_v6 = vld [vmem:[%s166_s26 + $0x8] sm:$0xff]  }
   0xf   : > { %481 = vmatprep.mubr.msk.bf16.mxu0 %vm242_vm0, %v509_v4  ;;  %485 = vmatprep.mubr.msk.bf16.mxu1 %vm242_vm0, %v510_v5  ;;  %v512_v7 = vld [vmem:[%s166_s26 + $0x18] sm:$0xff]  }
  0x11   : > { %476 = vmatpush3.bf16.msra.mxu0 %v506_v1  ;;  %494 = vmatpush3.bf16.msra.mxu1 %v506_v1 }
  0x12   : > { %477 = vmatprep.subr.bf16.mxu0 %v507_v2  ;;  %491 = vmatprep.subr.bf16.mxu1 %v507_v2 }
  0x15   : > { %478 = vmatpush3.bf16.msra.mxu0 %v507_v2  ;;  %495 = vmatpush3.bf16.msra.mxu1 %v507_v2 }
  0x16   : > { %479 = vmatprep.subr.bf16.mxu0 %v508_v3  ;;  %492 = vmatprep.subr.bf16.mxu1 %v508_v3 }
  0x19   : > { %480 = vmatpush3.bf16.msra.mxu0 %v508_v3  ;;  %496 = vmatpush3.bf16.msra.mxu1 %v508_v3 }
  0x1c   : > { %482 = vmatmul.mubr.msk.bf16.vlgmr.msra.gmra.mxu0 %vm242_vm0, %v511_v6  ;;  %486 = vmatmul.mubr.msk.bf16.vlgmr.msra.gmra.mxu1 %vm242_vm0, %v512_v7 }
  0xdc   : > { %v483_v9 = vpop.f32.mrf.mxu0  ;;  %v487_v10 = vpop.f32.mrf.mxu1 }
  0xdd   : > { %v298_v11 = vadd.f32 %v483_v9, %v434_v8  ;;  %v314_v12 = vadd.f32 %v487_v10, %v434_v8 }
  0xde   : > { %v289_v13 = vpop.f32.mrf.mxu0  ;;  %v305_v14 = vpop.f32.mrf.mxu1 }
  0xdf   : > { %v322_v15 = vmax.f32 %v298_v11, 0.0  ;;  %v326_v16 = vmax.f32 %v314_v12, 0.0  ;;  %v290_v17 = vadd.f32 %v434_v8, %v289_v13  ;;  %v306_v18 = vadd.f32 %v434_v8, %v305_v14 }
  0xe0   : > { %v484_v19 = vpop.f32.mrf.mxu0  ;;  %v488_v20 = vpop.f32.mrf.mxu1 }
  0xe1   : > { %v459_v21 = vpack.c.bf16 %v322_v15, %v322_v15  ;;  %v463_v22 = vpack.c.bf16 %v326_v16, %v326_v16  ;;  %v320_v23 = vmax.f32 %v290_v17, 0.0  ;;  %v324_v24 = vmax.f32 %v306_v18, 0.0 }
  0xe2   : > { %v301_v25 = vadd.f32 %v484_v19, %v434_v8  ;;  %v317_v26 = vadd.f32 %v488_v20, %v434_v8  ;;  %v292_v27 = vpop.f32.mrf.mxu0  ;;  %v308_v28 = vpop.f32.mrf.mxu1 }
  0xe3   : > { %363 = vst.msk [vmem:[%s581_s4 + $0x8] sm:$0xf] %vm360_vm1, %v459_v21  ;;  %367 = vst.msk [vmem:[%s581_s4 + $0x18] sm:$0xf] %vm360_vm1, %v463_v22  ;;  %v457_v29 = vpack.c.bf16 %v320_v23, %v320_v23  ;;  %v461_v30 = vpack.c.bf16 %v324_v24, %v324_v24  ;;  %v293_v31 = vadd.f32 %v434_v8, %v292_v27 }
  0xe4   : > { %v309_v32 = vadd.f32 %v434_v8, %v308_v28  ;;  %v323_v33 = vmax.f32 %v301_v25, 0.0  ;;  %v327_v34 = vmax.f32 %v317_v26, 0.0 }
  0xe5   : > { %361 = vst.msk [vmem:[%s581_s4] sm:$0xf] %vm360_vm1, %v457_v29  ;;  %365 = vst.msk [vmem:[%s581_s4 + $0x10] sm:$0xf] %vm360_vm1, %v461_v30  ;;  %v321_v35 = vmax.f32 %v293_v31, 0.0 }
  0xe6   : > { %v325_v36 = vmax.f32 %v309_v32, 0.0  ;;  %v460_v37 = vpack.c.bf16 %v323_v33, %v323_v33  ;;  %v464_v38 = vpack.c.bf16 %v327_v34, %v327_v34 }
  0xe7   : > { %v458_v39 = vpack.c.bf16 %v321_v35, %v321_v35 }
  0xe8   : > { %v462_v40 = vpack.c.bf16 %v325_v36, %v325_v36  ;;  %364 = vst.msk [vmem:[%s581_s4 + $0xc] sm:$0xf] %vm360_vm1, %v460_v37  ;;  %368 = vst.msk [vmem:[%s581_s4 + $0x1c] sm:$0xf] %vm360_vm1, %v464_v38 }
  0xe9   : > { %362 = vst.msk [vmem:[%s581_s4 + $0x4] sm:$0xf] %vm360_vm1, %v458_v39 }
  0xea   : > { %366 = vst.msk [vmem:[%s581_s4 + $0x14] sm:$0xf] %vm360_vm1, %v462_v40 }
  0xeb PF: > { %s13_s12 = sadd.s32 1, %s519_s12  }
  0xec   : > { %p10_p4 = scmp.ge.s32.totalorder %s13_s12, 4  }
  0xee   :  { %12 = sbr.rel (!%p10_p4) target bundleno = 1 (0x1), region = 62 }

// kernel: resnext_forward.20
= control target key start
LH: loop header
LB: loop body
LE: loop exit
PB: predicated region body
PF: predicated region fallthrough
CT: control target
= control target key end

     0   :  { %s944_s6 = smov 0   ;;  %s946_s7 = smov 0   ;;  %s1241_s0 = inlined_call_operand.vmem [shape: bf16[9,128,64], index: 0, kind: input, shape index: {}]   ;;  %s1242_s1 = inlined_call_operand.vmem [shape: bf16[128,64], index: 1, kind: output, shape index: {}]  }
   0x1   :  { %s948_s8 = smov 0  }
   0x2 LB: > { %s872_s9 = sadd.s32 4294967295, %s932_s8   ;;  %s961_s10 = sadd.s32 1, %s932_s8   ;;  %s932_s8 = sphi %s948_s8, %s1245_s8   ;;  %s928_s7 = sphi %s946_s7, %s1244_s7   ;;  %s924_s6 = sphi %s944_s6, %s1243_s6  }
   0x3   : > { %s15_s11 = ssub.s32 %s932_s8, %s961_s10  ;;  %s18_s12 = sadd.s32 1, %s928_s7 }
   0x4   : > { %p16_p0 = scmp.eq.s32.totalorder %s15_s11, 0  ;;  %p25_p1 = scmp.ne.s32.totalorder %s928_s7, %s924_s6 }
   0x5   : > { %p26_p2 = scmp.eq.s32.totalorder %s932_s8, 0  ;;  %p875_p4 = scmp.ge.s32.totalorder %s932_s8, 2 }
   0x6   : > { %s970_s13 = scalar_select %p16_p0, %s928_s7, %s18_s12  }
   0x7   : > { %p27_p3 = por %p26_p2, %p25_p1  ;;  %77 = sbr.rel (%p875_p4) target bundleno = 35 (0x23), region = 16 }
   0xc   : > { %80 = sbr.rel (!%p27_p3) target bundleno = 35 (0x23), region = 20  ;;  %s82_s14 = sand.u32 (%p27_p3), 1, %s928_s7  }
   0xd   : > { %s883_s15 = sshll.u32 (%p27_p3), %s932_s8, 5  ;;  %s884_s16 = smul.u32 (%p27_p3), 288, %s82_s14 }
   0xe   : > { %s978_s19 = scalar_lea.vmem (%p27_p3), %s1241_s0, %s883_s15 }
   0xf   : > { %v104_v0 = vld [vmem:[%s978_s19] sm:$0xff] (%p27_p3)   ;;  %v108_v1 = vld [vmem:[%s978_s19 + $0x8] sm:$0xff] (%p27_p3)   ;;  %v112_v2 = vld [vmem:[%s978_s19 + $0x10] sm:$0xff] (%p27_p3)   ;;  %s986_s20 = scalar_lea.vmem (%p27_p3), [#allocation2], %s884_s16 }
  0x10   : > { %v116_v3 = vld [vmem:[%s978_s19 + $0x18] sm:$0xff] (%p27_p3)   ;;  %v120_v4 = vld [vmem:[%s978_s19 + $0x40] sm:$0xff] (%p27_p3)   ;;  %v124_v5 = vld [vmem:[%s978_s19 + $0x48] sm:$0xff] (%p27_p3)   ;;  %105 = vst [vmem:[%s986_s20] sm:$0xff] (%p27_p3), %v104_v0  }
  0x11   : > { %109 = vst [vmem:[%s986_s20 + $0x8] sm:$0xff] %v108_v1   ;;  %113 = vst [vmem:[%s986_s20 + $0x10] sm:$0xff] %v112_v2   ;;  %v128_v6 = vld [vmem:[%s978_s19 + $0x50] sm:$0xff]   ;;  %v132_v7 = vld [vmem:[%s978_s19 + $0x58] sm:$0xff]  }
  0x12   : > { %117 = vst [vmem:[%s986_s20 + $0x18] sm:$0xff] %v116_v3   ;;  %121 = vst [vmem:[%s986_s20 + $0x20] sm:$0xff] %v120_v4   ;;  %v136_v8 = vld [vmem:[%s978_s19 + $0x80] sm:$0xff]   ;;  %v140_v9 = vld [vmem:[%s978_s19 + $0x88] sm:$0xff]  }
  0x13   : > { %125 = vst [vmem:[%s986_s20 + $0x28] sm:$0xff] %v124_v5   ;;  %129 = vst [vmem:[%s986_s20 + $0x30] sm:$0xff] %v128_v6   ;;  %v144_v10 = vld [vmem:[%s978_s19 + $0x90] sm:$0xff]   ;;  %v148_v11 = vld [vmem:[%s978_s19 + $0x98] sm:$0xff]  }
  0x14   : > { %133 = vst [vmem:[%s986_s20 + $0x38] sm:$0xff] %v132_v7   ;;  %137 = vst [vmem:[%s986_s20 + $0x40] sm:$0xff] %v136_v8   ;;  %v152_v12 = vld [vmem:[%s978_s19 + $0xc0] sm:$0xff]   ;;  %v156_v13 = vld [vmem:[%s978_s19 + $0xc8] sm:$0xff]  }
  0x15   : > { %141 = vst [vmem:[%s986_s20 + $0x48] sm:$0xff] %v140_v9   ;;  %145 = vst [vmem:[%s986_s20 + $0x50] sm:$0xff] %v144_v10   ;;  %v160_v14 = vld [vmem:[%s978_s19 + $0xd0] sm:$0xff]   ;;  %v164_v15 = vld [vmem:[%s978_s19 + $0xd8] sm:$0xff]  }
  0x16   : > { %149 = vst [vmem:[%s986_s20 + $0x58] sm:$0xff] %v148_v11   ;;  %153 = vst [vmem:[%s986_s20 + $0x60] sm:$0xff] %v152_v12   ;;  %v168_v16 = vld [vmem:[%s978_s19 + $0x100] sm:$0xff]   ;;  %v172_v17 = vld [vmem:[%s978_s19 + $0x108] sm:$0xff]  }
  0x17   : > { %157 = vst [vmem:[%s986_s20 + $0x68] sm:$0xff] %v156_v13   ;;  %161 = vst [vmem:[%s986_s20 + $0x70] sm:$0xff] %v160_v14   ;;  %v176_v18 = vld [vmem:[%s978_s19 + $0x110] sm:$0xff]   ;;  %v180_v19 = vld [vmem:[%s978_s19 + $0x118] sm:$0xff]  }
  0x18   : > { %165 = vst [vmem:[%s986_s20 + $0x78] sm:$0xff] %v164_v15   ;;  %169 = vst [vmem:[%s986_s20 + $0x80] sm:$0xff] %v168_v16   ;;  %v184_v20 = vld [vmem:[%s978_s19 + $0x140] sm:$0xff]   ;;  %v188_v21 = vld [vmem:[%s978_s19 + $0x148] sm:$0xff]  }
  0x19   : > { %173 = vst [vmem:[%s986_s20 + $0x88] sm:$0xff] %v172_v17   ;;  %177 = vst [vmem:[%s986_s20 + $0x90] sm:$0xff] %v176_v18   ;;  %v192_v22 = vld [vmem:[%s978_s19 + $0x150] sm:$0xff]   ;;  %v196_v23 = vld [vmem:[%s978_s19 + $0x158] sm:$0xff]  }
  0x1a   : > { %181 = vst [vmem:[%s986_s20 + $0x98] sm:$0xff] %v180_v19   ;;  %185 = vst [vmem:[%s986_s20 + $0xa0] sm:$0xff] %v184_v20   ;;  %v200_v24 = vld [vmem:[%s978_s19 + $0x180] sm:$0xff]   ;;  %v204_v25 = vld [vmem:[%s978_s19 + $0x188] sm:$0xff]  }
  0x1b   : > { %189 = vst [vmem:[%s986_s20 + $0xa8] sm:$0xff] %v188_v21   ;;  %193 = vst [vmem:[%s986_s20 + $0xb0] sm:$0xff] %v192_v22   ;;  %v208_v26 = vld [vmem:[%s978_s19 + $0x190] sm:$0xff]   ;;  %v212_v27 = vld [vmem:[%s978_s19 + $0x198] sm:$0xff]  }
  0x1c   : > { %197 = vst [vmem:[%s986_s20 + $0xb8] sm:$0xff] %v196_v23   ;;  %201 = vst [vmem:[%s986_s20 + $0xc0] sm:$0xff] %v200_v24   ;;  %v216_v28 = vld [vmem:[%s978_s19 + $0x1c0] sm:$0xff]   ;;  %v220_v29 = vld [vmem:[%s978_s19 + $0x1c8] sm:$0xff]  }
  0x1d   : > { %205 = vst [vmem:[%s986_s20 + $0xc8] sm:$0xff] %v204_v25   ;;  %209 = vst [vmem:[%s986_s20 + $0xd0] sm:$0xff] %v208_v26   ;;  %v224_v30 = vld [vmem:[%s978_s19 + $0x1d0] sm:$0xff]   ;;  %v228_v31 = vld [vmem:[%s978_s19 + $0x1d8] sm:$0xff]  }
  0x1e   : > { %213 = vst [vmem:[%s986_s20 + $0xd8] sm:$0xff] %v212_v27   ;;  %217 = vst [vmem:[%s986_s20 + $0xe0] sm:$0xff] %v216_v28   ;;  %v232_v32 = vld [vmem:[%s978_s19 + $0x200] sm:$0xff]   ;;  %v236_v33 = vld [vmem:[%s978_s19 + $0x208] sm:$0xff]  }
  0x1f   : > { %221 = vst [vmem:[%s986_s20 + $0xe8] sm:$0xff] %v220_v29   ;;  %225 = vst [vmem:[%s986_s20 + $0xf0] sm:$0xff] %v224_v30   ;;  %v240_v34 = vld [vmem:[%s978_s19 + $0x210] sm:$0xff]   ;;  %v244_v35 = vld [vmem:[%s978_s19 + $0x218] sm:$0xff]  }
  0x20   : > { %229 = vst [vmem:[%s986_s20 + $0xf8] sm:$0xff] %v228_v31   ;;  %233 = vst [vmem:[%s986_s20 + $0x100] sm:$0xff] %v232_v32  }
  0x21   : > { %237 = vst [vmem:[%s986_s20 + $0x108] sm:$0xff] %v236_v33   ;;  %241 = vst [vmem:[%s986_s20 + $0x110] sm:$0xff] %v240_v34  }
  0x22   : > { %245 = vst [vmem:[%s986_s20 + $0x118] sm:$0xff] %v244_v35  }
  0x23 PF: > { %p878_p5 = scmp.ge.s32.totalorder %s932_s8, 1  ;;  %p414_p6 = scmp.lt.s32.totalorder %s932_s8, 3 }
  0x25   : > { %p415_p7 = pnand %p878_p5, %p414_p6 }
  0x26   : > { %s421_s21 = sand.u32 (!%p415_p7), 1, %s924_s6   ;;  %s879_s23 = sshll.u32 (!%p415_p7), %s872_s9, 3 }
  0x27   : > { %418 = sbr.rel (%p415_p7) target bundleno = 106 (0x6a), region = 61  ;;  %p442_p8 = scmp.lt.s32.totalorder (!%p415_p7), %s879_s23, 15 }
  0x28   : > { %s885_s22 = smul.u32 (!%p415_p7), 288, %s421_s21 }
  0x2a   : > { %s1059_s24 = scalar_lea.vmem (!%p415_p7), [#allocation2], %s885_s22 }
  0x2c   : > { %v448_v36 = vld [vmem:[%s1059_s24] sm:$0xf]  ;;  %vm520_vm0 = vcmask 519168   ;;  %s1247_s23 = smov (!%p442_p8, %s879_s23), 15  ;;  %v449_v46 = vld [vmem:[%s1059_s24 + $0x4] sm:$0xf] }
  0x2d   : > { %v456_v37 = vld [vmem:[%s1059_s24 + $0x20] sm:$0xf]  ;;  %v523_v40 = vsel %vm520_vm0, %v448_v36, 4286644096  ;;  %v457_v49 = vld [vmem:[%s1059_s24 + $0x24] sm:$0xf] }
  0x2e   : > { %v464_v38 = vld [vmem:[%s1059_s24 + $0x40] sm:$0xf]  ;;  %v526_v41 = vsel %vm520_vm0, %v456_v37, 4286644096  ;;  %v465_v50 = vld [vmem:[%s1059_s24 + $0x44] sm:$0xf] }
  0x2f   : > { %v472_v39 = vld [vmem:[%s1059_s24 + $0x60] sm:$0xf]  ;;  %v530_v42 = vsel %vm520_vm0, %v464_v38, 4286644096  ;;  %v528_v44 = vmax.bf16 %v526_v41, %v523_v40  ;;  %s880_s25 = sshll.u32 %s1247_s23, 2 }
  0x30   : > { %v480_v43 = vld [vmem:[%s1059_s24 + $0x80] sm:$0xf]  ;;  %v534_v45 = vsel %vm520_vm0, %v472_v39, 4286644096  ;;  %v473_v54 = vld [vmem:[%s1059_s24 + $0x64] sm:$0xf]  ;;  %s1110_s28 = scalar_lea.vmem %s1242_s1, %s880_s25 }
  0x31   : > { %v488_v47 = vld [vmem:[%s1059_s24 + $0xa0] sm:$0xf]  ;;  %v532_v48 = vmax.bf16 %v530_v42, %v528_v44  ;;  %v538_v51 = vsel %vm520_vm0, %v480_v43, 4286644096  ;;  %v558_v55 = vsel %vm520_vm0, %v449_v46, 4286644096 }
  0x32   : > { %v496_v52 = vld [vmem:[%s1059_s24 + $0xc0] sm:$0xf]  ;;  %v542_v56 = vsel %vm520_vm0, %v488_v47, 4286644096  ;;  %v561_v57 = vsel %vm520_vm0, %v457_v49, 4286644096 }
  0x33   : > { %v536_v53 = vmax.bf16 %v534_v45, %v532_v48  ;;  %v565_v58 = vsel %vm520_vm0, %v465_v50, 4286644096  ;;  %v504_v59 = vld [vmem:[%s1059_s24 + $0xe0] sm:$0xf]  ;;  %v481_v62 = vld [vmem:[%s1059_s24 + $0x84] sm:$0xf]  ;;  %v563_v63 = vmax.bf16 %v561_v57, %v558_v55 }
  0x34   : > { %v512_v60 = vld [vmem:[%s1059_s24 + $0x100] sm:$0xf]  ;;  %v546_v0 = vsel %vm520_vm0, %v496_v52, 4286644096  ;;  %v569_v1 = vsel %vm520_vm0, %v473_v54, 4286644096 }
  0x35   : > { %v540_v61 = vmax.bf16 %v538_v51, %v536_v53  ;;  %v450_v2 = vld [vmem:[%s1059_s24 + $0x8] sm:$0xf]  ;;  %v489_v4 = vld [vmem:[%s1059_s24 + $0xa4] sm:$0xf]  ;;  %v567_v5 = vmax.bf16 %v565_v58, %v563_v63  ;;  %v550_v8 = vsel %vm520_vm0, %v504_v59, 4286644096 }
  0x36   : > { %v458_v6 = vld [vmem:[%s1059_s24 + $0x28] sm:$0xf]  ;;  %v554_v9 = vsel %vm520_vm0, %v512_v60, 4286644096  ;;  %v573_v10 = vsel %vm520_vm0, %v481_v62, 4286644096 }
  0x37   : > { %v544_v3 = vmax.bf16 %v542_v56, %v540_v61  ;;  %v466_v7 = vld [vmem:[%s1059_s24 + $0x48] sm:$0xf]  ;;  %v497_v12 = vld [vmem:[%s1059_s24 + $0xc4] sm:$0xf]  ;;  %v571_v13 = vmax.bf16 %v569_v1, %v567_v5  ;;  %v593_v15 = vsel %vm520_vm0, %v450_v2, 4286644096 }
  0x38   : > { %v474_v14 = vld [vmem:[%s1059_s24 + $0x68] sm:$0xf]  ;;  %v577_v16 = vsel %vm520_vm0, %v489_v4, 4286644096  ;;  %v596_v17 = vsel %vm520_vm0, %v458_v6, 4286644096 }
  0x39   : > { %v548_v11 = vmax.bf16 %v546_v0, %v544_v3  ;;  %v600_v18 = vsel %vm520_vm0, %v466_v7, 4286644096  ;;  %v505_v20 = vld [vmem:[%s1059_s24 + $0xe4] sm:$0xf]  ;;  %v575_v22 = vmax.bf16 %v573_v10, %v571_v13  ;;  %v482_v23 = vld [vmem:[%s1059_s24 + $0x88] sm:$0xf]  ;;  %v598_v24 = vmax.bf16 %v596_v17, %v593_v15 }
  0x3a   : > { %v513_v21 = vld [vmem:[%s1059_s24 + $0x104] sm:$0xf]  ;;  %v581_v25 = vsel %vm520_vm0, %v497_v12, 4286644096  ;;  %v604_v26 = vsel %vm520_vm0, %v474_v14, 4286644096 }
  0x3b   : > { %v552_v19 = vmax.bf16 %v550_v8, %v548_v11  ;;  %v451_v27 = vld [vmem:[%s1059_s24 + $0xc] sm:$0xf]  ;;  %v579_v29 = vmax.bf16 %v577_v16, %v575_v22  ;;  %v490_v30 = vld [vmem:[%s1059_s24 + $0xa8] sm:$0xf]  ;;  %v602_v31 = vmax.bf16 %v600_v18, %v598_v24  ;;  %v585_v34 = vsel %vm520_vm0, %v505_v20, 4286644096 }
  0x3c   : > { %v459_v32 = vld [vmem:[%s1059_s24 + $0x2c] sm:$0xf]  ;;  %v589_v35 = vsel %vm520_vm0, %v513_v21, 4286644096  ;;  %v608_v36 = vsel %vm520_vm0, %v482_v23, 4286644096 }
  0x3d   : > { %v556_v28 = vmax.bf16 %v554_v9, %v552_v19  ;;  %v467_v33 = vld [vmem:[%s1059_s24 + $0x4c] sm:$0xf]  ;;  %v583_v37 = vmax.bf16 %v581_v25, %v579_v29  ;;  %v498_v38 = vld [vmem:[%s1059_s24 + $0xc8] sm:$0xf]  ;;  %v606_v39 = vmax.bf16 %v604_v26, %v602_v31  ;;  %v628_v41 = vsel %vm520_vm0, %v451_v27, 4286644096 }
  0x3e   : > { %v475_v40 = vld [vmem:[%s1059_s24 + $0x6c] sm:$0xf]  ;;  %v612_v42 = vsel %vm520_vm0, %v490_v30, 4286644096  ;;  %v631_v43 = vsel %vm520_vm0, %v459_v32, 4286644096 }
  0x3f   : > { %802 = vst.msk [vmem:[%s1110_s28] sm:$0xf] %vm520_vm0, %v556_v28  ;;  %v635_v44 = vsel %vm520_vm0, %v467_v33, 4286644096  ;;  %v587_v45 = vmax.bf16 %v585_v34, %v583_v37  ;;  %v506_v46 = vld [vmem:[%s1059_s24 + $0xe8] sm:$0xf]  ;;  %v610_v48 = vmax.bf16 %v608_v36, %v606_v39  ;;  %v633_v50 = vmax.bf16 %v631_v43, %v628_v41 }
  0x40   : > { %v514_v47 = vld [vmem:[%s1059_s24 + $0x108] sm:$0xf]  ;;  %v483_v49 = vld [vmem:[%s1059_s24 + $0x8c] sm:$0xf]  ;;  %v616_v51 = vsel %vm520_vm0, %v498_v38, 4286644096 }
  0x41   : > { %v639_v52 = vsel %vm520_vm0, %v475_v40, 4286644096  ;;  %v452_v53 = vld [vmem:[%s1059_s24 + $0x10] sm:$0xf]  ;;  %v591_v54 = vmax.bf16 %v589_v35, %v587_v45  ;;  %v614_v55 = vmax.bf16 %v612_v42, %v610_v48  ;;  %v491_v56 = vld [vmem:[%s1059_s24 + $0xac] sm:$0xf]  ;;  %v637_v57 = vmax.bf16 %v635_v44, %v633_v50 }
  0x42   : > { %v460_v58 = vld [vmem:[%s1059_s24 + $0x30] sm:$0xf]  ;;  %v620_v60 = vsel %vm520_vm0, %v506_v46, 4286644096  ;;  %v624_v61 = vsel %vm520_vm0, %v514_v47, 4286644096 }
  0x43   : > { %v468_v59 = vld [vmem:[%s1059_s24 + $0x50] sm:$0xf]  ;;  %v643_v62 = vsel %vm520_vm0, %v483_v49, 4286644096  ;;  %803 = vst.msk [vmem:[%s1110_s28 + $0x4] sm:$0xf] %vm520_vm0, %v591_v54  ;;  %v618_v63 = vmax.bf16 %v616_v51, %v614_v55  ;;  %v641_v1 = vmax.bf16 %v639_v52, %v637_v57 }
  0x44   : > { %v499_v0 = vld [vmem:[%s1059_s24 + $0xcc] sm:$0xf]  ;;  %v476_v2 = vld [vmem:[%s1059_s24 + $0x70] sm:$0xf]  ;;  %v663_v3 = vsel %vm520_vm0, %v452_v53, 4286644096 }
  0x45   : > { %v647_v4 = vsel %vm520_vm0, %v491_v56, 4286644096  ;;  %v666_v5 = vsel %vm520_vm0, %v460_v58, 4286644096  ;;  %v670_v6 = vsel %vm520_vm0, %v468_v59, 4286644096  ;;  %v622_v7 = vmax.bf16 %v620_v60, %v618_v63 }
  0x46   : > { %v507_v8 = vld [vmem:[%s1059_s24 + $0xec] sm:$0xf]  ;;  %v645_v10 = vmax.bf16 %v643_v62, %v641_v1  ;;  %v484_v11 = vld [vmem:[%s1059_s24 + $0x90] sm:$0xf]  ;;  %v668_v12 = vmax.bf16 %v666_v5, %v663_v3  ;;  %v651_v13 = vsel %vm520_vm0, %v499_v0, 4286644096 }
  0x47   : > { %v515_v9 = vld [vmem:[%s1059_s24 + $0x10c] sm:$0xf]  ;;  %v674_v14 = vsel %vm520_vm0, %v476_v2, 4286644096  ;;  %v453_v15 = vld [vmem:[%s1059_s24 + $0x14] sm:$0xf]  ;;  %v626_v16 = vmax.bf16 %v624_v61, %v622_v7 }
  0x48   : > { %v649_v17 = vmax.bf16 %v647_v4, %v645_v10  ;;  %v492_v18 = vld [vmem:[%s1059_s24 + $0xb0] sm:$0xf]  ;;  %v672_v19 = vmax.bf16 %v670_v6, %v668_v12  ;;  %v461_v20 = vld [vmem:[%s1059_s24 + $0x34] sm:$0xf]  ;;  %v655_v22 = vsel %vm520_vm0, %v507_v8, 4286644096 }
  0x49   : > { %v469_v21 = vld [vmem:[%s1059_s24 + $0x54] sm:$0xf]  ;;  %v659_v23 = vsel %vm520_vm0, %v515_v9, 4286644096  ;;  %v678_v24 = vsel %vm520_vm0, %v484_v11, 4286644096 }
  0x4a   : > { %804 = vst.msk [vmem:[%s1110_s28 + $0x8] sm:$0xf] %vm520_vm0, %v626_v16  ;;  %v653_v25 = vmax.bf16 %v651_v13, %v649_v17  ;;  %v500_v26 = vld [vmem:[%s1059_s24 + $0xd0] sm:$0xf]  ;;  %v676_v27 = vmax.bf16 %v674_v14, %v672_v19  ;;  %v477_v28 = vld [vmem:[%s1059_s24 + $0x74] sm:$0xf] }
  0x4b   : > { %v698_v29 = vsel %vm520_vm0, %v453_v15, 4286644096  ;;  %v682_v30 = vsel %vm520_vm0, %v492_v18, 4286644096  ;;  %v701_v31 = vsel %vm520_vm0, %v461_v20, 4286644096 }
  0x4c   : > { %v705_v32 = vsel %vm520_vm0, %v469_v21, 4286644096  ;;  %v657_v33 = vmax.bf16 %v655_v22, %v653_v25  ;;  %v508_v34 = vld [vmem:[%s1059_s24 + $0xf0] sm:$0xf]  ;;  %v680_v36 = vmax.bf16 %v678_v24, %v676_v27  ;;  %v485_v37 = vld [vmem:[%s1059_s24 + $0x94] sm:$0xf]  ;;  %v703_v38 = vmax.bf16 %v701_v31, %v698_v29 }
  0x4d   : > { %v516_v35 = vld [vmem:[%s1059_s24 + $0x110] sm:$0xf]  ;;  %v686_v39 = vsel %vm520_vm0, %v500_v26, 4286644096  ;;  %v709_v40 = vsel %vm520_vm0, %v477_v28, 4286644096 }
  0x4e   : > { %v454_v41 = vld [vmem:[%s1059_s24 + $0x18] sm:$0xf]  ;;  %v661_v42 = vmax.bf16 %v659_v23, %v657_v33  ;;  %v684_v43 = vmax.bf16 %v682_v30, %v680_v36  ;;  %v493_v44 = vld [vmem:[%s1059_s24 + $0xb4] sm:$0xf]  ;;  %v707_v45 = vmax.bf16 %v705_v32, %v703_v38  ;;  %v690_v48 = vsel %vm520_vm0, %v508_v34, 4286644096 }
  0x4f   : > { %v462_v46 = vld [vmem:[%s1059_s24 + $0x38] sm:$0xf]  ;;  %v694_v49 = vsel %vm520_vm0, %v516_v35, 4286644096  ;;  %v713_v50 = vsel %vm520_vm0, %v485_v37, 4286644096 }
  0x50   : > { %v470_v47 = vld [vmem:[%s1059_s24 + $0x58] sm:$0xf]  ;;  %805 = vst.msk [vmem:[%s1110_s28 + $0xc] sm:$0xf] %vm520_vm0, %v661_v42  ;;  %v688_v51 = vmax.bf16 %v686_v39, %v684_v43  ;;  %v501_v52 = vld [vmem:[%s1059_s24 + $0xd4] sm:$0xf]  ;;  %v711_v53 = vmax.bf16 %v709_v40, %v707_v45 }
  0x51   : > { %v478_v54 = vld [vmem:[%s1059_s24 + $0x78] sm:$0xf]  ;;  %v733_v55 = vsel %vm520_vm0, %v454_v41, 4286644096  ;;  %v717_v56 = vsel %vm520_vm0, %v493_v44, 4286644096 }
  0x52   : > { %v736_v57 = vsel %vm520_vm0, %v462_v46, 4286644096  ;;  %v740_v58 = vsel %vm520_vm0, %v470_v47, 4286644096  ;;  %v692_v59 = vmax.bf16 %v690_v48, %v688_v51  ;;  %v509_v60 = vld [vmem:[%s1059_s24 + $0xf4] sm:$0xf]  ;;  %v715_v62 = vmax.bf16 %v713_v50, %v711_v53 }
  0x53   : > { %v517_v61 = vld [vmem:[%s1059_s24 + $0x114] sm:$0xf]  ;;  %v486_v63 = vld [vmem:[%s1059_s24 + $0x98] sm:$0xf]  ;;  %v738_v0 = vmax.bf16 %v736_v57, %v733_v55  ;;  %v721_v1 = vsel %vm520_vm0, %v501_v52, 4286644096 }
  0x54   : > { %v744_v2 = vsel %vm520_vm0, %v478_v54, 4286644096  ;;  %v455_v3 = vld [vmem:[%s1059_s24 + $0x1c] sm:$0xf]  ;;  %v696_v4 = vmax.bf16 %v694_v49, %v692_v59  ;;  %v719_v5 = vmax.bf16 %v717_v56, %v715_v62  ;;  %v494_v6 = vld [vmem:[%s1059_s24 + $0xb8] sm:$0xf] }
  0x55   : > { %v742_v7 = vmax.bf16 %v740_v58, %v738_v0  ;;  %v463_v8 = vld [vmem:[%s1059_s24 + $0x3c] sm:$0xf]  ;;  %v725_v10 = vsel %vm520_vm0, %v509_v60, 4286644096  ;;  %v729_v11 = vsel %vm520_vm0, %v517_v61, 4286644096 }
  0x56   : > { %v471_v9 = vld [vmem:[%s1059_s24 + $0x5c] sm:$0xf]  ;;  %v748_v12 = vsel %vm520_vm0, %v486_v63, 4286644096  ;;  %806 = vst.msk [vmem:[%s1110_s28 + $0x10] sm:$0xf] %vm520_vm0, %v696_v4  ;;  %v723_v13 = vmax.bf16 %v721_v1, %v719_v5 }
  0x57   : > { %v502_v14 = vld [vmem:[%s1059_s24 + $0xd8] sm:$0xf]  ;;  %v746_v15 = vmax.bf16 %v744_v2, %v742_v7  ;;  %v479_v16 = vld [vmem:[%s1059_s24 + $0x7c] sm:$0xf]  ;;  %v768_v17 = vsel %vm520_vm0, %v455_v3, 4286644096 }
  0x58   : > { %v752_v18 = vsel %vm520_vm0, %v494_v6, 4286644096  ;;  %v771_v19 = vsel %vm520_vm0, %v463_v8, 4286644096  ;;  %v775_v20 = vsel %vm520_vm0, %v471_v9, 4286644096  ;;  %v727_v21 = vmax.bf16 %v725_v10, %v723_v13 }
  0x59   : > { %v510_v22 = vld [vmem:[%s1059_s24 + $0xf8] sm:$0xf]  ;;  %v750_v23 = vmax.bf16 %v748_v12, %v746_v15  ;;  %v487_v24 = vld [vmem:[%s1059_s24 + $0x9c] sm:$0xf]  ;;  %v773_v25 = vmax.bf16 %v771_v19, %v768_v17  ;;  %v756_v26 = vsel %vm520_vm0, %v502_v14, 4286644096 }
  0x5a   : > { %v779_v27 = vsel %vm520_vm0, %v479_v16, 4286644096  ;;  %v731_v28 = vmax.bf16 %v729_v11, %v727_v21  ;;  %v518_v29 = vld [vmem:[%s1059_s24 + $0x118] sm:$0xf]  ;;  %v495_v31 = vld [vmem:[%s1059_s24 + $0xbc] sm:$0xf] }
  0x5b   : > { %v754_v30 = vmax.bf16 %v752_v18, %v750_v23  ;;  %v777_v32 = vmax.bf16 %v775_v20, %v773_v25  ;;  %v760_v33 = vsel %vm520_vm0, %v510_v22, 4286644096  ;;  %v783_v34 = vsel %vm520_vm0, %v487_v24, 4286644096  ;;  %v503_v36 = vld [vmem:[%s1059_s24 + $0xdc] sm:$0xf] }
  0x5c   : > { %807 = vst.msk [vmem:[%s1110_s28 + $0x14] sm:$0xf] %vm520_vm0, %v731_v28  ;;  %v764_v38 = vsel %vm520_vm0, %v518_v29, 4286644096  ;;  %v787_v39 = vsel %vm520_vm0, %v495_v31, 4286644096 }
  0x5d   : > { %v758_v35 = vmax.bf16 %v756_v26, %v754_v30  ;;  %v781_v37 = vmax.bf16 %v779_v27, %v777_v32  ;;  %v511_v41 = vld [vmem:[%s1059_s24 + $0xfc] sm:$0xf]  ;;  %v791_v43 = vsel %vm520_vm0, %v503_v36, 4286644096 }
  0x5e   : > { %v519_v45 = vld [vmem:[%s1059_s24 + $0x11c] sm:$0xf]  ;;  %v795_v47 = vsel %vm520_vm0, %v511_v41, 4286644096 }
  0x5f   : > { %v762_v40 = vmax.bf16 %v760_v33, %v758_v35  ;;  %v785_v42 = vmax.bf16 %v783_v34, %v781_v37  ;;  %v799_v49 = vsel %vm520_vm0, %v519_v45, 4286644096 }
  0x61   : > { %v766_v44 = vmax.bf16 %v764_v38, %v762_v40  ;;  %v789_v46 = vmax.bf16 %v787_v39, %v785_v42 }
  0x63   : > { %808 = vst.msk [vmem:[%s1110_s28 + $0x18] sm:$0xf] %vm520_vm0, %v766_v44  ;;  %v793_v48 = vmax.bf16 %v791_v43, %v789_v46 }
  0x65   : > { %v797_v50 = vmax.bf16 %v795_v47, %v793_v48 }
  0x67   : > { %v801_v51 = vmax.bf16 %v799_v49, %v797_v50 }
  0x69   : > { %809 = vst.msk [vmem:[%s1110_s28 + $0x1c] sm:$0xf] %vm520_vm0, %v801_v51 }
  0x6a PF: > { %p8_p9 = scmp.ge.s32.totalorder %s961_s10, 4   ;;  %s1243_s6 = smov %s928_s7 }
  0x6b   : > { %s1244_s7 = smov %s970_s13  ;;  %s1245_s8 = smov %s961_s10 }
  0x6c   :  { %10 = sbr.rel (!%p8_p9) target bundleno = 2 (0x2), region = 100 }

// kernel: resnext_forward.19
= control target key start
LH: loop header
LB: loop body
LE: loop exit
PB: predicated region body
PF: predicated region fallthrough
CT: control target
= control target key end

     0   :  { %s1157_s12 = smov 0   ;;  %s1361_s0 = inlined_call_operand.vmem [shape: bf16[512,147], index: 0, kind: input, shape index: {}]   ;;  %s1362_s1 = inlined_call_operand.vmem [shape: bf16[1,147,64], index: 1, kind: input, shape index: {}]   ;;  %s1363_s2 = inlined_call_operand.vmem [shape: f32[1,64], index: 2, kind: input, shape index: {}]   ;;  %s1364_s3 = inlined_call_operand.vmem [shape: bf16[512,64], index: 3, kind: output, shape index: {}]  }
   0x1 LB: > { %s903_s13 = sadd.s32 4294967295, %s1133_s12   ;;  %p907_p0 = scmp.ge.s32.totalorder %s1133_s12, 1  ;;  %s1133_s12 = sphi %s1157_s12, %s13_s12  }
   0x2   : > { %p139_p1 = scmp.lt.s32.totalorder %s1133_s12, 3 }
   0x4   : > { %p140_p2 = pnand %p907_p0, %p139_p1 }
   0x5   : > { %s908_s20 = sshll.u32 (!%p140_p2), %s903_s13, 5 }
   0x6   : > { %143 = sbr.rel (%p140_p2) target bundleno = 312 (0x138), region = 32  ;;  %p165_p3 = scmp.lt.s32.totalorder (!%p140_p2), %s908_s20, 63 }
   0xb   : > { %v1069_v0 = vld [vmem:[%s1362_s1 + $0x38] sm:$0xff]   ;;  %v1135_v1 = vmov 0   ;;  %v1070_v2 = vld [vmem:[%s1362_s1 + $0x30] sm:$0xff]   ;;  %v1071_v3 = vld [vmem:[%s1362_s1 + $0x28] sm:$0xff]   ;;  %s1366_s20 = smov (!%p165_p3, %s908_s20), 63  ;;  %vm437_vm0 = vcmask 154624  }
   0xc   : > { %493 = vmatprep.subr.bf16.mxu0 %v1135_v1  ;;  %1039 = vmatprep.subr.bf16.mxu1 %v1135_v1  ;;  %v1072_v4 = vld [vmem:[%s1362_s1 + $0x20] sm:$0xff]   ;;  %s1006_s23 = sshll.u32 %s1366_s20, 3  ;;  %v1073_v5 = vld [vmem:[%s1362_s1 + $0x18] sm:$0xff]   ;;  %v1074_v8 = vld [vmem:[%s1362_s1 + $0x10] sm:$0xff]   ;;  %vm486_vm1 = vcmask 1040384   ;;  %vm487_vm2 = vcmask 1041408  }
   0xd   : > { %494 = vmatpush1.bf16.msra.mxu0 %v1069_v0  ;;  %1049 = vmatpush1.bf16.msra.mxu1 %v1069_v0  ;;  %s1183_s26 = scalar_lea.vmem %s1361_s0, %s1006_s23  ;;  %v1075_v9 = vld [vmem:[%s1362_s1 + $0x8] sm:$0xff]   ;;  %v1136_v10 = vmov 65535   ;;  %v1076_v12 = vld [vmem:[%s1362_s1] sm:$0xff]   ;;  %s912_s15 = sshll.u32 %s1366_s20, 2  ;;  %vm814_vm3 = vcmask 519168  }
   0xe   : > { %495 = vmatprep.subr.bf16.mxu0 %v1135_v1  ;;  %1040 = vmatprep.subr.bf16.mxu1 %v1135_v1  ;;  %v1081_v6 = vld [vmem:[%s1183_s26 + $0x4] ss:$8 sps:$4 sm:$0xff]   ;;  %v488_v11 = vsel %vm486_vm1, 4294967295, %v1136_v10  ;;  %v1077_v13 = vld [vmem:[%s1362_s1 + $0x48] ss:$0 sps:$4 sm:$0x33]   ;;  %s1262_s18 = scalar_lea.vmem %s1364_s3, %s912_s15 }
   0xf   : > { %v1084_v7 = vld [vmem:[%s1183_s26 + $0x84] ss:$8 sps:$4 sm:$0xff]   ;;  %956 = vmatprep.mubr.msk.bf16.mxu0 %vm437_vm0, %v1081_v6  ;;  %v489_v14 = vsel %vm487_vm2, %v488_v11, 0  ;;  %v1079_v17 = vld [vmem:[%s1183_s26] ss:$8 sps:$4 sm:$0xff]  }
  0x10   : > { %964 = vmatprep.mubr.msk.bf16.mxu1 %vm437_vm0, %v1084_v7  ;;  %v491_v15 = vand.u32 %v1077_v13, %v489_v14  ;;  %v1078_v16 = vld [vmem:[%s1362_s1 + $0x40] sm:$0xff]   ;;  %v1085_v19 = vld [vmem:[%s1183_s26 + $0x14] ss:$8 sps:$4 sm:$0xff]   ;;  %v1089_v21 = vld [vmem:[%s1183_s26 + $0x10] ss:$8 sps:$4 sm:$0xff]  }
  0x11   : > { %496 = vmatpush1.bf16.msra.mxu0 %v1070_v2  ;;  %1050 = vmatpush1.bf16.msra.mxu1 %v1070_v2  ;;  %v1082_v18 = vld [vmem:[%s1183_s26 + $0x80] ss:$8 sps:$4 sm:$0xff]   ;;  %v1087_v20 = vld [vmem:[%s1183_s26 + $0x94] ss:$8 sps:$4 sm:$0xff]   ;;  %v1090_v22 = vld [vmem:[%s1183_s26 + $0x90] ss:$8 sps:$4 sm:$0xff]  }
  0x12   : > { %497 = vmatprep.subr.bf16.mxu0 %v1135_v1  ;;  %1041 = vmatprep.subr.bf16.mxu1 %v1135_v1  ;;  %v1091_v23 = vld [vmem:[%s1183_s26 + $0x24] ss:$8 sps:$4 sm:$0xff]   ;;  %v1095_v25 = vld [vmem:[%s1183_s26 + $0x20] ss:$8 sps:$4 sm:$0xff]   ;;  %v1097_v27 = vld [vmem:[%s1183_s26 + $0x34] ss:$8 sps:$4 sm:$0xff]  }
  0x13   : > { %v1093_v24 = vld [vmem:[%s1183_s26 + $0xa4] ss:$8 sps:$4 sm:$0xff]   ;;  %v1096_v26 = vld [vmem:[%s1183_s26 + $0xa0] ss:$8 sps:$4 sm:$0xff]   ;;  %v1099_v28 = vld [vmem:[%s1183_s26 + $0xb4] ss:$8 sps:$4 sm:$0xff]  }
  0x14   : > { %v1101_v29 = vld [vmem:[%s1183_s26 + $0x30] ss:$8 sps:$4 sm:$0xff]   ;;  %v1103_v31 = vld [vmem:[%s1183_s26 + $0x44] ss:$8 sps:$4 sm:$0xff]   ;;  %v1107_v33 = vld [vmem:[%s1183_s26 + $0x40] ss:$8 sps:$4 sm:$0xff]  }
  0x15   : > { %498 = vmatpush1.bf16.msra.mxu0 %v1071_v3  ;;  %1051 = vmatpush1.bf16.msra.mxu1 %v1071_v3  ;;  %v1102_v30 = vld [vmem:[%s1183_s26 + $0xb0] ss:$8 sps:$4 sm:$0xff]   ;;  %v1105_v32 = vld [vmem:[%s1183_s26 + $0xc4] ss:$8 sps:$4 sm:$0xff]   ;;  %v1108_v34 = vld [vmem:[%s1183_s26 + $0xc0] ss:$8 sps:$4 sm:$0xff]  }
  0x16   : > { %499 = vmatprep.subr.bf16.mxu0 %v1135_v1  ;;  %1042 = vmatprep.subr.bf16.mxu1 %v1135_v1  ;;  %v1109_v35 = vld [vmem:[%s1183_s26 + $0x54] ss:$8 sps:$4 sm:$0xff]   ;;  %v1113_v37 = vld [vmem:[%s1183_s26 + $0x50] ss:$8 sps:$4 sm:$0xff]   ;;  %v1115_v39 = vld [vmem:[%s1183_s26 + $0x64] ss:$8 sps:$4 sm:$0xff]  }
  0x17   : > { %v1111_v36 = vld [vmem:[%s1183_s26 + $0xd4] ss:$8 sps:$4 sm:$0xff]   ;;  %v1114_v38 = vld [vmem:[%s1183_s26 + $0xd0] ss:$8 sps:$4 sm:$0xff]   ;;  %v1117_v40 = vld [vmem:[%s1183_s26 + $0xe4] ss:$8 sps:$4 sm:$0xff]  }
  0x18   : > { %v1119_v41 = vld [vmem:[%s1183_s26 + $0x60] ss:$8 sps:$4 sm:$0xff]   ;;  %v1121_v43 = vld [vmem:[%s1183_s26 + $0x74] ss:$8 sps:$4 sm:$0xff]   ;;  %v1125_v45 = vld [vmem:[%s1183_s26 + $0x70] ss:$8 sps:$4 sm:$0xff]  }
  0x19   : > { %500 = vmatpush1.bf16.msra.mxu0 %v1072_v4  ;;  %1052 = vmatpush1.bf16.msra.mxu1 %v1072_v4  ;;  %v1120_v42 = vld [vmem:[%s1183_s26 + $0xe0] ss:$8 sps:$4 sm:$0xff]   ;;  %v1123_v44 = vld [vmem:[%s1183_s26 + $0xf4] ss:$8 sps:$4 sm:$0xff]   ;;  %v1126_v46 = vld [vmem:[%s1183_s26 + $0xf0] ss:$8 sps:$4 sm:$0xff]  }
  0x1a   : > { %501 = vmatprep.subr.bf16.mxu0 %v1135_v1  ;;  %1043 = vmatprep.subr.bf16.mxu1 %v1135_v1  ;;  %v1254_v47 = vld [vmem:[%s1363_s2] ss:$0 sm:$0xff] }
  0x1d   : > { %502 = vmatpush1.bf16.msra.mxu0 %v1073_v5  ;;  %1053 = vmatpush1.bf16.msra.mxu1 %v1073_v5 }
  0x1e   : > { %503 = vmatprep.subr.bf16.mxu0 %v1135_v1  ;;  %1044 = vmatprep.subr.bf16.mxu1 %v1135_v1 }
  0x21   : > { %504 = vmatpush1.bf16.msra.mxu0 %v1074_v8  ;;  %1054 = vmatpush1.bf16.msra.mxu1 %v1074_v8 }
  0x22   : > { %505 = vmatprep.subr.bf16.mxu0 %v1135_v1  ;;  %1045 = vmatprep.subr.bf16.mxu1 %v1135_v1 }
  0x25   : > { %506 = vmatpush1.bf16.msra.mxu0 %v1075_v9  ;;  %1055 = vmatpush1.bf16.msra.mxu1 %v1075_v9 }
  0x26   : > { %507 = vmatprep.subr.bf16.mxu0 %v1135_v1  ;;  %1046 = vmatprep.subr.bf16.mxu1 %v1135_v1 }
  0x29   : > { %508 = vmatpush1.bf16.msra.mxu0 %v1076_v12  ;;  %1056 = vmatpush1.bf16.msra.mxu1 %v1076_v12 }
  0x2a   : > { %521 = vmatprep.subr.bf16.mxu0 %v1135_v1  ;;  %1047 = vmatprep.subr.bf16.mxu1 %v1135_v1 }
  0x2d   : > { %522 = vmatpush2.bf16.msra.mxu0 %v491_v15  ;;  %1057 = vmatpush2.bf16.msra.mxu1 %v491_v15 }
  0x2e   : > { %523 = vmatprep.subr.bf16.mxu0 %v1135_v1  ;;  %1048 = vmatprep.subr.bf16.mxu1 %v1135_v1 }
  0x31   : > { %524 = vmatpush2.bf16.msra.mxu0 %v1078_v16  ;;  %1058 = vmatpush2.bf16.msra.mxu1 %v1078_v16 }
  0x34   : > { %526 = vmatmul.mubr.bf16.vlgmr.msra.gmra.mxu0 %v1079_v17  ;;  %590 = vmatmul.mubr.bf16.vlgmr.msra.gmra.mxu1 %v1082_v18 }
  0x35   : > { %957 = vmatprep.mubr.msk.bf16.mxu0 %vm437_vm0, %v1085_v19  ;;  %965 = vmatprep.mubr.msk.bf16.mxu1 %vm437_vm0, %v1087_v20 }
  0x3c   : > { %534 = vmatmul.mubr.bf16.gmra.mxu0 %v1089_v21  ;;  %598 = vmatmul.mubr.bf16.gmra.mxu1 %v1090_v22 }
  0x3d   : > { %958 = vmatprep.mubr.msk.bf16.mxu0 %vm437_vm0, %v1091_v23  ;;  %966 = vmatprep.mubr.msk.bf16.mxu1 %vm437_vm0, %v1093_v24 }
  0x44   : > { %542 = vmatmul.mubr.bf16.gmra.mxu0 %v1095_v25  ;;  %606 = vmatmul.mubr.bf16.gmra.mxu1 %v1096_v26 }
  0x45   : > { %959 = vmatprep.mubr.msk.bf16.mxu0 %vm437_vm0, %v1097_v27  ;;  %967 = vmatprep.mubr.msk.bf16.mxu1 %vm437_vm0, %v1099_v28 }
  0x4c   : > { %550 = vmatmul.mubr.bf16.gmra.mxu0 %v1101_v29  ;;  %614 = vmatmul.mubr.bf16.gmra.mxu1 %v1102_v30 }
  0x4d   : > { %960 = vmatprep.mubr.msk.bf16.mxu0 %vm437_vm0, %v1103_v31  ;;  %968 = vmatprep.mubr.msk.bf16.mxu1 %vm437_vm0, %v1105_v32 }
  0x54   : > { %558 = vmatmul.mubr.bf16.gmra.mxu0 %v1107_v33  ;;  %622 = vmatmul.mubr.bf16.gmra.mxu1 %v1108_v34 }
  0x55   : > { %961 = vmatprep.mubr.msk.bf16.mxu0 %vm437_vm0, %v1109_v35  ;;  %969 = vmatprep.mubr.msk.bf16.mxu1 %vm437_vm0, %v1111_v36 }
  0x5c   : > { %566 = vmatmul.mubr.bf16.gmra.mxu0 %v1113_v37  ;;  %630 = vmatmul.mubr.bf16.gmra.mxu1 %v1114_v38 }
  0x5d   : > { %962 = vmatprep.mubr.msk.bf16.mxu0 %vm437_vm0, %v1115_v39  ;;  %970 = vmatprep.mubr.msk.bf16.mxu1 %vm437_vm0, %v1117_v40 }
  0x64   : > { %574 = vmatmul.mubr.bf16.gmra.mxu0 %v1119_v41  ;;  %638 = vmatmul.mubr.bf16.gmra.mxu1 %v1120_v42 }
  0x65   : > { %963 = vmatprep.mubr.msk.bf16.mxu0 %vm437_vm0, %v1121_v43  ;;  %971 = vmatprep.mubr.msk.bf16.mxu1 %vm437_vm0, %v1123_v44 }
  0x6c   : > { %582 = vmatmul.mubr.bf16.gmra.mxu0 %v1125_v45  ;;  %646 = vmatmul.mubr.bf16.gmra.mxu1 %v1126_v46 }
  0xf4   : > { %v527_v48 = vpop.f32.mrf.mxu0  ;;  %v591_v49 = vpop.f32.mrf.mxu1 }
  0xf5   : > { %v528_v50 = vadd.f32 %v1254_v47, %v527_v48  ;;  %v592_v51 = vadd.f32 %v1254_v47, %v591_v49 }
  0xf6   : > { %v529_v52 = vpop.f32.mrf.mxu0  ;;  %v593_v53 = vpop.f32.mrf.mxu1 }
  0xf7   : > { %v654_v54 = vmax.f32 %v528_v50, 0.0  ;;  %v670_v55 = vmax.f32 %v592_v51, 0.0 }
  0xf8   : > { %v530_v56 = vpop.f32.mrf.mxu0  ;;  %v594_v57 = vpop.f32.mrf.mxu1 }
  0xf9   : > { %v1007_v58 = vpack.c.bf16 %v654_v54, %v654_v54  ;;  %v1023_v59 = vpack.c.bf16 %v670_v55, %v670_v55  ;;  %v531_v60 = vadd.f32 %v1254_v47, %v530_v56  ;;  %v595_v61 = vadd.f32 %v1254_v47, %v594_v57 }
  0xfa   : > { %v532_v62 = vpop.f32.mrf.mxu0  ;;  %v596_v63 = vpop.f32.mrf.mxu1 }
  0xfb   : > { %815 = vst.msk [vmem:[%s1262_s18] sm:$0xf] %vm814_vm3, %v1007_v58  ;;  %831 = vst.msk [vmem:[%s1262_s18 + $0x40] sm:$0xf] %vm814_vm3, %v1023_v59  ;;  %v655_v0 = vmax.f32 %v531_v60, 0.0  ;;  %v671_v1 = vmax.f32 %v595_v61, 0.0 }
  0xfc   : > { %v535_v2 = vpop.f32.mrf.mxu0  ;;  %v599_v3 = vpop.f32.mrf.mxu1 }
  0xfd   : > { %v1008_v4 = vpack.c.bf16 %v655_v0, %v655_v0  ;;  %v1024_v5 = vpack.c.bf16 %v671_v1, %v671_v1  ;;  %v536_v6 = vadd.f32 %v1254_v47, %v535_v2  ;;  %v600_v7 = vadd.f32 %v1254_v47, %v599_v3 }
  0xfe   : > { %v537_v8 = vpop.f32.mrf.mxu0  ;;  %v601_v9 = vpop.f32.mrf.mxu1 }
  0xff   : > { %816 = vst.msk [vmem:[%s1262_s18 + $0x4] sm:$0xf] %vm814_vm3, %v1008_v4  ;;  %832 = vst.msk [vmem:[%s1262_s18 + $0x44] sm:$0xf] %vm814_vm3, %v1024_v5  ;;  %v656_v10 = vmax.f32 %v536_v6, 0.0  ;;  %v672_v11 = vmax.f32 %v600_v7, 0.0 }
 0x100   : > { %v538_v12 = vpop.f32.mrf.mxu0  ;;  %v602_v13 = vpop.f32.mrf.mxu1 }
 0x101   : > { %v1009_v14 = vpack.c.bf16 %v656_v10, %v656_v10  ;;  %v1025_v15 = vpack.c.bf16 %v672_v11, %v672_v11  ;;  %v539_v16 = vadd.f32 %v1254_v47, %v538_v12  ;;  %v603_v17 = vadd.f32 %v1254_v47, %v602_v13 }
 0x102   : > { %v540_v18 = vpop.f32.mrf.mxu0  ;;  %v604_v19 = vpop.f32.mrf.mxu1 }
 0x103   : > { %817 = vst.msk [vmem:[%s1262_s18 + $0x8] sm:$0xf] %vm814_vm3, %v1009_v14  ;;  %833 = vst.msk [vmem:[%s1262_s18 + $0x48] sm:$0xf] %vm814_vm3, %v1025_v15  ;;  %v657_v20 = vmax.f32 %v539_v16, 0.0  ;;  %v673_v21 = vmax.f32 %v603_v17, 0.0 }
 0x104   : > { %v543_v22 = vpop.f32.mrf.mxu0  ;;  %v607_v23 = vpop.f32.mrf.mxu1 }
 0x105   : > { %v1010_v24 = vpack.c.bf16 %v657_v20, %v657_v20  ;;  %v1026_v25 = vpack.c.bf16 %v673_v21, %v673_v21  ;;  %v544_v26 = vadd.f32 %v1254_v47, %v543_v22  ;;  %v608_v27 = vadd.f32 %v1254_v47, %v607_v23 }
 0x106   : > { %v545_v28 = vpop.f32.mrf.mxu0  ;;  %v609_v29 = vpop.f32.mrf.mxu1 }
 0x107   : > { %818 = vst.msk [vmem:[%s1262_s18 + $0xc] sm:$0xf] %vm814_vm3, %v1010_v24  ;;  %834 = vst.msk [vmem:[%s1262_s18 + $0x4c] sm:$0xf] %vm814_vm3, %v1026_v25  ;;  %v658_v30 = vmax.f32 %v544_v26, 0.0  ;;  %v674_v31 = vmax.f32 %v608_v27, 0.0 }
 0x108   : > { %v546_v32 = vpop.f32.mrf.mxu0  ;;  %v610_v33 = vpop.f32.mrf.mxu1 }
 0x109   : > { %v1011_v34 = vpack.c.bf16 %v658_v30, %v658_v30  ;;  %v1027_v35 = vpack.c.bf16 %v674_v31, %v674_v31  ;;  %v547_v36 = vadd.f32 %v1254_v47, %v546_v32  ;;  %v611_v37 = vadd.f32 %v1254_v47, %v610_v33 }
 0x10a   : > { %v548_v38 = vpop.f32.mrf.mxu0  ;;  %v612_v39 = vpop.f32.mrf.mxu1 }
 0x10b   : > { %819 = vst.msk [vmem:[%s1262_s18 + $0x10] sm:$0xf] %vm814_vm3, %v1011_v34  ;;  %835 = vst.msk [vmem:[%s1262_s18 + $0x50] sm:$0xf] %vm814_vm3, %v1027_v35  ;;  %v659_v40 = vmax.f32 %v547_v36, 0.0  ;;  %v675_v41 = vmax.f32 %v611_v37, 0.0 }
 0x10c   : > { %v551_v42 = vpop.f32.mrf.mxu0  ;;  %v615_v43 = vpop.f32.mrf.mxu1 }
 0x10d   : > { %v1012_v44 = vpack.c.bf16 %v659_v40, %v659_v40  ;;  %v1028_v45 = vpack.c.bf16 %v675_v41, %v675_v41  ;;  %v552_v46 = vadd.f32 %v1254_v47, %v551_v42  ;;  %v616_v48 = vadd.f32 %v1254_v47, %v615_v43 }
 0x10e   : > { %v553_v49 = vpop.f32.mrf.mxu0  ;;  %v617_v50 = vpop.f32.mrf.mxu1 }
 0x10f   : > { %820 = vst.msk [vmem:[%s1262_s18 + $0x14] sm:$0xf] %vm814_vm3, %v1012_v44  ;;  %836 = vst.msk [vmem:[%s1262_s18 + $0x54] sm:$0xf] %vm814_vm3, %v1028_v45  ;;  %v660_v51 = vmax.f32 %v552_v46, 0.0  ;;  %v676_v52 = vmax.f32 %v616_v48, 0.0 }
 0x110   : > { %v554_v53 = vpop.f32.mrf.mxu0  ;;  %v618_v54 = vpop.f32.mrf.mxu1 }
 0x111   : > { %v1013_v55 = vpack.c.bf16 %v660_v51, %v660_v51  ;;  %v1029_v56 = vpack.c.bf16 %v676_v52, %v676_v52  ;;  %v555_v57 = vadd.f32 %v1254_v47, %v554_v53  ;;  %v619_v58 = vadd.f32 %v1254_v47, %v618_v54 }
 0x112   : > { %v556_v59 = vpop.f32.mrf.mxu0  ;;  %v620_v60 = vpop.f32.mrf.mxu1 }
 0x113   : > { %821 = vst.msk [vmem:[%s1262_s18 + $0x18] sm:$0xf] %vm814_vm3, %v1013_v55  ;;  %837 = vst.msk [vmem:[%s1262_s18 + $0x58] sm:$0xf] %vm814_vm3, %v1029_v56  ;;  %v661_v61 = vmax.f32 %v555_v57, 0.0  ;;  %v677_v62 = vmax.f32 %v619_v58, 0.0 }
 0x114   : > { %v559_v63 = vpop.f32.mrf.mxu0  ;;  %v623_v0 = vpop.f32.mrf.mxu1 }
 0x115   : > { %v1014_v1 = vpack.c.bf16 %v661_v61, %v661_v61  ;;  %v1030_v2 = vpack.c.bf16 %v677_v62, %v677_v62  ;;  %v560_v3 = vadd.f32 %v1254_v47, %v559_v63  ;;  %v624_v4 = vadd.f32 %v1254_v47, %v623_v0 }
 0x116   : > { %v561_v5 = vpop.f32.mrf.mxu0  ;;  %v625_v6 = vpop.f32.mrf.mxu1 }
 0x117   : > { %822 = vst.msk [vmem:[%s1262_s18 + $0x1c] sm:$0xf] %vm814_vm3, %v1014_v1  ;;  %838 = vst.msk [vmem:[%s1262_s18 + $0x5c] sm:$0xf] %vm814_vm3, %v1030_v2  ;;  %v662_v7 = vmax.f32 %v560_v3, 0.0  ;;  %v678_v8 = vmax.f32 %v624_v4, 0.0 }
 0x118   : > { %v562_v9 = vpop.f32.mrf.mxu0  ;;  %v626_v10 = vpop.f32.mrf.mxu1 }
 0x119   : > { %v1015_v11 = vpack.c.bf16 %v662_v7, %v662_v7  ;;  %v1031_v12 = vpack.c.bf16 %v678_v8, %v678_v8  ;;  %v563_v13 = vadd.f32 %v1254_v47, %v562_v9  ;;  %v627_v14 = vadd.f32 %v1254_v47, %v626_v10 }
 0x11a   : > { %v564_v15 = vpop.f32.mrf.mxu0  ;;  %v628_v16 = vpop.f32.mrf.mxu1 }
 0x11b   : > { %823 = vst.msk [vmem:[%s1262_s18 + $0x20] sm:$0xf] %vm814_vm3, %v1015_v11  ;;  %839 = vst.msk [vmem:[%s1262_s18 + $0x60] sm:$0xf] %vm814_vm3, %v1031_v12  ;;  %v663_v17 = vmax.f32 %v563_v13, 0.0  ;;  %v679_v18 = vmax.f32 %v627_v14, 0.0 }
 0x11c   : > { %v567_v19 = vpop.f32.mrf.mxu0  ;;  %v631_v20 = vpop.f32.mrf.mxu1 }
 0x11d   : > { %v1016_v21 = vpack.c.bf16 %v663_v17, %v663_v17  ;;  %v1032_v22 = vpack.c.bf16 %v679_v18, %v679_v18  ;;  %v568_v23 = vadd.f32 %v1254_v47, %v567_v19  ;;  %v632_v24 = vadd.f32 %v1254_v47, %v631_v20 }
 0x11e   : > { %v569_v25 = vpop.f32.mrf.mxu0  ;;  %v633_v26 = vpop.f32.mrf.mxu1 }
 0x11f   : > { %824 = vst.msk [vmem:[%s1262_s18 + $0x24] sm:$0xf] %vm814_vm3, %v1016_v21  ;;  %840 = vst.msk [vmem:[%s1262_s18 + $0x64] sm:$0xf] %vm814_vm3, %v1032_v22  ;;  %v664_v27 = vmax.f32 %v568_v23, 0.0  ;;  %v680_v28 = vmax.f32 %v632_v24, 0.0 }
 0x120   : > { %v570_v29 = vpop.f32.mrf.mxu0  ;;  %v634_v30 = vpop.f32.mrf.mxu1 }
 0x121   : > { %v1017_v31 = vpack.c.bf16 %v664_v27, %v664_v27  ;;  %v1033_v32 = vpack.c.bf16 %v680_v28, %v680_v28  ;;  %v571_v33 = vadd.f32 %v1254_v47, %v570_v29  ;;  %v635_v34 = vadd.f32 %v1254_v47, %v634_v30 }
 0x122   : > { %v572_v35 = vpop.f32.mrf.mxu0  ;;  %v636_v36 = vpop.f32.mrf.mxu1 }
 0x123   : > { %825 = vst.msk [vmem:[%s1262_s18 + $0x28] sm:$0xf] %vm814_vm3, %v1017_v31  ;;  %841 = vst.msk [vmem:[%s1262_s18 + $0x68] sm:$0xf] %vm814_vm3, %v1033_v32  ;;  %v665_v37 = vmax.f32 %v571_v33, 0.0  ;;  %v681_v38 = vmax.f32 %v635_v34, 0.0 }
 0x124   : > { %v575_v39 = vpop.f32.mrf.mxu0  ;;  %v639_v40 = vpop.f32.mrf.mxu1 }
 0x125   : > { %v1018_v41 = vpack.c.bf16 %v665_v37, %v665_v37  ;;  %v1034_v42 = vpack.c.bf16 %v681_v38, %v681_v38  ;;  %v576_v43 = vadd.f32 %v1254_v47, %v575_v39  ;;  %v640_v44 = vadd.f32 %v1254_v47, %v639_v40 }
 0x126   : > { %v577_v45 = vpop.f32.mrf.mxu0  ;;  %v641_v46 = vpop.f32.mrf.mxu1 }
 0x127   : > { %826 = vst.msk [vmem:[%s1262_s18 + $0x2c] sm:$0xf] %vm814_vm3, %v1018_v41  ;;  %842 = vst.msk [vmem:[%s1262_s18 + $0x6c] sm:$0xf] %vm814_vm3, %v1034_v42  ;;  %v666_v48 = vmax.f32 %v576_v43, 0.0  ;;  %v682_v49 = vmax.f32 %v640_v44, 0.0 }
 0x128   : > { %v578_v50 = vpop.f32.mrf.mxu0  ;;  %v642_v51 = vpop.f32.mrf.mxu1 }
 0x129   : > { %v1019_v52 = vpack.c.bf16 %v666_v48, %v666_v48  ;;  %v1035_v53 = vpack.c.bf16 %v682_v49, %v682_v49  ;;  %v579_v54 = vadd.f32 %v1254_v47, %v578_v50  ;;  %v643_v55 = vadd.f32 %v1254_v47, %v642_v51 }
 0x12a   : > { %v580_v56 = vpop.f32.mrf.mxu0  ;;  %v644_v57 = vpop.f32.mrf.mxu1 }
 0x12b   : > { %827 = vst.msk [vmem:[%s1262_s18 + $0x30] sm:$0xf] %vm814_vm3, %v1019_v52  ;;  %843 = vst.msk [vmem:[%s1262_s18 + $0x70] sm:$0xf] %vm814_vm3, %v1035_v53  ;;  %v667_v58 = vmax.f32 %v579_v54, 0.0  ;;  %v683_v59 = vmax.f32 %v643_v55, 0.0 }
 0x12c   : > { %v583_v60 = vpop.f32.mrf.mxu0  ;;  %v647_v61 = vpop.f32.mrf.mxu1 }
 0x12d   : > { %v1020_v62 = vpack.c.bf16 %v667_v58, %v667_v58  ;;  %v1036_v63 = vpack.c.bf16 %v683_v59, %v683_v59  ;;  %v584_v0 = vadd.f32 %v1254_v47, %v583_v60  ;;  %v648_v1 = vadd.f32 %v1254_v47, %v647_v61 }
 0x12e   : > { %v585_v2 = vpop.f32.mrf.mxu0  ;;  %v649_v3 = vpop.f32.mrf.mxu1 }
 0x12f   : > { %828 = vst.msk [vmem:[%s1262_s18 + $0x34] sm:$0xf] %vm814_vm3, %v1020_v62  ;;  %844 = vst.msk [vmem:[%s1262_s18 + $0x74] sm:$0xf] %vm814_vm3, %v1036_v63  ;;  %v668_v4 = vmax.f32 %v584_v0, 0.0  ;;  %v684_v5 = vmax.f32 %v648_v1, 0.0 }
 0x130   : > { %v586_v6 = vpop.f32.mrf.mxu0  ;;  %v650_v7 = vpop.f32.mrf.mxu1 }
 0x131   : > { %v1021_v8 = vpack.c.bf16 %v668_v4, %v668_v4  ;;  %v1037_v9 = vpack.c.bf16 %v684_v5, %v684_v5  ;;  %v587_v10 = vadd.f32 %v1254_v47, %v586_v6  ;;  %v651_v11 = vadd.f32 %v1254_v47, %v650_v7 }
 0x132   : > { %v588_v12 = vpop.f32.mrf.mxu0  ;;  %v652_v13 = vpop.f32.mrf.mxu1 }
 0x133   : > { %829 = vst.msk [vmem:[%s1262_s18 + $0x38] sm:$0xf] %vm814_vm3, %v1021_v8  ;;  %845 = vst.msk [vmem:[%s1262_s18 + $0x78] sm:$0xf] %vm814_vm3, %v1037_v9  ;;  %v669_v14 = vmax.f32 %v587_v10, 0.0  ;;  %v685_v15 = vmax.f32 %v651_v11, 0.0 }
 0x135   : > { %v1022_v16 = vpack.c.bf16 %v669_v14, %v669_v14  ;;  %v1038_v17 = vpack.c.bf16 %v685_v15, %v685_v15 }
 0x137   : > { %830 = vst.msk [vmem:[%s1262_s18 + $0x3c] sm:$0xf] %vm814_vm3, %v1022_v16  ;;  %846 = vst.msk [vmem:[%s1262_s18 + $0x7c] sm:$0xf] %vm814_vm3, %v1038_v17 }
 0x138 PF: > { %s13_s12 = sadd.s32 1, %s1133_s12  }
 0x139   : > { %p10_p4 = scmp.ge.s32.totalorder %s13_s12, 4  }
 0x13b   :  { %12 = sbr.rel (!%p10_p4) target bundleno = 1 (0x1), region = 62 }

// kernel: resnext_forward.23
= control target key start
LH: loop header
LB: loop body
LE: loop exit
PB: predicated region body
PF: predicated region fallthrough
CT: control target
= control target key end

     0   :  { %s622_s15 = smov 0   ;;  %s674_s0 = inlined_call_operand.vmem [shape: bf16[128,32], index: 0, kind: input, shape index: {}]   ;;  %s675_s1 = inlined_call_operand.vmem [shape: bf16[1,32,64], index: 1, kind: input, shape index: {}]   ;;  %s676_s2 = inlined_call_operand.vmem [shape: f32[1,64], index: 2, kind: input, shape index: {}]   ;;  %s677_s3 = inlined_call_operand.vmem [shape: bf16[128,64], index: 3, kind: input, shape index: {}]   ;;  %s678_s4 = inlined_call_operand.vmem [shape: bf16[128,64], index: 4, kind: output, shape index: {}]  }
   0x1 LB: > { %s494_s16 = sadd.s32 4294967295, %s595_s15   ;;  %p498_p0 = scmp.ge.s32.totalorder %s595_s15, 1  ;;  %s595_s15 = sphi %s622_s15, %s14_s15  }
   0x2   : > { %p174_p1 = scmp.lt.s32.totalorder %s595_s15, 3 }
   0x4   : > { %p175_p2 = pnand %p498_p0, %p174_p1 }
   0x5   : > { %s499_s19 = sshll.u32 (!%p175_p2), %s494_s16, 3 }
   0x6   : > { %178 = sbr.rel (%p175_p2) target bundleno = 229 (0xe5), region = 36  ;;  %p206_p3 = scmp.lt.s32.totalorder (!%p175_p2), %s499_s19, 15 }
   0xb   : > { %v583_v0 = vld [vmem:[%s675_s1 + $0x8] sm:$0xff]   ;;  %v584_v1 = vld [vmem:[%s675_s1] sm:$0xff]   ;;  %s680_s19 = smov (!%p206_p3, %s499_s19), 15  ;;  %vm275_vm0 = vcmask 261120   ;;  %vm417_vm1 = vcmask 519168  }
   0xc   : > { %559 = vmatprep.subr.bf16.mxu0 %v583_v0  ;;  %571 = vmatprep.subr.bf16.mxu1 %v583_v0  ;;  %s636_s22 = sshll.u32 %s680_s19, 2  ;;  %v505_v8 = vld [vmem:[%s676_s2] ss:$0 sm:$0xff] }
   0xd   : > { %560 = vmatpush3.bf16.msra.mxu0 %v583_v0  ;;  %573 = vmatpush3.bf16.msra.mxu1 %v583_v0  ;;  %s209_s25 = scalar_lea.vmem %s674_s0, %s636_s22  ;;  %s215_s28 = scalar_lea.vmem %s677_s3, %s636_s22 }
   0xe   : > { %561 = vmatprep.subr.bf16.mxu0 %v584_v1  ;;  %572 = vmatprep.subr.bf16.mxu1 %v584_v1  ;;  %v585_v2 = vld [vmem:[%s209_s25] sm:$0xff]   ;;  %v586_v3 = vld [vmem:[%s209_s25 + $0x10] sm:$0xff]   ;;  %v587_v4 = vld [vmem:[%s209_s25 + $0x8] sm:$0xff]   ;;  %s653_s7 = scalar_lea.vmem %s678_s4, %s636_s22 }
   0xf   : > { %563 = vmatprep.mubr.msk.bf16.mxu0 %vm275_vm0, %v585_v2  ;;  %567 = vmatprep.mubr.msk.bf16.mxu1 %vm275_vm0, %v586_v3  ;;  %v588_v5 = vld [vmem:[%s209_s25 + $0x18] sm:$0xff]   ;;  %v550_v6 = vld [vmem:[%s215_s28 + $0x8] sm:$0xff]   ;;  %v535_v9 = vld [vmem:[%s215_s28] sm:$0xff]  }
  0x10   : > { %v552_v7 = vld [vmem:[%s215_s28 + $0x18] sm:$0xff]   ;;  %v540_v10 = vunpack.c.l.bf16 %v550_v6  ;;  %v551_v11 = vld [vmem:[%s215_s28 + $0x10] sm:$0xff]   ;;  %v536_v16 = vunpack.c.l.bf16 %v535_v9  ;;  %v541_v23 = vunpack.c.h.bf16 %v550_v6  ;;  %v537_v32 = vunpack.c.h.bf16 %v535_v9 }
  0x11   : > { %562 = vmatpush3.bf16.msra.mxu0 %v584_v1  ;;  %574 = vmatpush3.bf16.msra.mxu1 %v584_v1  ;;  %v548_v13 = vunpack.c.l.bf16 %v552_v7  ;;  %v544_v19 = vunpack.c.l.bf16 %v551_v11  ;;  %v549_v27 = vunpack.c.h.bf16 %v552_v7  ;;  %v545_v37 = vunpack.c.h.bf16 %v551_v11 }
  0x14   : > { %564 = vmatmul.mubr.msk.bf16.vlgmr.msra.gmra.mxu0 %vm275_vm0, %v587_v4  ;;  %568 = vmatmul.mubr.msk.bf16.vlgmr.msra.gmra.mxu1 %vm275_vm0, %v588_v5 }
  0xd4   : > { %v565_v12 = vpop.f32.mrf.mxu0  ;;  %v569_v15 = vpop.f32.mrf.mxu1 }
  0xd5   : > { %v331_v14 = vadd.f32 %v565_v12, %v505_v8  ;;  %v347_v17 = vadd.f32 %v569_v15, %v505_v8 }
  0xd6   : > { %v322_v18 = vpop.f32.mrf.mxu0  ;;  %v338_v22 = vpop.f32.mrf.mxu1 }
  0xd7   : > { %v371_v20 = vadd.f32 %v540_v10, %v331_v14  ;;  %v323_v21 = vadd.f32 %v505_v8, %v322_v18  ;;  %v375_v24 = vadd.f32 %v548_v13, %v347_v17  ;;  %v339_v25 = vadd.f32 %v505_v8, %v338_v22 }
  0xd8   : > { %v566_v26 = vpop.f32.mrf.mxu0  ;;  %v570_v31 = vpop.f32.mrf.mxu1 }
  0xd9   : > { %v379_v28 = vmax.f32 %v371_v20, 0.0  ;;  %v369_v29 = vadd.f32 %v536_v16, %v323_v21  ;;  %v334_v30 = vadd.f32 %v566_v26, %v505_v8  ;;  %v383_v33 = vmax.f32 %v375_v24, 0.0 }
  0xda   : > { %v373_v34 = vadd.f32 %v544_v19, %v339_v25  ;;  %v350_v35 = vadd.f32 %v570_v31, %v505_v8  ;;  %v325_v36 = vpop.f32.mrf.mxu0  ;;  %v341_v42 = vpop.f32.mrf.mxu1 }
  0xdb   : > { %v528_v38 = vpack.c.bf16 %v379_v28, %v379_v28  ;;  %v377_v39 = vmax.f32 %v369_v29, 0.0  ;;  %v372_v40 = vadd.f32 %v541_v23, %v334_v30  ;;  %v326_v41 = vadd.f32 %v505_v8, %v325_v36 }
  0xdc   : > { %v532_v43 = vpack.c.bf16 %v383_v33, %v383_v33  ;;  %v381_v44 = vmax.f32 %v373_v34, 0.0  ;;  %v376_v45 = vadd.f32 %v549_v27, %v350_v35  ;;  %v342_v46 = vadd.f32 %v505_v8, %v341_v42 }
  0xdd   : > { %420 = vst.msk [vmem:[%s653_s7 + $0x8] sm:$0xf] %vm417_vm1, %v528_v38  ;;  %v526_v47 = vpack.c.bf16 %v377_v39, %v377_v39  ;;  %v380_v48 = vmax.f32 %v372_v40, 0.0  ;;  %v370_v49 = vadd.f32 %v537_v32, %v326_v41 }
  0xde   : > { %424 = vst.msk [vmem:[%s653_s7 + $0x18] sm:$0xf] %vm417_vm1, %v532_v43  ;;  %v530_v50 = vpack.c.bf16 %v381_v44, %v381_v44  ;;  %v384_v51 = vmax.f32 %v376_v45, 0.0  ;;  %v374_v52 = vadd.f32 %v545_v37, %v342_v46 }
  0xdf   : > { %418 = vst.msk [vmem:[%s653_s7] sm:$0xf] %vm417_vm1, %v526_v47  ;;  %v529_v53 = vpack.c.bf16 %v380_v48, %v380_v48  ;;  %v378_v54 = vmax.f32 %v370_v49, 0.0 }
  0xe0   : > { %422 = vst.msk [vmem:[%s653_s7 + $0x10] sm:$0xf] %vm417_vm1, %v530_v50  ;;  %v533_v55 = vpack.c.bf16 %v384_v51, %v384_v51  ;;  %v382_v56 = vmax.f32 %v374_v52, 0.0 }
  0xe1   : > { %421 = vst.msk [vmem:[%s653_s7 + $0xc] sm:$0xf] %vm417_vm1, %v529_v53  ;;  %v527_v57 = vpack.c.bf16 %v378_v54, %v378_v54 }
  0xe2   : > { %425 = vst.msk [vmem:[%s653_s7 + $0x1c] sm:$0xf] %vm417_vm1, %v533_v55  ;;  %v531_v58 = vpack.c.bf16 %v382_v56, %v382_v56 }
  0xe3   : > { %419 = vst.msk [vmem:[%s653_s7 + $0x4] sm:$0xf] %vm417_vm1, %v527_v57 }
  0xe4   : > { %423 = vst.msk [vmem:[%s653_s7 + $0x14] sm:$0xf] %vm417_vm1, %v531_v58 }
  0xe5 PF: > { %s14_s15 = sadd.s32 1, %s595_s15  }
  0xe6   : > { %p11_p4 = scmp.ge.s32.totalorder %s14_s15, 4  }
  0xe8   :  { %13 = sbr.rel (!%p11_p4) target bundleno = 1 (0x1), region = 69 }

// kernel: resnext_forward.22
= control target key start
LH: loop header
LB: loop body
LE: loop exit
PB: predicated region body
PF: predicated region fallthrough
CT: control target
= control target key end

     0   :  { %s920_s12 = smov 0   ;;  %s1078_s0 = inlined_call_operand.vmem [shape: bf16[128,288], index: 0, kind: input, shape index: {}]   ;;  %s1079_s1 = inlined_call_operand.vmem [shape: bf16[2,144,16], index: 1, kind: input, shape index: {}]   ;;  %s1080_s2 = inlined_call_operand.vmem [shape: f32[1,32], index: 2, kind: input, shape index: {}]   ;;  %s1081_s3 = inlined_call_operand.vmem [shape: bf16[128,32], index: 3, kind: output, shape index: {}]  }
   0x1 LB: > { %s747_s13 = sadd.s32 4294967295, %s895_s12   ;;  %p751_p0 = scmp.ge.s32.totalorder %s895_s12, 1  ;;  %s895_s12 = sphi %s920_s12, %s13_s12  }
   0x2   : > { %p139_p1 = scmp.lt.s32.totalorder %s895_s12, 3 }
   0x4   : > { %p140_p2 = pnand %p751_p0, %p139_p1 }
   0x5   : > { %s752_s14 = sshll.u32 (!%p140_p2), %s747_s13, 3  ;;  %s898_s27 = smov (!%p140_p2), 112  }
   0x6   : > { %143 = sbr.rel (%p140_p2) target bundleno = 480 (0x1e0), region = 32  ;;  %p165_p3 = scmp.lt.s32.totalorder (!%p140_p2), %s752_s14, 15 }
   0xb   : > { %v859_v0 = vld [vmem:[%s1079_s1 + $0x80] sm:$0xff]   ;;  %v897_v1 = vmov 0   ;;  %v860_v2 = vld [vmem:[%s1079_s1 + $0x78] sm:$0xff]   ;;  %s1083_s14 = smov (!%p165_p3, %s752_s14), 15  ;;  %v861_v3 = vld [vmem:[%s1079_s1 + $0x70] sm:$0xff]   ;;  %vm294_vm0 = vcmask 130048  }
   0xc   : > { %522 = vmatprep.subr.bf16.mxu1 %v897_v1  ;;  %307 = vmatprep.subr.bf16.mxu0 %v897_v1  ;;  %s835_s19 = smul.u32 12, %s1083_s14  ;;  %v862_v5 = vld [vmem:[%s1079_s1 + $0x68] sm:$0xff]   ;;  %v863_v9 = vld [vmem:[%s1079_s1 + $0x60] sm:$0xff]   ;;  %v864_v13 = vld [vmem:[%s1079_s1 + $0x58] sm:$0xff]   ;;  %vm447_vm1 = vcmask 916480   ;;  %s755_s7 = sshll.u32 %s1083_s14, 2 }
   0xd   : > { %523 = vmatpush1.bf16.msra.mxu1 %v859_v0  ;;  %v865_v15 = vld [vmem:[%s1079_s1 + $0x50] sm:$0xff]   ;;  %v866_v16 = vld [vmem:[%s1079_s1 + $0x48] sm:$0xff]   ;;  %v868_v17 = vld [vmem:[%s1079_s1 + $0x38] sm:$0xff]   ;;  %s1048_s10 = scalar_lea.vmem %s1081_s3, %s755_s7  ;;  %vm682_vm2 = vcmask 257024  }
   0xe   : > { %524 = vmatprep.subr.bf16.mxu1 %v897_v1  ;;  %s946_s24 = scalar_lea.vmem %s1078_s0, %s835_s19  ;;  %308 = vmatpush1.bf16.msra.mxu0 %v868_v17  ;;  %v869_v18 = vld [vmem:[%s1079_s1 + $0x30] sm:$0xff]   ;;  %v867_v20 = vld [vmem:[%s1079_s1 + $0x88] sm:$0xff]   ;;  %v871_v22 = vld [vmem:[%s1079_s1 + $0x20] sm:$0xff]  }
   0xf   : > { %v847_v4 = vld [vmem:[%s946_s24 + $0x4] ss:$12 sps:$4 sm:$0xff]   ;;  %v849_v6 = vld [vmem:[%s946_s24 + $0x8] ss:$12 sps:$4 sm:$0xff]   ;;  %v852_v8 = vld [vmem:[%s946_s24 + $0x20] ss:$12 sps:$4 sm:$0xff]   ;;  %309 = vmatprep.subr.bf16.mxu0 %v897_v1 }
  0x10   : > { %431 = vrot.lane.b32.xlu0 %v847_v4, %s898_s27  ;;  %v850_v7 = vld [vmem:[%s946_s24 + $0x1c] ss:$12 sps:$4 sm:$0xff]   ;;  %v853_v10 = vld [vmem:[%s946_s24 + $0x38] ss:$12 sps:$4 sm:$0xff]   ;;  %v855_v11 = vld [vmem:[%s946_s24 + $0x34] ss:$12 sps:$4 sm:$0xff]  }
  0x11   : > { %525 = vmatpush1.bf16.msra.mxu1 %v860_v2  ;;  %435 = vrot.lane.b32.xlu1 %v850_v7, %s898_s27  ;;  %v858_v12 = vld [vmem:[%s946_s24 + $0x4c] ss:$12 sps:$4 sm:$0xff]   ;;  %v856_v14 = vld [vmem:[%s946_s24 + $0x50] ss:$12 sps:$4 sm:$0xff]   ;;  %v875_v26 = vld [vmem:[%s1079_s1] sm:$0xff]  }
  0x12   : > { %526 = vmatprep.subr.bf16.mxu1 %v897_v1  ;;  %v879_v19 = vld [vmem:[%s946_s24 + $0x4] ss:$12 sps:$4 sm:$0xff]   ;;  %310 = vmatpush1.bf16.msra.mxu0 %v869_v18  ;;  %v870_v21 = vld [vmem:[%s1079_s1 + $0x28] sm:$0xff]   ;;  %v872_v23 = vld [vmem:[%s1079_s1 + $0x18] sm:$0xff]  }
  0x13   : > { %773 = vmatprep.mubr.msk.bf16.mxu0 %vm294_vm0, %v879_v19  ;;  %311 = vmatprep.subr.bf16.mxu0 %v897_v1  ;;  %v873_v24 = vld [vmem:[%s1079_s1 + $0x10] sm:$0xff]   ;;  %v874_v25 = vld [vmem:[%s1079_s1 + $0x8] sm:$0xff]   ;;  %v876_v27 = vld [vmem:[%s1079_s1 + $0x40] sm:$0xff]  }
  0x14   : > { %433 = vrot.lane.b32.xlu0 %v849_v6, %s898_s27  ;;  %v877_v28 = vld [vmem:[%s946_s24] ss:$12 sps:$4 sm:$0xff]   ;;  %v880_v29 = vld [vmem:[%s946_s24 + $0x1c] ss:$12 sps:$4 sm:$0xff]   ;;  %v882_v30 = vld [vmem:[%s946_s24 + $0x18] ss:$12 sps:$4 sm:$0xff]  }
  0x15   : > { %527 = vmatpush1.bf16.msra.mxu1 %v861_v3  ;;  %437 = vrot.lane.b32.xlu1 %v852_v8, %s898_s27  ;;  %v883_v31 = vld [vmem:[%s946_s24 + $0x34] ss:$12 sps:$4 sm:$0xff]   ;;  %v885_v32 = vld [vmem:[%s946_s24 + $0x30] ss:$12 sps:$4 sm:$0xff]   ;;  %v886_v33 = vld [vmem:[%s946_s24 + $0x4c] ss:$12 sps:$4 sm:$0xff]  }
  0x16   : > { %528 = vmatprep.subr.bf16.mxu1 %v897_v1  ;;  %312 = vmatpush1.bf16.msra.mxu0 %v870_v21  ;;  %v888_v34 = vld [vmem:[%s946_s24 + $0x48] ss:$12 sps:$4 sm:$0xff]   ;;  %s899_s24 = smov 16  }
  0x17   : > { %313 = vmatprep.subr.bf16.mxu0 %v897_v1 }
  0x18   : > { %439 = vrot.lane.b32.xlu0 %v855_v11, %s898_s27 }
  0x19   : > { %529 = vmatpush1.bf16.msra.mxu1 %v862_v5  ;;  %441 = vrot.lane.b32.xlu1 %v853_v10, %s898_s27 }
  0x1a   : > { %530 = vmatprep.subr.bf16.mxu1 %v897_v1  ;;  %314 = vmatpush1.bf16.msra.mxu0 %v871_v22 }
  0x1b   : > { %315 = vmatprep.subr.bf16.mxu0 %v897_v1 }
  0x1c   : > { %443 = vrot.lane.b32.xlu0 %v858_v12, %s898_s27 }
  0x1d   : > { %531 = vmatpush1.bf16.msra.mxu1 %v863_v9  ;;  %445 = vrot.lane.b32.xlu1 %v856_v14, %s898_s27 }
  0x1e   : > { %532 = vmatprep.subr.bf16.mxu1 %v897_v1  ;;  %316 = vmatpush1.bf16.msra.mxu0 %v872_v23 }
  0x1f   : > { %317 = vmatprep.subr.bf16.mxu0 %v897_v1 }
  0x21   : > { %533 = vmatpush1.bf16.msra.mxu1 %v864_v13 }
  0x22   : > { %534 = vmatprep.subr.bf16.mxu1 %v897_v1  ;;  %318 = vmatpush1.bf16.msra.mxu0 %v873_v24 }
  0x23   : > { %319 = vmatprep.subr.bf16.mxu0 %v897_v1 }
  0x25   : > { %535 = vmatpush1.bf16.msra.mxu1 %v865_v15  ;;  %v816_v15 = vld [vmem:[%s1080_s2] ss:$0 sm:$0xff] }
  0x26   : > { %536 = vmatprep.subr.bf16.mxu1 %v897_v1  ;;  %320 = vmatpush1.bf16.msra.mxu0 %v874_v25 }
  0x27   : > { %321 = vmatprep.subr.bf16.mxu0 %v897_v1 }
  0x29   : > { %537 = vmatpush1.bf16.msra.mxu1 %v866_v16 }
  0x2a   : > { %552 = vmatprep.subr.bf16.mxu1 %v897_v1  ;;  %322 = vmatpush1.bf16.msra.mxu0 %v875_v26 }
  0x2b   : > { %337 = vmatprep.subr.bf16.mxu0 %v897_v1 }
  0x2d   : > { %553 = vmatpush2.bf16.msra.mxu1 %v867_v20 }
  0x2e   : > { %338 = vmatpush2.bf16.msra.mxu0 %v876_v27 }
  0x31   : > { %340 = vmatmul.mubr.bf16.vlgmr.msra.gmra.mxu0 %v877_v28 }
  0x32   : > { %774 = vmatprep.mubr.msk.bf16.mxu0 %vm294_vm0, %v880_v29 }
  0x39   : > { %348 = vmatmul.mubr.bf16.gmra.mxu0 %v882_v30 }
  0x3a   : > { %775 = vmatprep.mubr.msk.bf16.mxu0 %vm294_vm0, %v883_v31 }
  0x41   : > { %356 = vmatmul.mubr.bf16.gmra.mxu0 %v885_v32 }
  0x42   : > { %776 = vmatprep.mubr.msk.bf16.mxu0 %vm294_vm0, %v886_v33 }
  0x49   : > { %364 = vmatmul.mubr.bf16.gmra.mxu0 %v888_v34 }
  0x82   : > { %v432_v35 = vpop.permute.xlu0 %431 }
  0x83   : > { %v436_v36 = vpop.permute.xlu1 %435 }
  0x86   : > { %v434_v37 = vpop.permute.xlu0 %433 }
  0x87   : > { %812 = vmatprep.mubr.msk.bf16.mxu1 %vm294_vm0, %v434_v37  ;;  %v448_v38 = vsel %vm447_vm1, %v432_v35, %v434_v37  ;;  %v438_v39 = vpop.permute.xlu1 %437 }
  0x88   : > { %555 = vmatmul.mubr.bf16.vlgmr.msra.gmra.mxu1 %v448_v38  ;;  %v449_v41 = vsel %vm447_vm1, %v436_v36, %v438_v39 }
  0x89   : > { %813 = vmatprep.mubr.msk.bf16.mxu1 %vm294_vm0, %v438_v39 }
  0x8a   : > { %v440_v42 = vpop.permute.xlu0 %439 }
  0x8b   : > { %v442_v40 = vpop.permute.xlu1 %441 }
  0x8c   : > { %v450_v43 = vsel %vm447_vm1, %v440_v42, %v442_v40 }
  0x8e   : > { %v444_v45 = vpop.permute.xlu0 %443 }
  0x8f   : > { %v446_v44 = vpop.permute.xlu1 %445 }
  0x90   : > { %563 = vmatmul.mubr.bf16.gmra.mxu1 %v449_v41  ;;  %v451_v46 = vsel %vm447_vm1, %v444_v45, %v446_v44 }
  0x91   : > { %814 = vmatprep.mubr.msk.bf16.mxu1 %vm294_vm0, %v442_v40 }
  0x98   : > { %571 = vmatmul.mubr.bf16.gmra.mxu1 %v450_v43 }
  0x99   : > { %815 = vmatprep.mubr.msk.bf16.mxu1 %vm294_vm0, %v446_v44 }
  0xa0   : > { %579 = vmatmul.mubr.bf16.gmra.mxu1 %v451_v46 }
  0xf1   : > { %v341_v47 = vpop.f32.mrf.mxu0 }
  0xf3   : > { %v343_v48 = vpop.f32.mrf.mxu0 }
  0xf5   : > { %v344_v49 = vpop.f32.mrf.mxu0 }
  0xf7   : > { %v346_v50 = vpop.f32.mrf.mxu0 }
  0xf9   : > { %v349_v51 = vpop.f32.mrf.mxu0 }
  0xfb   : > { %v351_v52 = vpop.f32.mrf.mxu0 }
  0xfd   : > { %v352_v53 = vpop.f32.mrf.mxu0 }
  0xff   : > { %v354_v54 = vpop.f32.mrf.mxu0 }
 0x101   : > { %v357_v55 = vpop.f32.mrf.mxu0 }
 0x103   : > { %v359_v56 = vpop.f32.mrf.mxu0 }
 0x105   : > { %v360_v58 = vpop.f32.mrf.mxu0 }
 0x107   : > { %v362_v60 = vpop.f32.mrf.mxu0 }
 0x109   : > { %v1036_v62 = vpop.f32.mrf.mxu0 }
 0x10b   : > { %v367_v0 = vpop.f32.mrf.mxu0 }
 0x10d   : > { %v1038_v2 = vpop.f32.mrf.mxu0 }
 0x10f   : > { %v370_v4 = vpop.f32.mrf.mxu0 }
 0x148   : > { %v556_v57 = vpop.f32.mrf.mxu1 }
 0x149   : > { %595 = vrot.lane.b32.xlu0 %v556_v57, %s899_s24 }
 0x14a   : > { %v558_v59 = vpop.f32.mrf.mxu1 }
 0x14c   : > { %v559_v61 = vpop.f32.mrf.mxu1 }
 0x14d   : > { %597 = vrot.lane.b32.xlu1 %v559_v61, %s899_s24 }
 0x14e   : > { %v561_v63 = vpop.f32.mrf.mxu1 }
 0x150   : > { %v564_v1 = vpop.f32.mrf.mxu1 }
 0x151   : > { %599 = vrot.lane.b32.xlu0 %v564_v1, %s899_s24 }
 0x152   : > { %v566_v3 = vpop.f32.mrf.mxu1 }
 0x154   : > { %v567_v5 = vpop.f32.mrf.mxu1 }
 0x155   : > { %601 = vrot.lane.b32.xlu1 %v567_v5, %s899_s24 }
 0x156   : > { %v569_v6 = vpop.f32.mrf.mxu1 }
 0x158   : > { %v572_v7 = vpop.f32.mrf.mxu1 }
 0x159   : > { %603 = vrot.lane.b32.xlu0 %v572_v7, %s899_s24 }
 0x15a   : > { %v574_v8 = vpop.f32.mrf.mxu1 }
 0x15c   : > { %v575_v9 = vpop.f32.mrf.mxu1 }
 0x15d   : > { %605 = vrot.lane.b32.xlu1 %v575_v9, %s899_s24 }
 0x15e   : > { %v577_v10 = vpop.f32.mrf.mxu1 }
 0x160   : > { %v580_v11 = vpop.f32.mrf.mxu1 }
 0x161   : > { %607 = vrot.lane.b32.xlu0 %v580_v11, %s899_s24 }
 0x162   : > { %v582_v12 = vpop.f32.mrf.mxu1 }
 0x164   : > { %v583_v13 = vpop.f32.mrf.mxu1 }
 0x165   : > { %609 = vrot.lane.b32.xlu1 %v583_v13, %s899_s24 }
 0x166   : > { %v585_v14 = vpop.f32.mrf.mxu1 }
 0x1bb   : > { %v596_v16 = vpop.permute.xlu0 %595 }
 0x1bc   : > { %v619_v17 = vsel %vm294_vm0, %v341_v47, %v596_v16 }
 0x1bd   : > { %v634_v18 = vadd.f32 %v816_v15, %v619_v17 }
 0x1bf   : > { %v642_v19 = vmax.f32 %v634_v18, 0.0  ;;  %v598_v20 = vpop.permute.xlu1 %597 }
 0x1c0   : > { %v620_v21 = vsel %vm294_vm0, %v344_v49, %v598_v20 }
 0x1c1   : > { %v827_v22 = vpack.c.bf16 %v642_v19, %v642_v19  ;;  %v635_v23 = vadd.f32 %v816_v15, %v620_v21 }
 0x1c3   : > { %683 = vst.msk [vmem:[%s1048_s10] sm:$0xf] %vm682_vm2, %v827_v22  ;;  %v643_v24 = vmax.f32 %v635_v23, 0.0  ;;  %v600_v25 = vpop.permute.xlu0 %599 }
 0x1c4   : > { %v621_v26 = vsel %vm294_vm0, %v349_v51, %v600_v25 }
 0x1c5   : > { %v828_v27 = vpack.c.bf16 %v643_v24, %v643_v24  ;;  %v636_v28 = vadd.f32 %v816_v15, %v621_v26 }
 0x1c7   : > { %684 = vst.msk [vmem:[%s1048_s10 + $0x4] sm:$0xf] %vm682_vm2, %v828_v27  ;;  %v644_v29 = vmax.f32 %v636_v28, 0.0  ;;  %v602_v30 = vpop.permute.xlu1 %601 }
 0x1c8   : > { %v622_v31 = vsel %vm294_vm0, %v352_v53, %v602_v30 }
 0x1c9   : > { %v829_v32 = vpack.c.bf16 %v644_v29, %v644_v29  ;;  %v637_v33 = vadd.f32 %v816_v15, %v622_v31 }
 0x1cb   : > { %685 = vst.msk [vmem:[%s1048_s10 + $0x8] sm:$0xf] %vm682_vm2, %v829_v32  ;;  %v645_v34 = vmax.f32 %v637_v33, 0.0  ;;  %v604_v35 = vpop.permute.xlu0 %603 }
 0x1cc   : > { %v623_v36 = vsel %vm294_vm0, %v357_v55, %v604_v35 }
 0x1cd   : > { %v830_v37 = vpack.c.bf16 %v645_v34, %v645_v34  ;;  %v638_v38 = vadd.f32 %v816_v15, %v623_v36 }
 0x1cf   : > { %686 = vst.msk [vmem:[%s1048_s10 + $0xc] sm:$0xf] %vm682_vm2, %v830_v37  ;;  %v646_v39 = vmax.f32 %v638_v38, 0.0  ;;  %v606_v40 = vpop.permute.xlu1 %605 }
 0x1d0   : > { %v624_v41 = vsel %vm294_vm0, %v360_v58, %v606_v40 }
 0x1d1   : > { %v831_v42 = vpack.c.bf16 %v646_v39, %v646_v39  ;;  %v639_v43 = vadd.f32 %v816_v15, %v624_v41 }
 0x1d3   : > { %687 = vst.msk [vmem:[%s1048_s10 + $0x10] sm:$0xf] %vm682_vm2, %v831_v42  ;;  %v647_v44 = vmax.f32 %v639_v43, 0.0  ;;  %v608_v45 = vpop.permute.xlu0 %607 }
 0x1d4   : > { %v625_v46 = vsel %vm294_vm0, %v1036_v62, %v608_v45 }
 0x1d5   : > { %v832_v47 = vpack.c.bf16 %v647_v44, %v647_v44  ;;  %v640_v48 = vadd.f32 %v816_v15, %v625_v46 }
 0x1d7   : > { %688 = vst.msk [vmem:[%s1048_s10 + $0x14] sm:$0xf] %vm682_vm2, %v832_v47  ;;  %v648_v49 = vmax.f32 %v640_v48, 0.0  ;;  %v610_v50 = vpop.permute.xlu1 %609 }
 0x1d8   : > { %v626_v51 = vsel %vm294_vm0, %v1038_v2, %v610_v50 }
 0x1d9   : > { %v833_v52 = vpack.c.bf16 %v648_v49, %v648_v49  ;;  %v641_v53 = vadd.f32 %v816_v15, %v626_v51 }
 0x1db   : > { %689 = vst.msk [vmem:[%s1048_s10 + $0x18] sm:$0xf] %vm682_vm2, %v833_v52  ;;  %v649_v54 = vmax.f32 %v641_v53, 0.0 }
 0x1dd   : > { %v834_v55 = vpack.c.bf16 %v649_v54, %v649_v54 }
 0x1df   : > { %690 = vst.msk [vmem:[%s1048_s10 + $0x1c] sm:$0xf] %vm682_vm2, %v834_v55 }
 0x1e0 PF: > { %s13_s12 = sadd.s32 1, %s895_s12  }
 0x1e1   : > { %p10_p4 = scmp.ge.s32.totalorder %s13_s12, 4  }
 0x1e3   :  { %12 = sbr.rel (!%p10_p4) target bundleno = 1 (0x1), region = 63 }

// kernel: resnext_forward.24
= control target key start
LH: loop header
LB: loop body
LE: loop exit
PB: predicated region body
PF: predicated region fallthrough
CT: control target
= control target key end

     0   :  { %s541_s12 = smov 0   ;;  %s602_s0 = inlined_call_operand.vmem [shape: bf16[128,64], index: 0, kind: input, shape index: {}]   ;;  %s603_s1 = inlined_call_operand.vmem [shape: bf16[1,64,64], index: 1, kind: input, shape index: {}]   ;;  %s604_s2 = inlined_call_operand.vmem [shape: f32[1,64], index: 2, kind: input, shape index: {}]   ;;  %s605_s3 = inlined_call_operand.vmem [shape: bf16[128,64], index: 3, kind: output, shape index: {}]  }
   0x1 LB: > { %s425_s13 = sadd.s32 4294967295, %s519_s12   ;;  %p429_p0 = scmp.ge.s32.totalorder %s519_s12, 1  ;;  %s519_s12 = sphi %s541_s12, %s13_s12  }
   0x2   : > { %p138_p1 = scmp.lt.s32.totalorder %s519_s12, 3 }
   0x4   : > { %p139_p2 = pnand %p429_p0, %p138_p1 }
   0x5   : > { %s430_s16 = sshll.u32 (!%p139_p2), %s425_s13, 3 }
   0x6   : > { %142 = sbr.rel (%p139_p2) target bundleno = 235 (0xeb), region = 32  ;;  %p163_p3 = scmp.lt.s32.totalorder (!%p139_p2), %s430_s16, 15 }
   0xb   : > { %v505_v0 = vld [vmem:[%s603_s1 + $0x18] sm:$0xff]   ;;  %v506_v1 = vld [vmem:[%s603_s1 + $0x10] sm:$0xff]   ;;  %s607_s16 = smov (!%p163_p3, %s430_s16), 15  ;;  %v507_v2 = vld [vmem:[%s603_s1 + $0x8] sm:$0xff]   ;;  %vm242_vm0 = vcmask 523264   ;;  %vm360_vm1 = vcmask 519168  }
   0xc   : > { %473 = vmatprep.subr.bf16.mxu0 %v505_v0  ;;  %489 = vmatprep.subr.bf16.mxu1 %v505_v0  ;;  %s431_s21 = sshll.u32 %s607_s16, 2  ;;  %v508_v3 = vld [vmem:[%s603_s1] sm:$0xff]  }
   0xd   : > { %474 = vmatpush3.bf16.msra.mxu0 %v505_v0  ;;  %493 = vmatpush3.bf16.msra.mxu1 %v505_v0  ;;  %s166_s26 = scalar_lea.vmem %s602_s0, %s431_s21  ;;  %v434_v8 = vld [vmem:[%s604_s2] ss:$0 sm:$0xff]  ;;  %s581_s4 = scalar_lea.vmem %s605_s3, %s431_s21 }
   0xe   : > { %475 = vmatprep.subr.bf16.mxu0 %v506_v1  ;;  %490 = vmatprep.subr.bf16.mxu1 %v506_v1  ;;  %v509_v4 = vld [vmem:[%s166_s26] sm:$0xff]   ;;  %v510_v5 = vld [vmem:[%s166_s26 + $0x10] sm:$0xff]   ;;  %v511_v6 = vld [vmem:[%s166_s26 + $0x8] sm:$0xff]  }
   0xf   : > { %481 = vmatprep.mubr.msk.bf16.mxu0 %vm242_vm0, %v509_v4  ;;  %485 = vmatprep.mubr.msk.bf16.mxu1 %vm242_vm0, %v510_v5  ;;  %v512_v7 = vld [vmem:[%s166_s26 + $0x18] sm:$0xff]  }
  0x11   : > { %476 = vmatpush3.bf16.msra.mxu0 %v506_v1  ;;  %494 = vmatpush3.bf16.msra.mxu1 %v506_v1 }
  0x12   : > { %477 = vmatprep.subr.bf16.mxu0 %v507_v2  ;;  %491 = vmatprep.subr.bf16.mxu1 %v507_v2 }
  0x15   : > { %478 = vmatpush3.bf16.msra.mxu0 %v507_v2  ;;  %495 = vmatpush3.bf16.msra.mxu1 %v507_v2 }
  0x16   : > { %479 = vmatprep.subr.bf16.mxu0 %v508_v3  ;;  %492 = vmatprep.subr.bf16.mxu1 %v508_v3 }
  0x19   : > { %480 = vmatpush3.bf16.msra.mxu0 %v508_v3  ;;  %496 = vmatpush3.bf16.msra.mxu1 %v508_v3 }
  0x1c   : > { %482 = vmatmul.mubr.msk.bf16.vlgmr.msra.gmra.mxu0 %vm242_vm0, %v511_v6  ;;  %486 = vmatmul.mubr.msk.bf16.vlgmr.msra.gmra.mxu1 %vm242_vm0, %v512_v7 }
  0xdc   : > { %v483_v9 = vpop.f32.mrf.mxu0  ;;  %v487_v10 = vpop.f32.mrf.mxu1 }
  0xdd   : > { %v298_v11 = vadd.f32 %v483_v9, %v434_v8  ;;  %v314_v12 = vadd.f32 %v487_v10, %v434_v8 }
  0xde   : > { %v289_v13 = vpop.f32.mrf.mxu0  ;;  %v305_v14 = vpop.f32.mrf.mxu1 }
  0xdf   : > { %v322_v15 = vmax.f32 %v298_v11, 0.0  ;;  %v326_v16 = vmax.f32 %v314_v12, 0.0  ;;  %v290_v17 = vadd.f32 %v434_v8, %v289_v13  ;;  %v306_v18 = vadd.f32 %v434_v8, %v305_v14 }
  0xe0   : > { %v484_v19 = vpop.f32.mrf.mxu0  ;;  %v488_v20 = vpop.f32.mrf.mxu1 }
  0xe1   : > { %v459_v21 = vpack.c.bf16 %v322_v15, %v322_v15  ;;  %v463_v22 = vpack.c.bf16 %v326_v16, %v326_v16  ;;  %v320_v23 = vmax.f32 %v290_v17, 0.0  ;;  %v324_v24 = vmax.f32 %v306_v18, 0.0 }
  0xe2   : > { %v301_v25 = vadd.f32 %v484_v19, %v434_v8  ;;  %v317_v26 = vadd.f32 %v488_v20, %v434_v8  ;;  %v292_v27 = vpop.f32.mrf.mxu0  ;;  %v308_v28 = vpop.f32.mrf.mxu1 }
  0xe3   : > { %363 = vst.msk [vmem:[%s581_s4 + $0x8] sm:$0xf] %vm360_vm1, %v459_v21  ;;  %367 = vst.msk [vmem:[%s581_s4 + $0x18] sm:$0xf] %vm360_vm1, %v463_v22  ;;  %v457_v29 = vpack.c.bf16 %v320_v23, %v320_v23  ;;  %v461_v30 = vpack.c.bf16 %v324_v24, %v324_v24  ;;  %v293_v31 = vadd.f32 %v434_v8, %v292_v27 }
  0xe4   : > { %v309_v32 = vadd.f32 %v434_v8, %v308_v28  ;;  %v323_v33 = vmax.f32 %v301_v25, 0.0  ;;  %v327_v34 = vmax.f32 %v317_v26, 0.0 }
  0xe5   : > { %361 = vst.msk [vmem:[%s581_s4] sm:$0xf] %vm360_vm1, %v457_v29  ;;  %365 = vst.msk [vmem:[%s581_s4 + $0x10] sm:$0xf] %vm360_vm1, %v461_v30  ;;  %v321_v35 = vmax.f32 %v293_v31, 0.0 }
  0xe6   : > { %v325_v36 = vmax.f32 %v309_v32, 0.0  ;;  %v460_v37 = vpack.c.bf16 %v323_v33, %v323_v33  ;;  %v464_v38 = vpack.c.bf16 %v327_v34, %v327_v34 }
  0xe7   : > { %v458_v39 = vpack.c.bf16 %v321_v35, %v321_v35 }
  0xe8   : > { %v462_v40 = vpack.c.bf16 %v325_v36, %v325_v36  ;;  %364 = vst.msk [vmem:[%s581_s4 + $0xc] sm:$0xf] %vm360_vm1, %v460_v37  ;;  %368 = vst.msk [vmem:[%s581_s4 + $0x1c] sm:$0xf] %vm360_vm1, %v464_v38 }
  0xe9   : > { %362 = vst.msk [vmem:[%s581_s4 + $0x4] sm:$0xf] %vm360_vm1, %v458_v39 }
  0xea   : > { %366 = vst.msk [vmem:[%s581_s4 + $0x14] sm:$0xf] %vm360_vm1, %v462_v40 }
  0xeb PF: > { %s13_s12 = sadd.s32 1, %s519_s12  }
  0xec   : > { %p10_p4 = scmp.ge.s32.totalorder %s13_s12, 4  }
  0xee   :  { %12 = sbr.rel (!%p10_p4) target bundleno = 1 (0x1), region = 62 }

// kernel: resnext_forward.25
= control target key start
LH: loop header
LB: loop body
LE: loop exit
PB: predicated region body
PF: predicated region fallthrough
CT: control target
= control target key end

     0   :  { %s1024_s12 = smov 0   ;;  %s1176_s0 = inlined_call_operand.vmem [shape: bf16[32,576], index: 0, kind: input, shape index: {}]   ;;  %s1177_s1 = inlined_call_operand.vmem [shape: bf16[2,288,32], index: 1, kind: input, shape index: {}]   ;;  %s1178_s2 = inlined_call_operand.vmem [shape: f32[1,64], index: 2, kind: input, shape index: {}]   ;;  %s1179_s3 = inlined_call_operand.vmem [shape: bf16[32,64], index: 3, kind: output, shape index: {}]  }
   0x1 LB: > { %s773_s13 = sadd.s32 4294967295, %s998_s12   ;;  %p777_p0 = scmp.ge.s32.totalorder %s998_s12, 1  ;;  %s998_s12 = sphi %s1024_s12, %s13_s12  }
   0x2   : > { %p139_p1 = scmp.lt.s32.totalorder %s998_s12, 3 }
   0x4   : > { %p140_p2 = pnand %p777_p0, %p139_p1 }
   0x5   : > { %s778_s14 = sshll.u32 (!%p140_p2), %s773_s13, 1  ;;  %s1002_s6 = smov (!%p140_p2), 96  }
   0x6   : > { %143 = sbr.rel (%p140_p2) target bundleno = 463 (0x1cf), region = 32  ;;  %p165_p3 = scmp.lt.s32.totalorder (!%p140_p2), %s778_s14, 3 }
   0x7   : > { %s1003_s18 = smov (!%p140_p2), 32  }
   0xb   : > { %v952_v0 = vld [vmem:[%s1177_s1 + $0x78] sm:$0xff]   ;;  %s1181_s14 = smov (!%p165_p3, %s778_s14), 3  ;;  %v954_v2 = vld [vmem:[%s1177_s1 + $0x70] sm:$0xff]   ;;  %v1000_v3 = vmov 0.0   ;;  %v956_v5 = vld [vmem:[%s1177_s1 + $0x68] sm:$0xff]   ;;  %vm1001_vm0 = vmmov 0  }
   0xc   : > { %v953_v1 = vld [vmem:[%s1177_s1 + $0x38] sm:$0xff]   ;;  %869 = vmatprep.subr.bf16.mxu0 %v952_v0  ;;  %919 = vmatprep.subr.bf16.mxu1 %v1000_v3  ;;  %v955_v4 = vld [vmem:[%s1177_s1 + $0x30] sm:$0xff]   ;;  %s935_s23 = smul.u32 20, %s1181_s14  ;;  %v957_v6 = vld [vmem:[%s1177_s1 + $0x28] sm:$0xff]   ;;  %vm341_vm1 = vcmask 261120   ;;  %vm487_vm2 = vcmask 785408  }
   0xd   : > { %870 = vmatpush3.bf16.msra.mxu0 %v953_v1  ;;  %923 = vmatprep.mubr.msk.bf16.mxu1 %vm1001_vm0, %v1000_v3  ;;  %v958_v7 = vld [vmem:[%s1177_s1 + $0x60] sm:$0xff]   ;;  %v960_v12 = vld [vmem:[%s1177_s1 + $0x58] sm:$0xff]   ;;  %v962_v14 = vld [vmem:[%s1177_s1 + $0x50] sm:$0xff]   ;;  %s781_s21 = sshll.u32 %s1181_s14, 2  ;;  %vm714_vm3 = vcmask 519168  }
   0xe   : > { %871 = vmatprep.subr.bf16.mxu0 %v954_v2  ;;  %s1059_s30 = scalar_lea.vmem %s1176_s0, %s935_s23  ;;  %v959_v11 = vld [vmem:[%s1177_s1 + $0x20] sm:$0xff]   ;;  %v961_v13 = vld [vmem:[%s1177_s1 + $0x18] sm:$0xff]   ;;  %v966_v15 = vld [vmem:[%s1177_s1 + $0x88] sm:$0xff]   ;;  %s175_s23 = scalar_lea.vmem %s1179_s3, %s781_s21 }
   0xf   : > { %v948_v8 = vld [vmem:[%s1059_s30 + $0xc] ss:$20 sps:$4 sm:$0xff]   ;;  %v950_v9 = vld [vmem:[%s1059_s30 + $0x8] ss:$20 sps:$4 sm:$0xff]   ;;  %v951_v10 = vld [vmem:[%s1059_s30 + $0x10] ss:$20 sps:$4 sm:$0xff]   ;;  %920 = vmatpush3.bf16.msra.mxu1 %v966_v15 }
  0x10   : > { %483 = vrot.lane.b32.xlu0 %v948_v8, %s1002_s6  ;;  %481 = vrot.lane.b32.xlu1 %v950_v9, %s1002_s6  ;;  %v963_v16 = vld [vmem:[%s1177_s1 + $0x10] sm:$0xff]   ;;  %v964_v17 = vld [vmem:[%s1177_s1 + $0x48] sm:$0xff]  }
  0x11   : > { %872 = vmatpush3.bf16.msra.mxu0 %v955_v4  ;;  %921 = vmatprep.subr.bf16.mxu1 %v1000_v3  ;;  %v971_v18 = vld [vmem:[%s1059_s30 + $0x4] ss:$20 sps:$4 sm:$0xff]   ;;  %v965_v20 = vld [vmem:[%s1177_s1 + $0x8] sm:$0xff]   ;;  %v969_v29 = vld [vmem:[%s1059_s30] ss:$20 sps:$4 sm:$0xff]  }
  0x12   : > { %873 = vmatprep.subr.bf16.mxu0 %v956_v5  ;;  %v972_v19 = vld [vmem:[%s1177_s1 + $0x80] sm:$0xff]   ;;  %377 = vmatprep.mubr.bf16.mxu0 %v971_v18  ;;  %v973_v21 = vld [vmem:[%s1059_s30 + $0x8] ss:$20 sps:$4 sm:$0xff]   ;;  %v980_v31 = vld [vmem:[%s1177_s1 + $0xf0] sm:$0xff]  }
  0x13   : > { %v967_v22 = vld [vmem:[%s1177_s1 + $0x40] sm:$0xff]   ;;  %922 = vmatpush3.bf16.msra.mxu1 %v972_v19  ;;  %v974_v23 = vld [vmem:[%s1177_s1 + $0x108] sm:$0xff]   ;;  %v978_v28 = vld [vmem:[%s1177_s1 + $0xf8] sm:$0xff]  }
  0x14   : > { %485 = vrot.lane.b32.xlu0 %v951_v10, %s1002_s6  ;;  %v975_v24 = vld [vmem:[%s1177_s1 + $0xc8] sm:$0xff]   ;;  %894 = vmatprep.subr.bf16.mxu1 %v974_v23  ;;  %v976_v25 = vld [vmem:[%s1177_s1 + $0x100] sm:$0xff]   ;;  %v979_v30 = vld [vmem:[%s1177_s1 + $0xb8] sm:$0xff]  }
  0x15   : > { %874 = vmatpush3.bf16.msra.mxu0 %v957_v6  ;;  %v968_v26 = vld [vmem:[%s1177_s1] sm:$0xff]   ;;  %v981_v32 = vld [vmem:[%s1177_s1 + $0xb0] sm:$0xff]   ;;  %v986_v33 = vld [vmem:[%s1177_s1 + $0x118] sm:$0xff]  }
  0x16   : > { %875 = vmatprep.subr.bf16.mxu0 %v958_v7  ;;  %924 = vmatmul.mubr.msk.bf16.vlgmr.msra.gmra.mxu1 %vm341_vm1, %v973_v21  ;;  %v977_v27 = vld [vmem:[%s1177_s1 + $0xc0] sm:$0xff]   ;;  %v982_v34 = vld [vmem:[%s1177_s1 + $0xe8] sm:$0xff]   ;;  %v989_v35 = vld [vmem:[%s1177_s1 + $0x110] sm:$0xff]  }
  0x17   : > { %895 = vmatpush3.bf16.msra.mxu1 %v975_v24  ;;  %v983_v36 = vld [vmem:[%s1177_s1 + $0xa8] sm:$0xff]   ;;  %v984_v37 = vld [vmem:[%s1177_s1 + $0xe0] sm:$0xff]   ;;  %v987_v39 = vld [vmem:[%s1177_s1 + $0xd8] sm:$0xff]  }
  0x18   : > { %896 = vmatprep.subr.bf16.mxu1 %v976_v25  ;;  %v985_v38 = vld [vmem:[%s1177_s1 + $0xa0] sm:$0xff]   ;;  %v988_v40 = vld [vmem:[%s1177_s1 + $0x98] sm:$0xff]   ;;  %v990_v41 = vld [vmem:[%s1177_s1 + $0xd0] sm:$0xff]  }
  0x19   : > { %876 = vmatpush3.bf16.msra.mxu0 %v959_v11  ;;  %v991_v42 = vld [vmem:[%s1177_s1 + $0x90] sm:$0xff]   ;;  %v862_v8 = vld [vmem:[%s1178_s2] ss:$0 sm:$0xff] }
  0x1a   : > { %877 = vmatprep.subr.bf16.mxu0 %v960_v12 }
  0x1b   : > { %897 = vmatpush3.bf16.msra.mxu1 %v977_v27 }
  0x1c   : > { %898 = vmatprep.subr.bf16.mxu1 %v978_v28 }
  0x1d   : > { %878 = vmatpush3.bf16.msra.mxu0 %v961_v13 }
  0x1e   : > { %879 = vmatprep.subr.bf16.mxu0 %v962_v14 }
  0x1f   : > { %899 = vmatpush3.bf16.msra.mxu1 %v979_v30 }
  0x20   : > { %900 = vmatprep.subr.bf16.mxu1 %v980_v31 }
  0x21   : > { %880 = vmatpush3.bf16.msra.mxu0 %v963_v16 }
  0x22   : > { %881 = vmatprep.subr.bf16.mxu0 %v964_v17 }
  0x23   : > { %901 = vmatpush3.bf16.msra.mxu1 %v981_v32 }
  0x24   : > { %902 = vmatprep.subr.bf16.mxu1 %v982_v34 }
  0x25   : > { %882 = vmatpush3.bf16.msra.mxu0 %v965_v20 }
  0x26   : > { %883 = vmatprep.subr.bf16.mxu0 %v967_v22 }
  0x27   : > { %903 = vmatpush3.bf16.msra.mxu1 %v983_v36 }
  0x28   : > { %904 = vmatprep.subr.bf16.mxu1 %v984_v37 }
  0x29   : > { %884 = vmatpush3.bf16.msra.mxu0 %v968_v26 }
  0x2a   : > { %927 = vmatprep.subr.bf16.mxu0 %v1000_v3 }
  0x2b   : > { %905 = vmatpush3.bf16.msra.mxu1 %v985_v38 }
  0x2c   : > { %378 = vmatmul.mubr.bf16.vlgmr.msra.gmra.mxu0 %v969_v29  ;;  %906 = vmatprep.subr.bf16.mxu1 %v987_v39 }
  0x2d   : > { %931 = vmatprep.mubr.msk.bf16.mxu0 %vm1001_vm0, %v1000_v3  ;;  %928 = vmatpush3.bf16.msra.mxu0 %v986_v33 }
  0x2e   : > { %929 = vmatprep.subr.bf16.mxu0 %v1000_v3 }
  0x2f   : > { %907 = vmatpush3.bf16.msra.mxu1 %v988_v40 }
  0x30   : > { %908 = vmatprep.subr.bf16.mxu1 %v990_v41 }
  0x31   : > { %930 = vmatpush3.bf16.msra.mxu0 %v989_v35 }
  0x33   : > { %909 = vmatpush3.bf16.msra.mxu1 %v991_v42 }
  0x82   : > { %v484_v43 = vpop.permute.xlu0 %483  ;;  %v482_v44 = vpop.permute.xlu1 %481 }
  0x83   : > { %v488_v47 = vsel %vm487_vm2, %v482_v44, %v484_v43 }
  0x86   : > { %v486_v45 = vpop.permute.xlu0 %485 }
  0x87   : > { %932 = vmatmul.mubr.msk.bf16.vlgmr.msra.gmra.mxu0 %vm341_vm1, %v486_v45  ;;  %v489_v46 = vsel %vm487_vm2, %v484_v43, %v486_v45 }
  0x88   : > { %635 = vmatprep.mubr.bf16.mxu1 %v489_v46 }
  0x89   : > { %636 = vmatmul.mubr.bf16.vlgmr.msra.gmra.mxu1 %v488_v47 }
  0xd6   : > { %v420_v48 = vpop.f32.mrf.mxu1 }
  0xd8   : > { %v925_v49 = vpop.f32.mrf.mxu1 }
  0xda   : > { %v423_v50 = vpop.f32.mrf.mxu1 }
  0xdc   : > { %v926_v51 = vpop.f32.mrf.mxu1 }
  0xec   : > { %v885_v52 = vpop.f32.mrf.mxu0 }
  0xee   : > { %v886_v53 = vpop.f32.mrf.mxu0 }
  0xef   : > { %v887_v54 = vadd.f32 %v886_v53, %v885_v52 }
  0xf0   : > { %v888_v55 = vpop.f32.mrf.mxu0 }
  0xf1   : > { %v421_v56 = vadd.f32 %v887_v54, %v420_v48 }
  0xf2   : > { %v889_v57 = vpop.f32.mrf.mxu0 }
  0xf3   : > { %v890_v58 = vadd.f32 %v889_v57, %v888_v55 }
  0xf5   : > { %v424_v59 = vadd.f32 %v890_v58, %v423_v50 }
 0x147   : > { %v678_v60 = vpop.f32.mrf.mxu0 }
 0x149   : > { %v910_v61 = vpop.f32.mrf.mxu1  ;;  %v933_v62 = vpop.f32.mrf.mxu0 }
 0x14b   : > { %v911_v63 = vpop.f32.mrf.mxu1  ;;  %v681_v0 = vpop.f32.mrf.mxu0 }
 0x14c   : > { %v912_v1 = vadd.f32 %v911_v63, %v910_v61 }
 0x14d   : > { %v913_v2 = vpop.f32.mrf.mxu1  ;;  %v934_v3 = vpop.f32.mrf.mxu0 }
 0x14e   : > { %v679_v4 = vadd.f32 %v912_v1, %v678_v60 }
 0x14f   : > { %v914_v5 = vpop.f32.mrf.mxu1 }
 0x150   : > { %v915_v6 = vadd.f32 %v914_v5, %v913_v2  ;;  %687 = vrot.lane.b32.xlu1 %v679_v4, %s1003_s18 }
 0x152   : > { %v682_v7 = vadd.f32 %v915_v6, %v681_v0 }
 0x154   : > { %689 = vrot.lane.b32.xlu0 %v682_v7, %s1003_s18 }
 0x1c2   : > { %v688_v9 = vpop.permute.xlu1 %687 }
 0x1c3   : > { %v693_v10 = vsel %vm341_vm1, %v421_v56, %v688_v9 }
 0x1c4   : > { %v702_v11 = vadd.f32 %v862_v8, %v693_v10 }
 0x1c6   : > { %v704_v12 = vmax.f32 %v702_v11, 0.0  ;;  %v690_v13 = vpop.permute.xlu0 %689 }
 0x1c7   : > { %v694_v14 = vsel %vm341_vm1, %v424_v59, %v690_v13 }
 0x1c8   : > { %v867_v15 = vpack.c.bf16 %v704_v12, %v704_v12  ;;  %v703_v16 = vadd.f32 %v862_v8, %v694_v14 }
 0x1ca   : > { %715 = vst.msk [vmem:[%s175_s23] sm:$0xf] %vm714_vm3, %v867_v15  ;;  %v705_v17 = vmax.f32 %v703_v16, 0.0 }
 0x1cc   : > { %v868_v18 = vpack.c.bf16 %v705_v17, %v705_v17 }
 0x1ce   : > { %716 = vst.msk [vmem:[%s175_s23 + $0x4] sm:$0xf] %vm714_vm3, %v868_v18 }
 0x1cf PF: > { %s13_s12 = sadd.s32 1, %s998_s12  }
 0x1d0   : > { %p10_p4 = scmp.ge.s32.totalorder %s13_s12, 4  }
 0x1d2   :  { %12 = sbr.rel (!%p10_p4) target bundleno = 1 (0x1), region = 63 }

// kernel: resnext_forward.27
= control target key start
LH: loop header
LB: loop body
LE: loop exit
PB: predicated region body
PF: predicated region fallthrough
CT: control target
= control target key end

     0   :  { %s501_s15 = smov 0   ;;  %s536_s0 = inlined_call_operand.vmem [shape: bf16[32,64], index: 0, kind: input, shape index: {}]   ;;  %s537_s1 = inlined_call_operand.vmem [shape: bf16[1,64,128], index: 1, kind: input, shape index: {}]   ;;  %s538_s2 = inlined_call_operand.vmem [shape: f32[1,128], index: 2, kind: input, shape index: {}]   ;;  %s539_s3 = inlined_call_operand.vmem [shape: bf16[32,128], index: 3, kind: input, shape index: {}]   ;;  %s540_s4 = inlined_call_operand.vmem [shape: bf16[32,128], index: 4, kind: output, shape index: {}]  }
   0x1 LB: > { %s401_s16 = sadd.s32 4294967295, %s472_s15   ;;  %p405_p0 = scmp.ge.s32.totalorder %s472_s15, 1  ;;  %s472_s15 = sphi %s501_s15, %s14_s15  }
   0x2   : > { %p174_p1 = scmp.lt.s32.totalorder %s472_s15, 3 }
   0x4   : > { %p175_p2 = pnand %p405_p0, %p174_p1 }
   0x5   : > { %s406_s21 = sshll.u32 (!%p175_p2), %s401_s16, 1 }
   0x6   : > { %178 = sbr.rel (%p175_p2) target bundleno = 234 (0xea), region = 36  ;;  %p206_p3 = scmp.lt.s32.totalorder (!%p175_p2), %s406_s21, 3 }
   0xb   : > { %v461_v0 = vld [vmem:[%s537_s1 + $0x18] sm:$0xff]   ;;  %v474_v1 = vmov 0.0   ;;  %v462_v2 = vld [vmem:[%s537_s1 + $0x10] sm:$0xff]   ;;  %vm475_vm0 = vmmov 0   ;;  %s542_s21 = smov (!%p206_p3, %s406_s21), 3  ;;  %v463_v3 = vld [vmem:[%s537_s1 + $0x8] sm:$0xff]  }
   0xc   : > { %439 = vmatprep.subr.bf16.mxu0 %v474_v1  ;;  %447 = vmatprep.mubr.msk.bf16.mxu0 %vm475_vm0, %v474_v1  ;;  %s407_s24 = sshll.u32 %s542_s21, 2  ;;  %v464_v4 = vld [vmem:[%s537_s1] sm:$0xff]   ;;  %vm270_vm1 = vcmask 523264  }
   0xd   : > { %440 = vmatpush3.bf16.msra.mxu0 %v461_v0  ;;  %s209_s27 = scalar_lea.vmem %s536_s0, %s407_s24  ;;  %s215_s6 = scalar_lea.vmem %s539_s3, %s407_s24  ;;  %v412_v6 = vld [vmem:[%s538_s2] ss:$0 sm:$0xff] }
   0xe   : > { %441 = vmatprep.subr.bf16.mxu0 %v474_v1  ;;  %v465_v5 = vld [vmem:[%s209_s27] sm:$0xff]   ;;  %s221_s11 = scalar_lea.vmem %s540_s4, %s407_s24 }
   0xf   : > { %v426_v7 = vld [vmem:[%s215_s6] sm:$0xff]  }
  0x10   : > { %v427_v10 = vunpack.c.l.bf16 %v426_v7  ;;  %v428_v12 = vunpack.c.h.bf16 %v426_v7 }
  0x11   : > { %442 = vmatpush3.bf16.msra.mxu0 %v462_v2 }
  0x12   : > { %443 = vmatprep.subr.bf16.mxu0 %v474_v1 }
  0x15   : > { %444 = vmatpush3.bf16.msra.mxu0 %v463_v3 }
  0x16   : > { %445 = vmatprep.subr.bf16.mxu0 %v474_v1 }
  0x19   : > { %446 = vmatpush3.bf16.msra.mxu0 %v464_v4 }
  0x1c   : > { %448 = vmatmul.mubr.msk.bf16.vlgmr.msra.gmra.mxu0 %vm270_vm1, %v465_v5 }
  0xdc   : > { %v308_v8 = vpop.f32.mrf.mxu0 }
  0xdd   : > { %v309_v9 = vadd.f32 %v412_v6, %v308_v8 }
  0xde   : > { %v449_v11 = vpop.f32.mrf.mxu0 }
  0xdf   : > { %v319_v14 = vadd.f32 %v427_v10, %v309_v9 }
  0xe0   : > { %v311_v13 = vpop.f32.mrf.mxu0 }
  0xe1   : > { %v312_v15 = vadd.f32 %v412_v6, %v311_v13  ;;  %v321_v18 = vmax.f32 %v319_v14, 0.0 }
  0xe2   : > { %v450_v16 = vpop.f32.mrf.mxu0 }
  0xe3   : > { %v320_v17 = vadd.f32 %v428_v12, %v312_v15 }
  0xe5   : > { %v322_v19 = vmax.f32 %v320_v17, 0.0 }
  0xe7   : > { %v432_v20 = vpack.c.bf16 %v322_v19, %v321_v18 }
  0xe9   : > { %433 = vst [vmem:[%s221_s11] sm:$0xff] %v432_v20  }
  0xea PF: > { %s14_s15 = sadd.s32 1, %s472_s15  }
  0xeb   : > { %p11_p4 = scmp.ge.s32.totalorder %s14_s15, 4  }
  0xed   :  { %13 = sbr.rel (!%p11_p4) target bundleno = 1 (0x1), region = 69 }

// kernel: resnext_forward.26
= control target key start
LH: loop header
LB: loop body
LE: loop exit
PB: predicated region body
PF: predicated region fallthrough
CT: control target
= control target key end

     0   :  { %s421_s12 = smov 0   ;;  %s453_s0 = inlined_call_operand.vmem [shape: bf16[32,64], index: 0, kind: input, shape index: {}]   ;;  %s454_s1 = inlined_call_operand.vmem [shape: bf16[1,64,128], index: 1, kind: input, shape index: {}]   ;;  %s455_s2 = inlined_call_operand.vmem [shape: f32[1,128], index: 2, kind: input, shape index: {}]   ;;  %s456_s3 = inlined_call_operand.vmem [shape: bf16[32,128], index: 3, kind: output, shape index: {}]  }
   0x1 LB: > { %s332_s13 = sadd.s32 4294967295, %s397_s12   ;;  %p336_p0 = scmp.ge.s32.totalorder %s397_s12, 1  ;;  %s397_s12 = sphi %s421_s12, %s13_s12  }
   0x2   : > { %p138_p1 = scmp.lt.s32.totalorder %s397_s12, 3 }
   0x4   : > { %p139_p2 = pnand %p336_p0, %p138_p1 }
   0x5   : > { %s337_s18 = sshll.u32 (!%p139_p2), %s332_s13, 1 }
   0x6   : > { %142 = sbr.rel (%p139_p2) target bundleno = 230 (0xe6), region = 32  ;;  %p163_p3 = scmp.lt.s32.totalorder (!%p139_p2), %s337_s18, 3 }
   0xb   : > { %v386_v0 = vld [vmem:[%s454_s1 + $0x18] sm:$0xff]   ;;  %v399_v1 = vmov 0.0   ;;  %v387_v2 = vld [vmem:[%s454_s1 + $0x10] sm:$0xff]   ;;  %vm400_vm0 = vmmov 0   ;;  %s458_s18 = smov (!%p163_p3, %s337_s18), 3  ;;  %v388_v3 = vld [vmem:[%s454_s1 + $0x8] sm:$0xff]  }
   0xc   : > { %364 = vmatprep.subr.bf16.mxu0 %v399_v1  ;;  %372 = vmatprep.mubr.msk.bf16.mxu0 %vm400_vm0, %v399_v1  ;;  %s338_s21 = sshll.u32 %s458_s18, 2  ;;  %v389_v4 = vld [vmem:[%s454_s1] sm:$0xff]   ;;  %vm221_vm1 = vcmask 523264  }
   0xd   : > { %365 = vmatpush3.bf16.msra.mxu0 %v386_v0  ;;  %s166_s24 = scalar_lea.vmem %s453_s0, %s338_s21  ;;  %v341_v7 = vld [vmem:[%s455_s2] ss:$0 sm:$0xff]  ;;  %s172_s4 = scalar_lea.vmem %s456_s3, %s338_s21 }
   0xe   : > { %366 = vmatprep.subr.bf16.mxu0 %v399_v1  ;;  %v390_v5 = vld [vmem:[%s166_s24] sm:$0xff]  }
  0x11   : > { %367 = vmatpush3.bf16.msra.mxu0 %v387_v2 }
  0x12   : > { %368 = vmatprep.subr.bf16.mxu0 %v399_v1 }
  0x15   : > { %369 = vmatpush3.bf16.msra.mxu0 %v388_v3 }
  0x16   : > { %370 = vmatprep.subr.bf16.mxu0 %v399_v1 }
  0x19   : > { %371 = vmatpush3.bf16.msra.mxu0 %v389_v4 }
  0x1c   : > { %373 = vmatmul.mubr.msk.bf16.vlgmr.msra.gmra.mxu0 %vm221_vm1, %v390_v5 }
  0xdc   : > { %v259_v6 = vpop.f32.mrf.mxu0 }
  0xdd   : > { %v260_v10 = vadd.f32 %v341_v7, %v259_v6 }
  0xde   : > { %v374_v8 = vpop.f32.mrf.mxu0 }
  0xe0   : > { %v262_v9 = vpop.f32.mrf.mxu0 }
  0xe1   : > { %v263_v11 = vadd.f32 %v341_v7, %v262_v9 }
  0xe2   : > { %v375_v12 = vpop.f32.mrf.mxu0 }
  0xe3   : > { %v357_v13 = vpack.c.bf16 %v263_v11, %v260_v10 }
  0xe5   : > { %358 = vst [vmem:[%s172_s4] sm:$0xff] %v357_v13  }
  0xe6 PF: > { %s13_s12 = sadd.s32 1, %s397_s12  }
  0xe7   : > { %p10_p4 = scmp.ge.s32.totalorder %s13_s12, 4  }
  0xe9   :  { %12 = sbr.rel (!%p10_p4) target bundleno = 1 (0x1), region = 62 }

// kernel: resnext_forward.28
= control target key start
LH: loop header
LB: loop body
LE: loop exit
PB: predicated region body
PF: predicated region fallthrough
CT: control target
= control target key end

     0   :  { %s471_s12 = smov 0   ;;  %s522_s0 = inlined_call_operand.vmem [shape: bf16[32,128], index: 0, kind: input, shape index: {}]   ;;  %s523_s1 = inlined_call_operand.vmem [shape: bf16[1,128,128], index: 1, kind: input, shape index: {}]   ;;  %s524_s2 = inlined_call_operand.vmem [shape: f32[1,128], index: 2, kind: input, shape index: {}]   ;;  %s525_s3 = inlined_call_operand.vmem [shape: bf16[32,128], index: 3, kind: output, shape index: {}]  }
   0x1 LB: > { %s363_s13 = sadd.s32 4294967295, %s447_s12   ;;  %p367_p0 = scmp.ge.s32.totalorder %s447_s12, 1  ;;  %s447_s12 = sphi %s471_s12, %s13_s12  }
   0x2   : > { %p138_p1 = scmp.lt.s32.totalorder %s447_s12, 3 }
   0x4   : > { %p139_p2 = pnand %p367_p0, %p138_p1 }
   0x5   : > { %s368_s18 = sshll.u32 (!%p139_p2), %s363_s13, 1 }
   0x6   : > { %142 = sbr.rel (%p139_p2) target bundleno = 248 (0xf8), region = 32  ;;  %p163_p3 = scmp.lt.s32.totalorder (!%p139_p2), %s368_s18, 3 }
   0xb   : > { %v432_v0 = vld [vmem:[%s523_s1 + $0x38] sm:$0xff]   ;;  %v449_v1 = vmov 0.0   ;;  %v433_v2 = vld [vmem:[%s523_s1 + $0x30] sm:$0xff]   ;;  %vm450_vm0 = vmmov 0   ;;  %s527_s18 = smov (!%p163_p3, %s368_s18), 3  ;;  %v434_v3 = vld [vmem:[%s523_s1 + $0x28] sm:$0xff]  }
   0xc   : > { %402 = vmatprep.subr.bf16.mxu0 %v449_v1  ;;  %418 = vmatprep.mubr.msk.bf16.mxu0 %vm450_vm0, %v449_v1  ;;  %s369_s21 = sshll.u32 %s527_s18, 2  ;;  %v435_v4 = vld [vmem:[%s523_s1 + $0x20] sm:$0xff]   ;;  %v436_v5 = vld [vmem:[%s523_s1 + $0x18] sm:$0xff]   ;;  %v437_v6 = vld [vmem:[%s523_s1 + $0x10] sm:$0xff]  }
   0xd   : > { %403 = vmatpush3.bf16.msra.mxu0 %v432_v0  ;;  %s166_s24 = scalar_lea.vmem %s522_s0, %s369_s21  ;;  %v438_v7 = vld [vmem:[%s523_s1 + $0x8] sm:$0xff]   ;;  %v439_v8 = vld [vmem:[%s523_s1] sm:$0xff]   ;;  %s172_s13 = scalar_lea.vmem %s525_s3, %s369_s21 }
   0xe   : > { %404 = vmatprep.subr.bf16.mxu0 %v449_v1  ;;  %v440_v9 = vld [vmem:[%s166_s24] sm:$0xff]  }
   0xf   : > { %v372_v10 = vld [vmem:[%s524_s2] ss:$0 sm:$0xff] }
  0x11   : > { %405 = vmatpush3.bf16.msra.mxu0 %v433_v2 }
  0x12   : > { %406 = vmatprep.subr.bf16.mxu0 %v449_v1 }
  0x15   : > { %407 = vmatpush3.bf16.msra.mxu0 %v434_v3 }
  0x16   : > { %408 = vmatprep.subr.bf16.mxu0 %v449_v1 }
  0x19   : > { %409 = vmatpush3.bf16.msra.mxu0 %v435_v4 }
  0x1a   : > { %410 = vmatprep.subr.bf16.mxu0 %v449_v1 }
  0x1d   : > { %411 = vmatpush3.bf16.msra.mxu0 %v436_v5 }
  0x1e   : > { %412 = vmatprep.subr.bf16.mxu0 %v449_v1 }
  0x21   : > { %413 = vmatpush3.bf16.msra.mxu0 %v437_v6 }
  0x22   : > { %414 = vmatprep.subr.bf16.mxu0 %v449_v1 }
  0x25   : > { %415 = vmatpush3.bf16.msra.mxu0 %v438_v7 }
  0x26   : > { %416 = vmatprep.subr.bf16.mxu0 %v449_v1 }
  0x29   : > { %417 = vmatpush3.bf16.msra.mxu0 %v439_v8 }
  0x2c   : > { %419 = vmatmul.mubr.bf16.vlgmr.msra.gmra.mxu0 %v440_v9 }
  0xec   : > { %v288_v11 = vpop.f32.mrf.mxu0 }
  0xed   : > { %v289_v13 = vadd.f32 %v372_v10, %v288_v11 }
  0xee   : > { %v420_v12 = vpop.f32.mrf.mxu0 }
  0xef   : > { %v295_v17 = vmax.f32 %v289_v13, 0.0 }
  0xf0   : > { %v291_v14 = vpop.f32.mrf.mxu0 }
  0xf1   : > { %v292_v15 = vadd.f32 %v372_v10, %v291_v14 }
  0xf2   : > { %v421_v16 = vpop.f32.mrf.mxu0 }
  0xf3   : > { %v296_v18 = vmax.f32 %v292_v15, 0.0 }
  0xf5   : > { %v391_v19 = vpack.c.bf16 %v296_v18, %v295_v17 }
  0xf7   : > { %392 = vst [vmem:[%s172_s13] sm:$0xff] %v391_v19  }
  0xf8 PF: > { %s13_s12 = sadd.s32 1, %s447_s12  }
  0xf9   : > { %p10_p4 = scmp.ge.s32.totalorder %s13_s12, 4  }
  0xfb   :  { %12 = sbr.rel (!%p10_p4) target bundleno = 1 (0x1), region = 62 }

// kernel: resnext_forward.30
= control target key start
LH: loop header
LB: loop body
LE: loop exit
PB: predicated region body
PF: predicated region fallthrough
CT: control target
= control target key end

     0   :  { %v221_v1 = vmov 0   ;;  %v34_v18 = vlaneseq  ;;  %s299_s1 = inlined_call_operand.vmem [shape: bf16[1,128,256], index: 1, kind: input, shape index: {}]   ;;  %s300_s0 = inlined_call_operand.vmem [shape: bf16[8,128], index: 0, kind: input, shape index: {}]   ;;  %s301_s2 = inlined_call_operand.vmem [shape: f32[1,256], index: 2, kind: input, shape index: {}]   ;;  %s302_s3 = inlined_call_operand.vmem [shape: bf16[8,256], index: 3, kind: output, shape index: {}]  }
   0x1   :  { %v197_v0 = vld [vmem:[%s299_s1 + $0x74] ss:$8 sps:$4 sm:$0xff]   ;;  %156 = vmatprep.mubr.bf16.mxu0 %v221_v1  ;;  %v199_v2 = vld [vmem:[%s299_s1 + $0x70] ss:$8 sps:$4 sm:$0xff]   ;;  %v200_v3 = vld [vmem:[%s299_s1 + $0x64] ss:$8 sps:$4 sm:$0xff]  }
   0x2   :  { %124 = vmatprep.subr.bf16.mxu0 %v197_v0  ;;  %v202_v4 = vld [vmem:[%s299_s1 + $0x60] ss:$8 sps:$4 sm:$0xff]   ;;  %v203_v5 = vld [vmem:[%s299_s1 + $0x54] ss:$8 sps:$4 sm:$0xff]   ;;  %v205_v6 = vld [vmem:[%s299_s1 + $0x50] ss:$8 sps:$4 sm:$0xff]  }
   0x3   :  { %125 = vmatpush1.bf16.msra.mxu0 %v199_v2  ;;  %v206_v7 = vld [vmem:[%s299_s1 + $0x44] ss:$8 sps:$4 sm:$0xff]   ;;  %v208_v8 = vld [vmem:[%s299_s1 + $0x40] ss:$8 sps:$4 sm:$0xff]   ;;  %v209_v9 = vld [vmem:[%s299_s1 + $0x34] ss:$8 sps:$4 sm:$0xff]  }
   0x4   :  { %126 = vmatprep.subr.bf16.mxu0 %v200_v3  ;;  %v211_v10 = vld [vmem:[%s299_s1 + $0x30] ss:$8 sps:$4 sm:$0xff]   ;;  %v212_v11 = vld [vmem:[%s299_s1 + $0x24] ss:$8 sps:$4 sm:$0xff]   ;;  %v214_v12 = vld [vmem:[%s299_s1 + $0x20] ss:$8 sps:$4 sm:$0xff]  }
   0x5   :  { %v215_v13 = vld [vmem:[%s299_s1 + $0x14] ss:$8 sps:$4 sm:$0xff]   ;;  %v217_v14 = vld [vmem:[%s299_s1 + $0x10] ss:$8 sps:$4 sm:$0xff]   ;;  %v218_v15 = vld [vmem:[%s299_s1 + $0x4] ss:$8 sps:$4 sm:$0xff]  }
   0x6   :  { %v220_v16 = vld [vmem:[%s299_s1] ss:$8 sps:$4 sm:$0xff]   ;;  %v35_v19 = vshrl.u32 %v34_v18, 7 }
   0x7   :  { %127 = vmatpush1.bf16.msra.mxu0 %v202_v4  ;;  %v15_v17 = vld [vmem:[%s300_s0] sm:$0xf] }
   0x8   :  { %128 = vmatprep.subr.bf16.mxu0 %v203_v5  ;;  %v36_v20 = vsub.s32 0, %v35_v19  ;;  %v40_v21 = vsub.s32 1, %v35_v19  ;;  %v32_v22 = vld [vmem:[%s301_s2] sm:$0x3] }
   0xa   :  { %v37_v23 = vrot.slane %v32_v22, %v36_v20  ;;  %v41_v24 = vrot.slane %v32_v22, %v40_v21 }
   0xb   :  { %129 = vmatpush1.bf16.msra.mxu0 %v205_v6 }
   0xc   :  { %130 = vmatprep.subr.bf16.mxu0 %v206_v7 }
   0xf   :  { %131 = vmatpush1.bf16.msra.mxu0 %v208_v8 }
  0x10   :  { %132 = vmatprep.subr.bf16.mxu0 %v209_v9 }
  0x13   :  { %133 = vmatpush1.bf16.msra.mxu0 %v211_v10 }
  0x14   :  { %134 = vmatprep.subr.bf16.mxu0 %v212_v11 }
  0x17   :  { %135 = vmatpush1.bf16.msra.mxu0 %v214_v12 }
  0x18   :  { %136 = vmatprep.subr.bf16.mxu0 %v215_v13 }
  0x1b   :  { %137 = vmatpush1.bf16.msra.mxu0 %v217_v14 }
  0x1c   :  { %138 = vmatprep.subr.bf16.mxu0 %v218_v15 }
  0x1f   :  { %139 = vmatpush1.bf16.msra.mxu0 %v220_v16 }
  0x22   :  { %157 = vmatmul.mubr.bf16.vlgmr.msra.gmra.mxu0 %v15_v17 }
  0xe2   :  { %v158_v25 = vpop.f32.mrf.mxu0 }
  0xe3   :  { %v159_v27 = vadd.f32 %v158_v25, %v37_v23 }
  0xe4   :  { %v160_v26 = vpop.f32.mrf.mxu0 }
  0xe5   :  { %v161_v28 = vadd.f32 %v160_v26, %v41_v24 }
  0xe6   :  { %v162_v29 = vpop.f32.mrf.mxu0 }
  0xe7   :  { %v195_v30 = vpack.c.bf16 %v161_v28, %v159_v27 }
  0xe8   :  { %v163_v31 = vpop.f32.mrf.mxu0 }
  0xe9   :  { %173 = vst [vmem:[%s302_s3] sm:$0xff] %v195_v30 }

// kernel: resnext_forward.31
= control target key start
LH: loop header
LB: loop body
LE: loop exit
PB: predicated region body
PF: predicated region fallthrough
CT: control target
= control target key end

     0   :  { %v231_v1 = vmov 0   ;;  %v37_v18 = vlaneseq  ;;  %s317_s1 = inlined_call_operand.vmem [shape: bf16[1,128,256], index: 1, kind: input, shape index: {}]   ;;  %s318_s0 = inlined_call_operand.vmem [shape: bf16[8,128], index: 0, kind: input, shape index: {}]   ;;  %s319_s2 = inlined_call_operand.vmem [shape: f32[1,256], index: 2, kind: input, shape index: {}]   ;;  %s320_s3 = inlined_call_operand.vmem [shape: bf16[8,256], index: 3, kind: input, shape index: {}]   ;;  %s321_s4 = inlined_call_operand.vmem [shape: bf16[8,256], index: 4, kind: output, shape index: {}]  }
   0x1   :  { %v207_v0 = vld [vmem:[%s317_s1 + $0x74] ss:$8 sps:$4 sm:$0xff]   ;;  %159 = vmatprep.mubr.bf16.mxu0 %v231_v1  ;;  %v209_v2 = vld [vmem:[%s317_s1 + $0x70] ss:$8 sps:$4 sm:$0xff]   ;;  %v210_v3 = vld [vmem:[%s317_s1 + $0x64] ss:$8 sps:$4 sm:$0xff]  }
   0x2   :  { %127 = vmatprep.subr.bf16.mxu0 %v207_v0  ;;  %v212_v4 = vld [vmem:[%s317_s1 + $0x60] ss:$8 sps:$4 sm:$0xff]   ;;  %v213_v5 = vld [vmem:[%s317_s1 + $0x54] ss:$8 sps:$4 sm:$0xff]   ;;  %v215_v6 = vld [vmem:[%s317_s1 + $0x50] ss:$8 sps:$4 sm:$0xff]  }
   0x3   :  { %128 = vmatpush1.bf16.msra.mxu0 %v209_v2  ;;  %v216_v7 = vld [vmem:[%s317_s1 + $0x44] ss:$8 sps:$4 sm:$0xff]   ;;  %v218_v8 = vld [vmem:[%s317_s1 + $0x40] ss:$8 sps:$4 sm:$0xff]   ;;  %v219_v9 = vld [vmem:[%s317_s1 + $0x34] ss:$8 sps:$4 sm:$0xff]  }
   0x4   :  { %129 = vmatprep.subr.bf16.mxu0 %v210_v3  ;;  %v221_v10 = vld [vmem:[%s317_s1 + $0x30] ss:$8 sps:$4 sm:$0xff]   ;;  %v222_v11 = vld [vmem:[%s317_s1 + $0x24] ss:$8 sps:$4 sm:$0xff]   ;;  %v224_v12 = vld [vmem:[%s317_s1 + $0x20] ss:$8 sps:$4 sm:$0xff]  }
   0x5   :  { %v225_v13 = vld [vmem:[%s317_s1 + $0x14] ss:$8 sps:$4 sm:$0xff]   ;;  %v227_v14 = vld [vmem:[%s317_s1 + $0x10] ss:$8 sps:$4 sm:$0xff]   ;;  %v228_v15 = vld [vmem:[%s317_s1 + $0x4] ss:$8 sps:$4 sm:$0xff]  }
   0x6   :  { %v230_v16 = vld [vmem:[%s317_s1] ss:$8 sps:$4 sm:$0xff]   ;;  %v38_v19 = vshrl.u32 %v37_v18, 7 }
   0x7   :  { %130 = vmatpush1.bf16.msra.mxu0 %v212_v4  ;;  %v18_v17 = vld [vmem:[%s318_s0] sm:$0xf] }
   0x8   :  { %131 = vmatprep.subr.bf16.mxu0 %v213_v5  ;;  %v39_v20 = vsub.s32 0, %v38_v19  ;;  %v35_v21 = vld [vmem:[%s319_s2] sm:$0x3]  ;;  %v43_v22 = vsub.s32 1, %v38_v19 }
   0x9   :  { %v168_v23 = vld [vmem:[%s320_s3] sm:$0xff] }
   0xa   :  { %v40_v24 = vrot.slane %v35_v21, %v39_v20  ;;  %v169_v25 = vunpack.c.l.bf16 %v168_v23  ;;  %v44_v26 = vrot.slane %v35_v21, %v43_v22  ;;  %v170_v29 = vunpack.c.h.bf16 %v168_v23 }
   0xb   :  { %132 = vmatpush1.bf16.msra.mxu0 %v215_v6 }
   0xc   :  { %133 = vmatprep.subr.bf16.mxu0 %v216_v7 }
   0xf   :  { %134 = vmatpush1.bf16.msra.mxu0 %v218_v8 }
  0x10   :  { %135 = vmatprep.subr.bf16.mxu0 %v219_v9 }
  0x13   :  { %136 = vmatpush1.bf16.msra.mxu0 %v221_v10 }
  0x14   :  { %137 = vmatprep.subr.bf16.mxu0 %v222_v11 }
  0x17   :  { %138 = vmatpush1.bf16.msra.mxu0 %v224_v12 }
  0x18   :  { %139 = vmatprep.subr.bf16.mxu0 %v225_v13 }
  0x1b   :  { %140 = vmatpush1.bf16.msra.mxu0 %v227_v14 }
  0x1c   :  { %141 = vmatprep.subr.bf16.mxu0 %v228_v15 }
  0x1f   :  { %142 = vmatpush1.bf16.msra.mxu0 %v230_v16 }
  0x22   :  { %160 = vmatmul.mubr.bf16.vlgmr.msra.gmra.mxu0 %v18_v17 }
  0xe2   :  { %v161_v27 = vpop.f32.mrf.mxu0 }
  0xe3   :  { %v162_v28 = vadd.f32 %v161_v27, %v40_v24 }
  0xe4   :  { %v163_v30 = vpop.f32.mrf.mxu0 }
  0xe5   :  { %v171_v31 = vadd.f32 %v169_v25, %v162_v28  ;;  %v164_v32 = vadd.f32 %v163_v30, %v44_v26 }
  0xe6   :  { %v165_v33 = vpop.f32.mrf.mxu0 }
  0xe7   :  { %v172_v34 = vadd.f32 %v170_v29, %v164_v32  ;;  %v173_v36 = vmax.f32 %v171_v31, 0.0 }
  0xe8   :  { %v166_v35 = vpop.f32.mrf.mxu0 }
  0xe9   :  { %v174_v37 = vmax.f32 %v172_v34, 0.0 }
  0xeb   :  { %v205_v38 = vpack.c.bf16 %v174_v37, %v173_v36 }
  0xed   :  { %183 = vst [vmem:[%s321_s4] sm:$0xff] %v205_v38 }

// kernel: resnext_forward.32
= control target key start
LH: loop header
LB: loop body
LE: loop exit
PB: predicated region body
PF: predicated region fallthrough
CT: control target
= control target key end

     0   :  { %v49_v35 = vlaneseq  ;;  %s493_s1 = inlined_call_operand.vmem [shape: bf16[1,256,256], index: 1, kind: input, shape index: {}]   ;;  %s494_s0 = inlined_call_operand.vmem [shape: bf16[8,256], index: 0, kind: input, shape index: {}]   ;;  %s495_s2 = inlined_call_operand.vmem [shape: f32[1,256], index: 2, kind: input, shape index: {}]   ;;  %s496_s3 = inlined_call_operand.vmem [shape: bf16[8,256], index: 3, kind: output, shape index: {}]  }
   0x1   :  { %v318_v0 = vld [vmem:[%s493_s1 + $0x74] ss:$8 sps:$4 sm:$0xff]   ;;  %v320_v1 = vld [vmem:[%s493_s1 + $0x70] ss:$8 sps:$4 sm:$0xff]   ;;  %v321_v2 = vld [vmem:[%s493_s1 + $0x64] ss:$8 sps:$4 sm:$0xff]  }
   0x2   :  { %226 = vmatprep.subr.bf16.mxu0 %v318_v0  ;;  %v323_v3 = vld [vmem:[%s493_s1 + $0x60] ss:$8 sps:$4 sm:$0xff]   ;;  %v324_v4 = vld [vmem:[%s493_s1 + $0x54] ss:$8 sps:$4 sm:$0xff]   ;;  %v326_v5 = vld [vmem:[%s493_s1 + $0x50] ss:$8 sps:$4 sm:$0xff]  }
   0x3   :  { %227 = vmatpush1.bf16.msra.mxu0 %v320_v1  ;;  %v327_v6 = vld [vmem:[%s493_s1 + $0x44] ss:$8 sps:$4 sm:$0xff]   ;;  %v329_v7 = vld [vmem:[%s493_s1 + $0x40] ss:$8 sps:$4 sm:$0xff]   ;;  %v330_v8 = vld [vmem:[%s493_s1 + $0x34] ss:$8 sps:$4 sm:$0xff]  }
   0x4   :  { %228 = vmatprep.subr.bf16.mxu0 %v321_v2  ;;  %v332_v9 = vld [vmem:[%s493_s1 + $0x30] ss:$8 sps:$4 sm:$0xff]   ;;  %v333_v10 = vld [vmem:[%s493_s1 + $0x24] ss:$8 sps:$4 sm:$0xff]   ;;  %v335_v11 = vld [vmem:[%s493_s1 + $0x20] ss:$8 sps:$4 sm:$0xff]  }
   0x5   :  { %v336_v12 = vld [vmem:[%s493_s1 + $0x14] ss:$8 sps:$4 sm:$0xff]   ;;  %v14_v13 = vld [vmem:[%s494_s0] sm:$0xff]  ;;  %v338_v15 = vld [vmem:[%s493_s1 + $0x10] ss:$8 sps:$4 sm:$0xff]   ;;  %v50_v36 = vshrl.u32 %v49_v35, 7 }
   0x6   :  { %v283_v14 = vcombine.high %v14_v13, %v14_v13  ;;  %v339_v16 = vld [vmem:[%s493_s1 + $0x4] ss:$8 sps:$4 sm:$0xff]   ;;  %v341_v17 = vld [vmem:[%s493_s1] ss:$8 sps:$4 sm:$0xff]   ;;  %v342_v18 = vld [vmem:[%s493_s1 + $0xf4] ss:$8 sps:$4 sm:$0xff]   ;;  %v282_v34 = vcombine.low %v14_v13, %v14_v13 }
   0x7   :  { %229 = vmatpush1.bf16.msra.mxu0 %v323_v3  ;;  %v344_v19 = vld [vmem:[%s493_s1 + $0xf0] ss:$8 sps:$4 sm:$0xff]   ;;  %v345_v20 = vld [vmem:[%s493_s1 + $0xe4] ss:$8 sps:$4 sm:$0xff]   ;;  %v347_v21 = vld [vmem:[%s493_s1 + $0xe0] ss:$8 sps:$4 sm:$0xff]  }
   0x8   :  { %230 = vmatprep.subr.bf16.mxu0 %v324_v4  ;;  %258 = vmatprep.mubr.bf16.mxu0 %v283_v14  ;;  %v348_v22 = vld [vmem:[%s493_s1 + $0xd4] ss:$8 sps:$4 sm:$0xff]   ;;  %v350_v23 = vld [vmem:[%s493_s1 + $0xd0] ss:$8 sps:$4 sm:$0xff]   ;;  %v351_v24 = vld [vmem:[%s493_s1 + $0xc4] ss:$8 sps:$4 sm:$0xff]  }
   0x9   :  { %v353_v25 = vld [vmem:[%s493_s1 + $0xc0] ss:$8 sps:$4 sm:$0xff]   ;;  %v354_v26 = vld [vmem:[%s493_s1 + $0xb4] ss:$8 sps:$4 sm:$0xff]   ;;  %v356_v27 = vld [vmem:[%s493_s1 + $0xb0] ss:$8 sps:$4 sm:$0xff]  }
   0xa   :  { %v357_v28 = vld [vmem:[%s493_s1 + $0xa4] ss:$8 sps:$4 sm:$0xff]   ;;  %v359_v29 = vld [vmem:[%s493_s1 + $0xa0] ss:$8 sps:$4 sm:$0xff]   ;;  %v360_v30 = vld [vmem:[%s493_s1 + $0x94] ss:$8 sps:$4 sm:$0xff]  }
   0xb   :  { %231 = vmatpush1.bf16.msra.mxu0 %v326_v5  ;;  %v362_v31 = vld [vmem:[%s493_s1 + $0x90] ss:$8 sps:$4 sm:$0xff]   ;;  %v363_v32 = vld [vmem:[%s493_s1 + $0x84] ss:$8 sps:$4 sm:$0xff]   ;;  %v365_v33 = vld [vmem:[%s493_s1 + $0x80] ss:$8 sps:$4 sm:$0xff]  }
   0xc   :  { %232 = vmatprep.subr.bf16.mxu0 %v327_v6  ;;  %v51_v37 = vsub.s32 0, %v50_v36  ;;  %v47_v38 = vld [vmem:[%s495_s2] sm:$0x3]  ;;  %v55_v39 = vsub.s32 1, %v50_v36 }
   0xe   :  { %v52_v40 = vrot.slane %v47_v38, %v51_v37  ;;  %v56_v41 = vrot.slane %v47_v38, %v55_v39 }
   0xf   :  { %233 = vmatpush1.bf16.msra.mxu0 %v329_v7 }
  0x10   :  { %234 = vmatprep.subr.bf16.mxu0 %v330_v8 }
  0x13   :  { %235 = vmatpush1.bf16.msra.mxu0 %v332_v9 }
  0x14   :  { %236 = vmatprep.subr.bf16.mxu0 %v333_v10 }
  0x17   :  { %237 = vmatpush1.bf16.msra.mxu0 %v335_v11 }
  0x18   :  { %238 = vmatprep.subr.bf16.mxu0 %v336_v12 }
  0x1b   :  { %239 = vmatpush1.bf16.msra.mxu0 %v338_v15 }
  0x1c   :  { %240 = vmatprep.subr.bf16.mxu0 %v339_v16 }
  0x1f   :  { %241 = vmatpush1.bf16.msra.mxu0 %v341_v17 }
  0x20   :  { %242 = vmatprep.subr.bf16.mxu0 %v342_v18 }
  0x23   :  { %243 = vmatpush2.bf16.msra.mxu0 %v344_v19 }
  0x24   :  { %244 = vmatprep.subr.bf16.mxu0 %v345_v20 }
  0x27   :  { %245 = vmatpush2.bf16.msra.mxu0 %v347_v21 }
  0x28   :  { %246 = vmatprep.subr.bf16.mxu0 %v348_v22 }
  0x2b   :  { %247 = vmatpush2.bf16.msra.mxu0 %v350_v23 }
  0x2c   :  { %248 = vmatprep.subr.bf16.mxu0 %v351_v24 }
  0x2f   :  { %249 = vmatpush2.bf16.msra.mxu0 %v353_v25 }
  0x30   :  { %250 = vmatprep.subr.bf16.mxu0 %v354_v26 }
  0x33   :  { %251 = vmatpush2.bf16.msra.mxu0 %v356_v27 }
  0x34   :  { %252 = vmatprep.subr.bf16.mxu0 %v357_v28 }
  0x37   :  { %253 = vmatpush2.bf16.msra.mxu0 %v359_v29 }
  0x38   :  { %254 = vmatprep.subr.bf16.mxu0 %v360_v30 }
  0x3b   :  { %255 = vmatpush2.bf16.msra.mxu0 %v362_v31 }
  0x3c   :  { %256 = vmatprep.subr.bf16.mxu0 %v363_v32 }
  0x3f   :  { %257 = vmatpush2.bf16.msra.mxu0 %v365_v33 }
  0x42   :  { %259 = vmatmul.mubr.bf16.vlgmr.msra.gmra.mxu0 %v282_v34 }
 0x102   :  { %v260_v42 = vpop.f32.mrf.mxu0 }
 0x103   :  { %v261_v43 = vadd.f32 %v260_v42, %v52_v40 }
 0x104   :  { %v262_v44 = vpop.f32.mrf.mxu0 }
 0x105   :  { %v263_v45 = vadd.f32 %v262_v44, %v56_v41  ;;  %v267_v47 = vmax.f32 %v261_v43, 0.0 }
 0x106   :  { %v264_v46 = vpop.f32.mrf.mxu0 }
 0x107   :  { %v268_v48 = vmax.f32 %v263_v45, 0.0 }
 0x108   :  { %v265_v49 = vpop.f32.mrf.mxu0 }
 0x109   :  { %v317_v50 = vpack.c.bf16 %v268_v48, %v267_v47 }
 0x10b   :  { %277 = vst [vmem:[%s496_s3] sm:$0xff] %v317_v50 }

// kernel: resnext_forward.29
= control target key start
LH: loop header
LB: loop body
LE: loop exit
PB: predicated region body
PF: predicated region fallthrough
CT: control target
= control target key end

     0   :  { %s1278_s18 = smov 64   ;;  %v1279_v41 = vmov 0.0   ;;  %vm1280_vm0 = vmmov 0   ;;  %vm323_vm1 = vcmask 523264   ;;  %s1566_s0 = inlined_call_operand.vmem [shape: bf16[8,1152], index: 0, kind: input, shape index: {}]   ;;  %s1567_s1 = inlined_call_operand.vmem [shape: bf16[2,576,64], index: 1, kind: input, shape index: {}]   ;;  %s1568_s2 = inlined_call_operand.vmem [shape: f32[1,128], index: 2, kind: input, shape index: {}]   ;;  %s1569_s3 = inlined_call_operand.vmem [shape: bf16[8,128], index: 3, kind: output, shape index: {}]  }
   0x1   :  { %v447_v0 = vld [vmem:[%s1566_s0 + $0x10] sm:$0xff]  ;;  %v448_v1 = vld [vmem:[%s1566_s0 + $0x18] sm:$0xff]  ;;  %v1200_v9 = vld [vmem:[%s1566_s0 + $0x20] ss:$0 sps:$4 sm:$0xff]  }
   0x2   :  { %v1029_v2 = vcombine.high %v447_v0, %v447_v0  ;;  %v1028_v3 = vcombine.low %v447_v0, %v447_v0  ;;  %v1201_v4 = vld [vmem:[%s1567_s1 + $0x78] sm:$0xff]   ;;  %v1030_v5 = vcombine.low %v448_v1, %v448_v1  ;;  %v1031_v6 = vcombine.high %v448_v1, %v448_v1  ;;  %v1203_v8 = vld [vmem:[%s1567_s1 + $0x70] sm:$0xff]   ;;  %v1205_v11 = vld [vmem:[%s1567_s1 + $0x68] sm:$0xff]  }
   0x3   :  { %v1202_v7 = vld [vmem:[%s1567_s1 + $0x38] sm:$0xff]   ;;  %1071 = vmatprep.subr.bf16.mxu0 %v1201_v4  ;;  %v1204_v10 = vld [vmem:[%s1567_s1 + $0x30] sm:$0xff]   ;;  %v1206_v12 = vld [vmem:[%s1567_s1 + $0x28] sm:$0xff]  }
   0x4   :  { %538 = vrot.lane.b32.xlu0 %v1029_v2, %s1278_s18  ;;  %536 = vrot.lane.b32.xlu1 %v1028_v3, %s1278_s18  ;;  %v1207_v13 = vld [vmem:[%s1567_s1 + $0xf8] sm:$0xff]   ;;  %v1209_v15 = vld [vmem:[%s1567_s1 + $0x60] sm:$0xff]  }
   0x5   :  { %1072 = vmatpush3.bf16.msra.mxu0 %v1202_v7  ;;  %v1208_v14 = vld [vmem:[%s1567_s1 + $0xb8] sm:$0xff]   ;;  %1093 = vmatprep.subr.bf16.mxu1 %v1207_v13  ;;  %v1210_v16 = vld [vmem:[%s1567_s1 + $0x20] sm:$0xff]   ;;  %v1211_v17 = vld [vmem:[%s1567_s1 + $0xf0] sm:$0xff]  }
   0x6   :  { %1073 = vmatprep.subr.bf16.mxu0 %v1203_v8  ;;  %1094 = vmatpush3.bf16.msra.mxu1 %v1208_v14  ;;  %v1212_v18 = vld [vmem:[%s1567_s1 + $0xb0] sm:$0xff]   ;;  %v1213_v19 = vld [vmem:[%s1567_s1 + $0x58] sm:$0xff]   ;;  %v1215_v21 = vld [vmem:[%s1567_s1 + $0xe8] sm:$0xff]  }
   0x7   :  { %1095 = vmatprep.subr.bf16.mxu1 %v1211_v17  ;;  %v1214_v20 = vld [vmem:[%s1567_s1 + $0x18] sm:$0xff]   ;;  %v1216_v22 = vld [vmem:[%s1567_s1 + $0xa8] sm:$0xff]   ;;  %v1217_v23 = vld [vmem:[%s1567_s1 + $0x50] sm:$0xff]  }
   0x8   :  { %540 = vrot.lane.b32.xlu0 %v1030_v5, %s1278_s18  ;;  %542 = vrot.lane.b32.xlu1 %v1031_v6, %s1278_s18  ;;  %v1218_v24 = vld [vmem:[%s1567_s1 + $0x10] sm:$0xff]   ;;  %v1219_v25 = vld [vmem:[%s1567_s1 + $0xe0] sm:$0xff]  }
   0x9   :  { %1074 = vmatpush3.bf16.msra.mxu0 %v1204_v10  ;;  %v1220_v26 = vld [vmem:[%s1567_s1 + $0xa0] sm:$0xff]   ;;  %v1221_v27 = vld [vmem:[%s1567_s1 + $0x48] sm:$0xff]   ;;  %v1223_v29 = vld [vmem:[%s1567_s1 + $0xd8] sm:$0xff]  }
   0xa   :  { %1075 = vmatprep.subr.bf16.mxu0 %v1205_v11  ;;  %1096 = vmatpush3.bf16.msra.mxu1 %v1212_v18  ;;  %v1222_v28 = vld [vmem:[%s1567_s1 + $0x8] sm:$0xff]   ;;  %v1224_v30 = vld [vmem:[%s1567_s1 + $0x98] sm:$0xff]   ;;  %v1225_v31 = vld [vmem:[%s1567_s1 + $0x40] sm:$0xff]  }
   0xb   :  { %1097 = vmatprep.subr.bf16.mxu1 %v1215_v21  ;;  %v1226_v32 = vld [vmem:[%s1567_s1] sm:$0xff]   ;;  %v1227_v33 = vld [vmem:[%s1567_s1 + $0xd0] sm:$0xff]   ;;  %v1231_v37 = vld [vmem:[%s1567_s1 + $0x118] sm:$0xff]  }
   0xc   :  { %544 = vrot.lane.b32.xlu0 %v1200_v9, %s1278_s18  ;;  %v1228_v34 = vld [vmem:[%s1567_s1 + $0x90] sm:$0xff]   ;;  %v15_v35 = vld [vmem:[%s1566_s0] sm:$0xff]  ;;  %v1232_v39 = vld [vmem:[%s1567_s1 + $0xc8] sm:$0xff]  }
   0xd   :  { %1076 = vmatpush3.bf16.msra.mxu0 %v1206_v12  ;;  %v915_v36 = vcombine.high %v15_v35, %v15_v35  ;;  %v914_v38 = vcombine.low %v15_v35, %v15_v35  ;;  %v1233_v40 = vld [vmem:[%s1567_s1 + $0x88] sm:$0xff]   ;;  %v1235_v42 = vld [vmem:[%s1567_s1 + $0xc0] sm:$0xff]   ;;  %v1234_v45 = vld [vmem:[%s1567_s1 + $0x110] sm:$0xff]  }
   0xe   :  { %1077 = vmatprep.subr.bf16.mxu0 %v1209_v15  ;;  %1098 = vmatpush3.bf16.msra.mxu1 %v1216_v22  ;;  %v1236_v43 = vld [vmem:[%s1567_s1 + $0x80] sm:$0xff]   ;;  %v16_v44 = vld [vmem:[%s1566_s0 + $0x8] sm:$0xff]  ;;  %v1242_v49 = vld [vmem:[%s1567_s1 + $0x198] sm:$0xff]  }
   0xf   :  { %1099 = vmatprep.subr.bf16.mxu1 %v1219_v25  ;;  %359 = vmatprep.mubr.bf16.mxu0 %v915_v36  ;;  %v917_v46 = vcombine.high %v16_v44, %v16_v44  ;;  %v916_v47 = vcombine.low %v16_v44, %v16_v44  ;;  %v1239_v48 = vld [vmem:[%s1567_s1 + $0x108] sm:$0xff]   ;;  %v1243_v50 = vld [vmem:[%s1567_s1 + $0x158] sm:$0xff]   ;;  %v1244_v51 = vld [vmem:[%s1567_s1 + $0x190] sm:$0xff]  }
  0x10   :  { %v1240_v52 = vld [vmem:[%s1567_s1 + $0x100] sm:$0xff]   ;;  %v1245_v53 = vld [vmem:[%s1567_s1 + $0x150] sm:$0xff]   ;;  %v1246_v54 = vld [vmem:[%s1567_s1 + $0x218] sm:$0xff]  }
  0x11   :  { %1078 = vmatpush3.bf16.msra.mxu0 %v1210_v16  ;;  %399 = vmatprep.mubr.bf16.mxu1 %v917_v46  ;;  %v1241_v55 = vld [vmem:[%s1566_s0 + $0x10] ss:$0 sps:$4 sm:$0xff]   ;;  %v1248_v56 = vld [vmem:[%s1567_s1 + $0x188] sm:$0xff]   ;;  %v1247_v57 = vld [vmem:[%s1567_s1 + $0x1d8] sm:$0xff]  }
  0x12   :  { %1079 = vmatprep.subr.bf16.mxu0 %v1213_v19  ;;  %1100 = vmatpush3.bf16.msra.mxu1 %v1220_v26  ;;  %v1249_v58 = vld [vmem:[%s1567_s1 + $0x148] sm:$0xff]   ;;  %v1250_v59 = vld [vmem:[%s1567_s1 + $0x210] sm:$0xff]   ;;  %v1252_v60 = vld [vmem:[%s1567_s1 + $0x180] sm:$0xff]  }
  0x13   :  { %1101 = vmatprep.subr.bf16.mxu1 %v1223_v29  ;;  %v1251_v61 = vld [vmem:[%s1567_s1 + $0x1d0] sm:$0xff]   ;;  %v1253_v62 = vld [vmem:[%s1567_s1 + $0x140] sm:$0xff]   ;;  %v1254_v63 = vld [vmem:[%s1567_s1 + $0x208] sm:$0xff]  }
  0x14   :  { %v1256_v0 = vld [vmem:[%s1567_s1 + $0x178] sm:$0xff]   ;;  %v1255_v1 = vld [vmem:[%s1567_s1 + $0x1c8] sm:$0xff]   ;;  %v1258_v3 = vld [vmem:[%s1567_s1 + $0x200] sm:$0xff]  }
  0x15   :  { %1080 = vmatpush3.bf16.msra.mxu0 %v1214_v20  ;;  %v1257_v2 = vld [vmem:[%s1567_s1 + $0x138] sm:$0xff]   ;;  %v1260_v4 = vld [vmem:[%s1567_s1 + $0x170] sm:$0xff]   ;;  %v1259_v5 = vld [vmem:[%s1567_s1 + $0x1c0] sm:$0xff]  }
  0x16   :  { %1081 = vmatprep.subr.bf16.mxu0 %v1217_v23  ;;  %1102 = vmatpush3.bf16.msra.mxu1 %v1224_v30  ;;  %v1261_v6 = vld [vmem:[%s1567_s1 + $0x130] sm:$0xff]   ;;  %v1262_v7 = vld [vmem:[%s1567_s1 + $0x1f8] sm:$0xff]   ;;  %v1264_v8 = vld [vmem:[%s1567_s1 + $0x168] sm:$0xff]  }
  0x17   :  { %1103 = vmatprep.subr.bf16.mxu1 %v1227_v33  ;;  %v1263_v9 = vld [vmem:[%s1567_s1 + $0x1b8] sm:$0xff]   ;;  %v1265_v10 = vld [vmem:[%s1567_s1 + $0x128] sm:$0xff]   ;;  %v1266_v11 = vld [vmem:[%s1567_s1 + $0x1f0] sm:$0xff]  }
  0x18   :  { %v1268_v12 = vld [vmem:[%s1567_s1 + $0x160] sm:$0xff]   ;;  %v1267_v14 = vld [vmem:[%s1567_s1 + $0x1b0] sm:$0xff]   ;;  %v1270_v15 = vld [vmem:[%s1567_s1 + $0x1e8] sm:$0xff]  }
  0x19   :  { %1082 = vmatpush3.bf16.msra.mxu0 %v1218_v24  ;;  %v1269_v13 = vld [vmem:[%s1567_s1 + $0x120] sm:$0xff]   ;;  %v1271_v16 = vld [vmem:[%s1567_s1 + $0x1a8] sm:$0xff]   ;;  %v1273_v22 = vld [vmem:[%s1567_s1 + $0x238] sm:$0xff]  }
  0x1a   :  { %1083 = vmatprep.subr.bf16.mxu0 %v1221_v27  ;;  %1104 = vmatpush3.bf16.msra.mxu1 %v1228_v34  ;;  %v1272_v17 = vld [vmem:[%s1567_s1 + $0x1e0] sm:$0xff]   ;;  %v1275_v27 = vld [vmem:[%s1567_s1 + $0x230] sm:$0xff]   ;;  %v1276_v30 = vld [vmem:[%s1567_s1 + $0x228] sm:$0xff]  }
  0x1b   :  { %1105 = vmatprep.subr.bf16.mxu1 %v1232_v39  ;;  %v1274_v18 = vld [vmem:[%s1567_s1 + $0x1a0] sm:$0xff]  }
  0x1d   :  { %1084 = vmatpush3.bf16.msra.mxu0 %v1222_v28 }
  0x1e   :  { %1085 = vmatprep.subr.bf16.mxu0 %v1225_v31  ;;  %1106 = vmatpush3.bf16.msra.mxu1 %v1233_v40  ;;  %v1277_v31 = vld [vmem:[%s1567_s1 + $0x220] sm:$0xff]  }
  0x1f   :  { %1107 = vmatprep.subr.bf16.mxu1 %v1235_v42 }
  0x21   :  { %1086 = vmatpush3.bf16.msra.mxu0 %v1226_v32 }
  0x22   :  { %1169 = vmatprep.subr.bf16.mxu0 %v1279_v41  ;;  %1108 = vmatpush3.bf16.msra.mxu1 %v1236_v43 }
  0x23   :  { %1120 = vmatprep.subr.bf16.mxu1 %v1242_v49 }
  0x24   :  { %360 = vmatmul.mubr.bf16.vlgmr.msra.gmra.mxu0 %v914_v38 }
  0x25   :  { %1170 = vmatpush3.bf16.msra.mxu0 %v1231_v37  ;;  %1177 = vmatprep.mubr.msk.bf16.mxu0 %vm1280_vm0, %v1279_v41 }
  0x26   :  { %1171 = vmatprep.subr.bf16.mxu0 %v1279_v41  ;;  %400 = vmatmul.mubr.bf16.vlgmr.msra.gmra.mxu1 %v916_v47 }
  0x27   :  { %1121 = vmatpush3.bf16.msra.mxu1 %v1243_v50 }
  0x28   :  { %1122 = vmatprep.subr.bf16.mxu1 %v1244_v51 }
  0x29   :  { %1172 = vmatpush3.bf16.msra.mxu0 %v1234_v45 }
  0x2a   :  { %1173 = vmatprep.subr.bf16.mxu0 %v1279_v41 }
  0x2b   :  { %1123 = vmatpush3.bf16.msra.mxu1 %v1245_v53 }
  0x2c   :  { %1124 = vmatprep.subr.bf16.mxu1 %v1248_v56 }
  0x2d   :  { %1174 = vmatpush3.bf16.msra.mxu0 %v1239_v48 }
  0x2e   :  { %1175 = vmatprep.subr.bf16.mxu0 %v1279_v41 }
  0x2f   :  { %1125 = vmatpush3.bf16.msra.mxu1 %v1249_v58 }
  0x30   :  { %1126 = vmatprep.subr.bf16.mxu1 %v1252_v60 }
  0x31   :  { %1176 = vmatpush3.bf16.msra.mxu0 %v1240_v52 }
  0x32   :  { %1142 = vmatprep.subr.bf16.mxu0 %v1246_v54 }
  0x33   :  { %1127 = vmatpush3.bf16.msra.mxu1 %v1253_v62 }
  0x34   :  { %1178 = vmatmul.mubr.msk.bf16.vlgmr.msra.gmra.mxu0 %vm323_vm1, %v1241_v55  ;;  %1128 = vmatprep.subr.bf16.mxu1 %v1256_v0  ;;  %v1070_v0 = vld [vmem:[%s1568_s2] ss:$0 sm:$0xff] }
  0x35   :  { %1143 = vmatpush3.bf16.msra.mxu0 %v1247_v57 }
  0x36   :  { %1144 = vmatprep.subr.bf16.mxu0 %v1250_v59 }
  0x37   :  { %1129 = vmatpush3.bf16.msra.mxu1 %v1257_v2 }
  0x38   :  { %1130 = vmatprep.subr.bf16.mxu1 %v1260_v4 }
  0x39   :  { %1145 = vmatpush3.bf16.msra.mxu0 %v1251_v61 }
  0x3a   :  { %1146 = vmatprep.subr.bf16.mxu0 %v1254_v63 }
  0x3b   :  { %1131 = vmatpush3.bf16.msra.mxu1 %v1261_v6 }
  0x3c   :  { %1132 = vmatprep.subr.bf16.mxu1 %v1264_v8 }
  0x3d   :  { %1147 = vmatpush3.bf16.msra.mxu0 %v1255_v1 }
  0x3e   :  { %1148 = vmatprep.subr.bf16.mxu0 %v1258_v3 }
  0x3f   :  { %1133 = vmatpush3.bf16.msra.mxu1 %v1265_v10 }
  0x40   :  { %1134 = vmatprep.subr.bf16.mxu1 %v1268_v12 }
  0x41   :  { %1149 = vmatpush3.bf16.msra.mxu0 %v1259_v5 }
  0x42   :  { %1150 = vmatprep.subr.bf16.mxu0 %v1262_v7 }
  0x43   :  { %1135 = vmatpush3.bf16.msra.mxu1 %v1269_v13 }
  0x44   :  { %1181 = vmatprep.subr.bf16.mxu1 %v1279_v41 }
  0x45   :  { %1151 = vmatpush3.bf16.msra.mxu0 %v1263_v9 }
  0x46   :  { %1152 = vmatprep.subr.bf16.mxu0 %v1266_v11 }
  0x49   :  { %1153 = vmatpush3.bf16.msra.mxu0 %v1267_v14 }
  0x4a   :  { %1154 = vmatprep.subr.bf16.mxu0 %v1270_v15 }
  0x4d   :  { %1155 = vmatpush3.bf16.msra.mxu0 %v1271_v16 }
  0x4e   :  { %1156 = vmatprep.subr.bf16.mxu0 %v1272_v17 }
  0x51   :  { %1157 = vmatpush3.bf16.msra.mxu0 %v1274_v18 }
  0x76   :  { %v539_v19 = vpop.permute.xlu0 %538  ;;  %v537_v20 = vpop.permute.xlu1 %536 }
  0x77   :  { %v547_v24 = vsel %vm323_vm1, %v537_v20, %v539_v19 }
  0x7a   :  { %v541_v21 = vpop.permute.xlu0 %540  ;;  %v543_v25 = vpop.permute.xlu1 %542 }
  0x7b   :  { %v548_v23 = vsel %vm323_vm1, %v539_v19, %v541_v21  ;;  %v549_v29 = vsel %vm323_vm1, %v541_v21, %v543_v25 }
  0x7c   :  { %806 = vmatprep.mubr.bf16.mxu1 %v548_v23 }
  0x7d   :  { %807 = vmatmul.mubr.bf16.vlgmr.msra.gmra.mxu1 %v547_v24 }
  0x7e   :  { %1182 = vmatpush3.bf16.msra.mxu1 %v1273_v22  ;;  %v545_v26 = vpop.permute.xlu0 %544  ;;  %1189 = vmatprep.mubr.msk.bf16.mxu1 %vm1280_vm0, %v1279_v41 }
  0x7f   :  { %v550_v28 = vsel %vm323_vm1, %v543_v25, %v545_v26  ;;  %1183 = vmatprep.subr.bf16.mxu1 %v1279_v41 }
  0x80   :  { %846 = vmatprep.mubr.bf16.mxu0 %v550_v28 }
  0x81   :  { %847 = vmatmul.mubr.bf16.vlgmr.msra.gmra.mxu0 %v549_v29 }
  0x82   :  { %1184 = vmatpush3.bf16.msra.mxu1 %v1275_v27 }
  0x83   :  { %1185 = vmatprep.subr.bf16.mxu1 %v1279_v41 }
  0x86   :  { %1186 = vmatpush3.bf16.msra.mxu1 %v1276_v30 }
  0x87   :  { %1187 = vmatprep.subr.bf16.mxu1 %v1279_v41 }
  0x8a   :  { %1188 = vmatpush3.bf16.msra.mxu1 %v1277_v31 }
  0x8d   :  { %1190 = vmatmul.mubr.msk.bf16.vlgmr.msra.gmra.mxu1 %vm323_vm1, %v545_v26 }
  0xe4   :  { %v1087_v32 = vpop.f32.mrf.mxu0 }
  0xe6   :  { %v1088_v33 = vpop.f32.mrf.mxu0  ;;  %v1109_v36 = vpop.f32.mrf.mxu1 }
  0xe7   :  { %v1089_v34 = vadd.f32 %v1088_v33, %v1087_v32 }
  0xe8   :  { %v1090_v35 = vpop.f32.mrf.mxu0  ;;  %v1110_v38 = vpop.f32.mrf.mxu1 }
  0xe9   :  { %v1111_v39 = vadd.f32 %v1110_v38, %v1109_v36 }
  0xea   :  { %v1091_v37 = vpop.f32.mrf.mxu0  ;;  %v1112_v40 = vpop.f32.mrf.mxu1 }
  0xeb   :  { %v402_v42 = vadd.f32 %v1111_v39, %v1089_v34 }
  0xec   :  { %v1113_v43 = vpop.f32.mrf.mxu1 }
  0xf4   :  { %v441_v44 = vpop.f32.mrf.mxu0 }
  0xf5   :  { %v442_v45 = vadd.f32 %v441_v44, %v402_v42 }
  0xf6   :  { %v1179_v46 = vpop.f32.mrf.mxu0 }
  0xf8   :  { %v444_v47 = vpop.f32.mrf.mxu0 }
  0xfa   :  { %v1180_v48 = vpop.f32.mrf.mxu0 }
 0x13d   :  { %v1136_v41 = vpop.f32.mrf.mxu1 }
 0x13f   :  { %v1137_v49 = vpop.f32.mrf.mxu1 }
 0x140   :  { %v1138_v57 = vadd.f32 %v1137_v49, %v1136_v41 }
 0x141   :  { %v1139_v50 = vpop.f32.mrf.mxu1  ;;  %v1158_v51 = vpop.f32.mrf.mxu0 }
 0x143   :  { %v1140_v52 = vpop.f32.mrf.mxu1  ;;  %v1159_v53 = vpop.f32.mrf.mxu0 }
 0x144   :  { %v1160_v56 = vadd.f32 %v1159_v53, %v1158_v51 }
 0x145   :  { %v1161_v54 = vpop.f32.mrf.mxu0 }
 0x146   :  { %v849_v58 = vadd.f32 %v1160_v56, %v1138_v57 }
 0x147   :  { %v1162_v55 = vpop.f32.mrf.mxu0 }
 0x14d   :  { %v888_v59 = vpop.f32.mrf.mxu1 }
 0x14e   :  { %v889_v60 = vadd.f32 %v888_v59, %v849_v58 }
 0x14f   :  { %v1191_v61 = vpop.f32.mrf.mxu1 }
 0x150   :  { %895 = vrot.lane.b32.xlu1 %v889_v60, %s1278_s18 }
 0x151   :  { %v891_v62 = vpop.f32.mrf.mxu1 }
 0x153   :  { %v1192_v63 = vpop.f32.mrf.mxu1 }
 0x1c2   :  { %v896_v1 = vpop.permute.xlu1 %895 }
 0x1c3   :  { %v898_v2 = vsel %vm323_vm1, %v442_v45, %v896_v1 }
 0x1c4   :  { %v906_v3 = vadd.f32 %v1070_v0, %v898_v2 }
 0x1c6   :  { %v907_v4 = vmax.f32 %v906_v3, 0.0 }
 0x1c8   :  { %v908_v5 = vpack.c.bf16 %v907_v4, %v907_v4 }
 0x1ca   :  { %909 = vst [vmem:[%s1569_s3] sm:$0xf] %v908_v5 }

// kernel: resnext_forward.36
= control target key start
LH: loop header
LB: loop body
LE: loop exit
PB: predicated region body
PF: predicated region fallthrough
CT: control target
= control target key end

     0   :  { %s204_s6 = smov 0   ;;  %s225_s0 = inlined_call_operand.vmem [shape: bf16[2,1,512], index: 0, kind: input, shape index: {}]   ;;  %s226_s1 = inlined_call_operand.vmem [shape: f32[2,1,512], index: 1, kind: output, shape index: {}]  }
   0x1 LB: > { %s182_s7 = sadd.s32 4294967295, %s206_s6   ;;  %p186_p0 = scmp.ge.s32.totalorder %s206_s6, 1  ;;  %s206_s6 = sphi %s204_s6, %s11_s6  }
   0x2   : > { %p86_p1 = scmp.lt.s32.totalorder %s206_s6, 3 }
   0x4   : > { %p87_p2 = pnand %p186_p0, %p86_p1 }
   0x5   : > { %p104_p3 = scmp.lt.s32.totalorder (!%p87_p2), %s182_s7, 1 }
   0x6   : > { %90 = sbr.rel (%p87_p2) target bundleno = 21 (0x15), region = 24 }
   0xb   : > { %v119_v0 = vlaneseq  ;;  %v208_v1 = vmov 1966171168   ;;  %s228_s7 = smov (!%p104_p3, %s182_s7), 1 }
   0xc   : > { %v117_v2 = vunpack.c.l.s4 %v208_v1  ;;  %s187_s8 = sshll.u32 %s228_s7, 2 }
   0xd   : > { %v120_v3 = vshrl.u32 %v119_v0, 7  ;;  %s107_s11 = scalar_lea.vmem %s225_s0, %s187_s8  ;;  %s111_s14 = scalar_lea.vmem %s226_s1, %s187_s8  ;;  %vm126_vm0 = vcmp.lt.s32.totalorder %v119_v0, 512 }
   0xe   : > { %v118_v4 = vunpack.c.0.s8 %v117_v2  ;;  %v112_v6 = vld [vmem:[%s107_s11] sm:$0xf] }
   0xf   : > { %v113_v7 = vunpack.c.l.bf16 %v112_v6 }
  0x10   : > { %v121_v5 = vsub.s32 %v118_v4, %v120_v3 }
  0x12   : > { %v122_v8 = vrot.slane %v113_v7, %v121_v5 }
  0x14   : > { %128 = vst.msk [vmem:[%s111_s14] sm:$0xf] %vm126_vm0, %v122_v8 }
  0x15 PF: > { %s11_s6 = sadd.s32 1, %s206_s6  }
  0x16   : > { %p8_p4 = scmp.ge.s32.totalorder %s11_s6, 4  }
  0x18   :  { %10 = sbr.rel (!%p8_p4) target bundleno = 1 (0x1), region = 54 }

// kernel: resnext_forward.34
= control target key start
LH: loop header
LB: loop body
LE: loop exit
PB: predicated region body
PF: predicated region fallthrough
CT: control target
= control target key end

     0   :  { %s924_s1 = inlined_call_operand.vmem [shape: bf16[1,256,512], index: 1, kind: input, shape index: {}]   ;;  %s925_s0 = inlined_call_operand.vmem [shape: bf16[8,256], index: 0, kind: input, shape index: {}]   ;;  %s926_s2 = inlined_call_operand.vmem [shape: f32[1,512], index: 2, kind: input, shape index: {}]   ;;  %s927_s3 = inlined_call_operand.vmem [shape: bf16[8,512], index: 3, kind: output, shape index: {}]  }
   0x1   :  { %v602_v0 = vld [vmem:[%s924_s1 + $0xe4] ss:$16 sps:$4 sm:$0xff]   ;;  %v604_v1 = vld [vmem:[%s924_s1 + $0xec] ss:$16 sps:$4 sm:$0xff]   ;;  %v606_v2 = vld [vmem:[%s924_s1 + $0xe0] ss:$16 sps:$4 sm:$0xff]  }
   0x2   :  { %428 = vmatprep.subr.bf16.mxu0 %v602_v0  ;;  %v607_v3 = vld [vmem:[%s924_s1 + $0xe8] ss:$16 sps:$4 sm:$0xff]   ;;  %469 = vmatprep.subr.bf16.mxu1 %v604_v1  ;;  %v608_v4 = vld [vmem:[%s924_s1 + $0xc4] ss:$16 sps:$4 sm:$0xff]   ;;  %v610_v5 = vld [vmem:[%s924_s1 + $0xcc] ss:$16 sps:$4 sm:$0xff]  }
   0x3   :  { %429 = vmatpush1.bf16.msra.mxu0 %v606_v2  ;;  %470 = vmatpush1.bf16.msra.mxu1 %v607_v3  ;;  %v612_v6 = vld [vmem:[%s924_s1 + $0xc0] ss:$16 sps:$4 sm:$0xff]   ;;  %v613_v7 = vld [vmem:[%s924_s1 + $0xc8] ss:$16 sps:$4 sm:$0xff]   ;;  %v614_v8 = vld [vmem:[%s924_s1 + $0xa4] ss:$16 sps:$4 sm:$0xff]   ;;  %v81_v3 = vlaneseq }
   0x4   :  { %430 = vmatprep.subr.bf16.mxu0 %v608_v4  ;;  %471 = vmatprep.subr.bf16.mxu1 %v610_v5  ;;  %v616_v9 = vld [vmem:[%s924_s1 + $0xac] ss:$16 sps:$4 sm:$0xff]   ;;  %v618_v10 = vld [vmem:[%s924_s1 + $0xa0] ss:$16 sps:$4 sm:$0xff]   ;;  %v619_v11 = vld [vmem:[%s924_s1 + $0xa8] ss:$16 sps:$4 sm:$0xff]  }
   0x5   :  { %v620_v12 = vld [vmem:[%s924_s1 + $0x84] ss:$16 sps:$4 sm:$0xff]   ;;  %v622_v13 = vld [vmem:[%s924_s1 + $0x8c] ss:$16 sps:$4 sm:$0xff]   ;;  %v624_v14 = vld [vmem:[%s924_s1 + $0x80] ss:$16 sps:$4 sm:$0xff]  }
   0x6   :  { %v625_v15 = vld [vmem:[%s924_s1 + $0x88] ss:$16 sps:$4 sm:$0xff]   ;;  %v626_v16 = vld [vmem:[%s924_s1 + $0x64] ss:$16 sps:$4 sm:$0xff]   ;;  %v628_v17 = vld [vmem:[%s924_s1 + $0x6c] ss:$16 sps:$4 sm:$0xff]  }
   0x7   :  { %431 = vmatpush1.bf16.msra.mxu0 %v612_v6  ;;  %472 = vmatpush1.bf16.msra.mxu1 %v613_v7  ;;  %v630_v18 = vld [vmem:[%s924_s1 + $0x60] ss:$16 sps:$4 sm:$0xff]   ;;  %v631_v19 = vld [vmem:[%s924_s1 + $0x68] ss:$16 sps:$4 sm:$0xff]   ;;  %v632_v20 = vld [vmem:[%s924_s1 + $0x44] ss:$16 sps:$4 sm:$0xff]  }
   0x8   :  { %432 = vmatprep.subr.bf16.mxu0 %v614_v8  ;;  %473 = vmatprep.subr.bf16.mxu1 %v616_v9  ;;  %v634_v21 = vld [vmem:[%s924_s1 + $0x4c] ss:$16 sps:$4 sm:$0xff]   ;;  %v636_v22 = vld [vmem:[%s924_s1 + $0x40] ss:$16 sps:$4 sm:$0xff]   ;;  %v637_v23 = vld [vmem:[%s924_s1 + $0x48] ss:$16 sps:$4 sm:$0xff]  }
   0x9   :  { %v638_v24 = vld [vmem:[%s924_s1 + $0x24] ss:$16 sps:$4 sm:$0xff]   ;;  %v640_v25 = vld [vmem:[%s924_s1 + $0x2c] ss:$16 sps:$4 sm:$0xff]   ;;  %v642_v26 = vld [vmem:[%s924_s1 + $0x20] ss:$16 sps:$4 sm:$0xff]  }
   0xa   :  { %v643_v27 = vld [vmem:[%s924_s1 + $0x28] ss:$16 sps:$4 sm:$0xff]   ;;  %v644_v28 = vld [vmem:[%s924_s1 + $0x4] ss:$16 sps:$4 sm:$0xff]   ;;  %v646_v29 = vld [vmem:[%s924_s1 + $0xc] ss:$16 sps:$4 sm:$0xff]  }
   0xb   :  { %433 = vmatpush1.bf16.msra.mxu0 %v618_v10  ;;  %474 = vmatpush1.bf16.msra.mxu1 %v619_v11  ;;  %v648_v30 = vld [vmem:[%s924_s1] ss:$16 sps:$4 sm:$0xff]   ;;  %v649_v31 = vld [vmem:[%s924_s1 + $0x8] ss:$16 sps:$4 sm:$0xff]   ;;  %v650_v32 = vld [vmem:[%s924_s1 + $0x1e4] ss:$16 sps:$4 sm:$0xff]  }
   0xc   :  { %434 = vmatprep.subr.bf16.mxu0 %v620_v12  ;;  %475 = vmatprep.subr.bf16.mxu1 %v622_v13  ;;  %v652_v33 = vld [vmem:[%s924_s1 + $0x1ec] ss:$16 sps:$4 sm:$0xff]   ;;  %v654_v34 = vld [vmem:[%s924_s1 + $0x1e0] ss:$16 sps:$4 sm:$0xff]   ;;  %v655_v35 = vld [vmem:[%s924_s1 + $0x1e8] ss:$16 sps:$4 sm:$0xff]  }
   0xd   :  { %v656_v36 = vld [vmem:[%s924_s1 + $0x1c4] ss:$16 sps:$4 sm:$0xff]   ;;  %v658_v37 = vld [vmem:[%s924_s1 + $0x1cc] ss:$16 sps:$4 sm:$0xff]   ;;  %v660_v38 = vld [vmem:[%s924_s1 + $0x1c0] ss:$16 sps:$4 sm:$0xff]  }
   0xe   :  { %v661_v39 = vld [vmem:[%s924_s1 + $0x1c8] ss:$16 sps:$4 sm:$0xff]   ;;  %v662_v40 = vld [vmem:[%s924_s1 + $0x1a4] ss:$16 sps:$4 sm:$0xff]   ;;  %v664_v41 = vld [vmem:[%s924_s1 + $0x1ac] ss:$16 sps:$4 sm:$0xff]  }
   0xf   :  { %435 = vmatpush1.bf16.msra.mxu0 %v624_v14  ;;  %476 = vmatpush1.bf16.msra.mxu1 %v625_v15  ;;  %v666_v42 = vld [vmem:[%s924_s1 + $0x1a0] ss:$16 sps:$4 sm:$0xff]   ;;  %v667_v43 = vld [vmem:[%s924_s1 + $0x1a8] ss:$16 sps:$4 sm:$0xff]   ;;  %v668_v44 = vld [vmem:[%s924_s1 + $0x184] ss:$16 sps:$4 sm:$0xff]  }
  0x10   :  { %436 = vmatprep.subr.bf16.mxu0 %v626_v16  ;;  %477 = vmatprep.subr.bf16.mxu1 %v628_v17  ;;  %v670_v45 = vld [vmem:[%s924_s1 + $0x18c] ss:$16 sps:$4 sm:$0xff]   ;;  %v14_v46 = vld [vmem:[%s925_s0] sm:$0xff]  ;;  %v673_v49 = vld [vmem:[%s924_s1 + $0x188] ss:$16 sps:$4 sm:$0xff]   ;;  %v82_v4 = vshrl.u32 %v81_v3, 7 }
  0x11   :  { %v533_v47 = vcombine.high %v14_v46, %v14_v46  ;;  %v672_v48 = vld [vmem:[%s924_s1 + $0x180] ss:$16 sps:$4 sm:$0xff]   ;;  %v674_v50 = vld [vmem:[%s924_s1 + $0x164] ss:$16 sps:$4 sm:$0xff]   ;;  %v676_v51 = vld [vmem:[%s924_s1 + $0x16c] ss:$16 sps:$4 sm:$0xff]   ;;  %v532_v2 = vcombine.low %v14_v46, %v14_v46 }
  0x12   :  { %v678_v52 = vld [vmem:[%s924_s1 + $0x160] ss:$16 sps:$4 sm:$0xff]   ;;  %v679_v53 = vld [vmem:[%s924_s1 + $0x168] ss:$16 sps:$4 sm:$0xff]   ;;  %v680_v54 = vld [vmem:[%s924_s1 + $0x144] ss:$16 sps:$4 sm:$0xff]  }
  0x13   :  { %437 = vmatpush1.bf16.msra.mxu0 %v630_v18  ;;  %478 = vmatpush1.bf16.msra.mxu1 %v631_v19  ;;  %v682_v55 = vld [vmem:[%s924_s1 + $0x14c] ss:$16 sps:$4 sm:$0xff]   ;;  %v684_v56 = vld [vmem:[%s924_s1 + $0x140] ss:$16 sps:$4 sm:$0xff]   ;;  %v685_v57 = vld [vmem:[%s924_s1 + $0x148] ss:$16 sps:$4 sm:$0xff]  }
  0x14   :  { %438 = vmatprep.subr.bf16.mxu0 %v632_v20  ;;  %479 = vmatprep.subr.bf16.mxu1 %v634_v21  ;;  %v686_v58 = vld [vmem:[%s924_s1 + $0x124] ss:$16 sps:$4 sm:$0xff]   ;;  %v688_v59 = vld [vmem:[%s924_s1 + $0x12c] ss:$16 sps:$4 sm:$0xff]   ;;  %v690_v60 = vld [vmem:[%s924_s1 + $0x120] ss:$16 sps:$4 sm:$0xff]  }
  0x15   :  { %460 = vmatprep.mubr.bf16.mxu0 %v533_v47  ;;  %501 = vmatprep.mubr.bf16.mxu1 %v533_v47  ;;  %v691_v61 = vld [vmem:[%s924_s1 + $0x128] ss:$16 sps:$4 sm:$0xff]   ;;  %v692_v62 = vld [vmem:[%s924_s1 + $0x104] ss:$16 sps:$4 sm:$0xff]   ;;  %v694_v63 = vld [vmem:[%s924_s1 + $0x10c] ss:$16 sps:$4 sm:$0xff]  }
  0x16   :  { %v696_v0 = vld [vmem:[%s924_s1 + $0x100] ss:$16 sps:$4 sm:$0xff]   ;;  %v697_v1 = vld [vmem:[%s924_s1 + $0x108] ss:$16 sps:$4 sm:$0xff]   ;;  %v83_v5 = vsub.s32 0, %v82_v4  ;;  %v91_v6 = vsub.s32 2, %v82_v4 }
  0x17   :  { %439 = vmatpush1.bf16.msra.mxu0 %v636_v22  ;;  %480 = vmatpush1.bf16.msra.mxu1 %v637_v23  ;;  %v87_v7 = vsub.s32 1, %v82_v4  ;;  %v95_v8 = vsub.s32 3, %v82_v4  ;;  %v79_v9 = vld [vmem:[%s926_s2] sm:$0xf] }
  0x18   :  { %440 = vmatprep.subr.bf16.mxu0 %v638_v24  ;;  %481 = vmatprep.subr.bf16.mxu1 %v640_v25  ;;  %v84_v10 = vrot.slane %v79_v9, %v83_v5  ;;  %v92_v11 = vrot.slane %v79_v9, %v91_v6 }
  0x19   :  { %v88_v12 = vrot.slane %v79_v9, %v87_v7  ;;  %v96_v13 = vrot.slane %v79_v9, %v95_v8 }
  0x1b   :  { %441 = vmatpush1.bf16.msra.mxu0 %v642_v26  ;;  %482 = vmatpush1.bf16.msra.mxu1 %v643_v27 }
  0x1c   :  { %442 = vmatprep.subr.bf16.mxu0 %v644_v28  ;;  %483 = vmatprep.subr.bf16.mxu1 %v646_v29 }
  0x1f   :  { %443 = vmatpush1.bf16.msra.mxu0 %v648_v30  ;;  %484 = vmatpush1.bf16.msra.mxu1 %v649_v31 }
  0x20   :  { %444 = vmatprep.subr.bf16.mxu0 %v650_v32  ;;  %485 = vmatprep.subr.bf16.mxu1 %v652_v33 }
  0x23   :  { %445 = vmatpush2.bf16.msra.mxu0 %v654_v34  ;;  %486 = vmatpush2.bf16.msra.mxu1 %v655_v35 }
  0x24   :  { %446 = vmatprep.subr.bf16.mxu0 %v656_v36  ;;  %487 = vmatprep.subr.bf16.mxu1 %v658_v37 }
  0x27   :  { %447 = vmatpush2.bf16.msra.mxu0 %v660_v38  ;;  %488 = vmatpush2.bf16.msra.mxu1 %v661_v39 }
  0x28   :  { %448 = vmatprep.subr.bf16.mxu0 %v662_v40  ;;  %489 = vmatprep.subr.bf16.mxu1 %v664_v41 }
  0x2b   :  { %449 = vmatpush2.bf16.msra.mxu0 %v666_v42  ;;  %490 = vmatpush2.bf16.msra.mxu1 %v667_v43 }
  0x2c   :  { %450 = vmatprep.subr.bf16.mxu0 %v668_v44  ;;  %491 = vmatprep.subr.bf16.mxu1 %v670_v45 }
  0x2f   :  { %451 = vmatpush2.bf16.msra.mxu0 %v672_v48  ;;  %492 = vmatpush2.bf16.msra.mxu1 %v673_v49 }
  0x30   :  { %452 = vmatprep.subr.bf16.mxu0 %v674_v50  ;;  %493 = vmatprep.subr.bf16.mxu1 %v676_v51 }
  0x33   :  { %453 = vmatpush2.bf16.msra.mxu0 %v678_v52  ;;  %494 = vmatpush2.bf16.msra.mxu1 %v679_v53 }
  0x34   :  { %454 = vmatprep.subr.bf16.mxu0 %v680_v54  ;;  %495 = vmatprep.subr.bf16.mxu1 %v682_v55 }
  0x37   :  { %455 = vmatpush2.bf16.msra.mxu0 %v684_v56  ;;  %496 = vmatpush2.bf16.msra.mxu1 %v685_v57 }
  0x38   :  { %456 = vmatprep.subr.bf16.mxu0 %v686_v58  ;;  %497 = vmatprep.subr.bf16.mxu1 %v688_v59 }
  0x3b   :  { %457 = vmatpush2.bf16.msra.mxu0 %v690_v60  ;;  %498 = vmatpush2.bf16.msra.mxu1 %v691_v61 }
  0x3c   :  { %458 = vmatprep.subr.bf16.mxu0 %v692_v62  ;;  %499 = vmatprep.subr.bf16.mxu1 %v694_v63 }
  0x3f   :  { %459 = vmatpush2.bf16.msra.mxu0 %v696_v0  ;;  %500 = vmatpush2.bf16.msra.mxu1 %v697_v1 }
  0x42   :  { %461 = vmatmul.mubr.bf16.vlgmr.msra.gmra.mxu0 %v532_v2  ;;  %502 = vmatmul.mubr.bf16.vlgmr.msra.gmra.mxu1 %v532_v2 }
 0x102   :  { %v462_v14 = vpop.f32.mrf.mxu0  ;;  %v503_v15 = vpop.f32.mrf.mxu1 }
 0x103   :  { %v463_v18 = vadd.f32 %v462_v14, %v84_v10  ;;  %v504_v19 = vadd.f32 %v503_v15, %v92_v11 }
 0x104   :  { %v464_v16 = vpop.f32.mrf.mxu0  ;;  %v505_v17 = vpop.f32.mrf.mxu1 }
 0x105   :  { %v465_v20 = vadd.f32 %v464_v16, %v88_v12  ;;  %v506_v21 = vadd.f32 %v505_v17, %v96_v13 }
 0x106   :  { %v466_v22 = vpop.f32.mrf.mxu0  ;;  %v507_v23 = vpop.f32.mrf.mxu1 }
 0x107   :  { %v600_v24 = vpack.c.bf16 %v465_v20, %v463_v18  ;;  %v601_v25 = vpack.c.bf16 %v506_v21, %v504_v19 }
 0x108   :  { %v467_v26 = vpop.f32.mrf.mxu0  ;;  %v508_v27 = vpop.f32.mrf.mxu1 }
 0x109   :  { %526 = vst [vmem:[%s927_s3] sm:$0xff] %v600_v24  ;;  %527 = vst [vmem:[%s927_s3 + $0x8] sm:$0xff] %v601_v25 }

// kernel: resnext_forward.35
= control target key start
LH: loop header
LB: loop body
LE: loop exit
PB: predicated region body
PF: predicated region fallthrough
CT: control target
= control target key end

     0   :  { %s952_s1 = inlined_call_operand.vmem [shape: bf16[1,256,512], index: 1, kind: input, shape index: {}]   ;;  %s953_s0 = inlined_call_operand.vmem [shape: bf16[8,256], index: 0, kind: input, shape index: {}]   ;;  %s954_s2 = inlined_call_operand.vmem [shape: f32[1,512], index: 2, kind: input, shape index: {}]   ;;  %s955_s3 = inlined_call_operand.vmem [shape: bf16[8,512], index: 3, kind: input, shape index: {}]   ;;  %s956_s4 = inlined_call_operand.vmem [shape: bf16[8,512], index: 4, kind: output, shape index: {}]  }
   0x1   :  { %v619_v0 = vld [vmem:[%s952_s1 + $0xe4] ss:$16 sps:$4 sm:$0xff]   ;;  %v621_v1 = vld [vmem:[%s952_s1 + $0xec] ss:$16 sps:$4 sm:$0xff]   ;;  %v623_v2 = vld [vmem:[%s952_s1 + $0xe0] ss:$16 sps:$4 sm:$0xff]  }
   0x2   :  { %431 = vmatprep.subr.bf16.mxu0 %v619_v0  ;;  %v624_v3 = vld [vmem:[%s952_s1 + $0xe8] ss:$16 sps:$4 sm:$0xff]   ;;  %472 = vmatprep.subr.bf16.mxu1 %v621_v1  ;;  %v625_v4 = vld [vmem:[%s952_s1 + $0xc4] ss:$16 sps:$4 sm:$0xff]   ;;  %v627_v5 = vld [vmem:[%s952_s1 + $0xcc] ss:$16 sps:$4 sm:$0xff]  }
   0x3   :  { %432 = vmatpush1.bf16.msra.mxu0 %v623_v2  ;;  %473 = vmatpush1.bf16.msra.mxu1 %v624_v3  ;;  %v629_v6 = vld [vmem:[%s952_s1 + $0xc0] ss:$16 sps:$4 sm:$0xff]   ;;  %v630_v7 = vld [vmem:[%s952_s1 + $0xc8] ss:$16 sps:$4 sm:$0xff]   ;;  %v631_v8 = vld [vmem:[%s952_s1 + $0xa4] ss:$16 sps:$4 sm:$0xff]   ;;  %v84_v3 = vlaneseq }
   0x4   :  { %433 = vmatprep.subr.bf16.mxu0 %v625_v4  ;;  %474 = vmatprep.subr.bf16.mxu1 %v627_v5  ;;  %v633_v9 = vld [vmem:[%s952_s1 + $0xac] ss:$16 sps:$4 sm:$0xff]   ;;  %v635_v10 = vld [vmem:[%s952_s1 + $0xa0] ss:$16 sps:$4 sm:$0xff]   ;;  %v636_v11 = vld [vmem:[%s952_s1 + $0xa8] ss:$16 sps:$4 sm:$0xff]  }
   0x5   :  { %v637_v12 = vld [vmem:[%s952_s1 + $0x84] ss:$16 sps:$4 sm:$0xff]   ;;  %v639_v13 = vld [vmem:[%s952_s1 + $0x8c] ss:$16 sps:$4 sm:$0xff]   ;;  %v641_v14 = vld [vmem:[%s952_s1 + $0x80] ss:$16 sps:$4 sm:$0xff]  }
   0x6   :  { %v642_v15 = vld [vmem:[%s952_s1 + $0x88] ss:$16 sps:$4 sm:$0xff]   ;;  %v643_v16 = vld [vmem:[%s952_s1 + $0x64] ss:$16 sps:$4 sm:$0xff]   ;;  %v645_v17 = vld [vmem:[%s952_s1 + $0x6c] ss:$16 sps:$4 sm:$0xff]  }
   0x7   :  { %434 = vmatpush1.bf16.msra.mxu0 %v629_v6  ;;  %475 = vmatpush1.bf16.msra.mxu1 %v630_v7  ;;  %v647_v18 = vld [vmem:[%s952_s1 + $0x60] ss:$16 sps:$4 sm:$0xff]   ;;  %v648_v19 = vld [vmem:[%s952_s1 + $0x68] ss:$16 sps:$4 sm:$0xff]   ;;  %v649_v20 = vld [vmem:[%s952_s1 + $0x44] ss:$16 sps:$4 sm:$0xff]  }
   0x8   :  { %435 = vmatprep.subr.bf16.mxu0 %v631_v8  ;;  %476 = vmatprep.subr.bf16.mxu1 %v633_v9  ;;  %v651_v21 = vld [vmem:[%s952_s1 + $0x4c] ss:$16 sps:$4 sm:$0xff]   ;;  %v653_v22 = vld [vmem:[%s952_s1 + $0x40] ss:$16 sps:$4 sm:$0xff]   ;;  %v654_v23 = vld [vmem:[%s952_s1 + $0x48] ss:$16 sps:$4 sm:$0xff]  }
   0x9   :  { %v655_v24 = vld [vmem:[%s952_s1 + $0x24] ss:$16 sps:$4 sm:$0xff]   ;;  %v657_v25 = vld [vmem:[%s952_s1 + $0x2c] ss:$16 sps:$4 sm:$0xff]   ;;  %v659_v26 = vld [vmem:[%s952_s1 + $0x20] ss:$16 sps:$4 sm:$0xff]  }
   0xa   :  { %v660_v27 = vld [vmem:[%s952_s1 + $0x28] ss:$16 sps:$4 sm:$0xff]   ;;  %v661_v28 = vld [vmem:[%s952_s1 + $0x4] ss:$16 sps:$4 sm:$0xff]   ;;  %v663_v29 = vld [vmem:[%s952_s1 + $0xc] ss:$16 sps:$4 sm:$0xff]  }
   0xb   :  { %436 = vmatpush1.bf16.msra.mxu0 %v635_v10  ;;  %477 = vmatpush1.bf16.msra.mxu1 %v636_v11  ;;  %v665_v30 = vld [vmem:[%s952_s1] ss:$16 sps:$4 sm:$0xff]   ;;  %v666_v31 = vld [vmem:[%s952_s1 + $0x8] ss:$16 sps:$4 sm:$0xff]   ;;  %v667_v32 = vld [vmem:[%s952_s1 + $0x1e4] ss:$16 sps:$4 sm:$0xff]  }
   0xc   :  { %437 = vmatprep.subr.bf16.mxu0 %v637_v12  ;;  %478 = vmatprep.subr.bf16.mxu1 %v639_v13  ;;  %v669_v33 = vld [vmem:[%s952_s1 + $0x1ec] ss:$16 sps:$4 sm:$0xff]   ;;  %v671_v34 = vld [vmem:[%s952_s1 + $0x1e0] ss:$16 sps:$4 sm:$0xff]   ;;  %v672_v35 = vld [vmem:[%s952_s1 + $0x1e8] ss:$16 sps:$4 sm:$0xff]  }
   0xd   :  { %v673_v36 = vld [vmem:[%s952_s1 + $0x1c4] ss:$16 sps:$4 sm:$0xff]   ;;  %v675_v37 = vld [vmem:[%s952_s1 + $0x1cc] ss:$16 sps:$4 sm:$0xff]   ;;  %v677_v38 = vld [vmem:[%s952_s1 + $0x1c0] ss:$16 sps:$4 sm:$0xff]  }
   0xe   :  { %v678_v39 = vld [vmem:[%s952_s1 + $0x1c8] ss:$16 sps:$4 sm:$0xff]   ;;  %v679_v40 = vld [vmem:[%s952_s1 + $0x1a4] ss:$16 sps:$4 sm:$0xff]   ;;  %v681_v41 = vld [vmem:[%s952_s1 + $0x1ac] ss:$16 sps:$4 sm:$0xff]  }
   0xf   :  { %438 = vmatpush1.bf16.msra.mxu0 %v641_v14  ;;  %479 = vmatpush1.bf16.msra.mxu1 %v642_v15  ;;  %v683_v42 = vld [vmem:[%s952_s1 + $0x1a0] ss:$16 sps:$4 sm:$0xff]   ;;  %v684_v43 = vld [vmem:[%s952_s1 + $0x1a8] ss:$16 sps:$4 sm:$0xff]   ;;  %v685_v44 = vld [vmem:[%s952_s1 + $0x184] ss:$16 sps:$4 sm:$0xff]  }
  0x10   :  { %439 = vmatprep.subr.bf16.mxu0 %v643_v16  ;;  %480 = vmatprep.subr.bf16.mxu1 %v645_v17  ;;  %v687_v45 = vld [vmem:[%s952_s1 + $0x18c] ss:$16 sps:$4 sm:$0xff]   ;;  %v17_v46 = vld [vmem:[%s953_s0] sm:$0xff]  ;;  %v690_v49 = vld [vmem:[%s952_s1 + $0x188] ss:$16 sps:$4 sm:$0xff]   ;;  %v85_v4 = vshrl.u32 %v84_v3, 7 }
  0x11   :  { %v550_v47 = vcombine.high %v17_v46, %v17_v46  ;;  %v689_v48 = vld [vmem:[%s952_s1 + $0x180] ss:$16 sps:$4 sm:$0xff]   ;;  %v691_v50 = vld [vmem:[%s952_s1 + $0x164] ss:$16 sps:$4 sm:$0xff]   ;;  %v693_v51 = vld [vmem:[%s952_s1 + $0x16c] ss:$16 sps:$4 sm:$0xff]   ;;  %v549_v2 = vcombine.low %v17_v46, %v17_v46 }
  0x12   :  { %v695_v52 = vld [vmem:[%s952_s1 + $0x160] ss:$16 sps:$4 sm:$0xff]   ;;  %v696_v53 = vld [vmem:[%s952_s1 + $0x168] ss:$16 sps:$4 sm:$0xff]   ;;  %v697_v54 = vld [vmem:[%s952_s1 + $0x144] ss:$16 sps:$4 sm:$0xff]  }
  0x13   :  { %440 = vmatpush1.bf16.msra.mxu0 %v647_v18  ;;  %481 = vmatpush1.bf16.msra.mxu1 %v648_v19  ;;  %v699_v55 = vld [vmem:[%s952_s1 + $0x14c] ss:$16 sps:$4 sm:$0xff]   ;;  %v701_v56 = vld [vmem:[%s952_s1 + $0x140] ss:$16 sps:$4 sm:$0xff]   ;;  %v702_v57 = vld [vmem:[%s952_s1 + $0x148] ss:$16 sps:$4 sm:$0xff]  }
  0x14   :  { %441 = vmatprep.subr.bf16.mxu0 %v649_v20  ;;  %482 = vmatprep.subr.bf16.mxu1 %v651_v21  ;;  %v703_v58 = vld [vmem:[%s952_s1 + $0x124] ss:$16 sps:$4 sm:$0xff]   ;;  %v705_v59 = vld [vmem:[%s952_s1 + $0x12c] ss:$16 sps:$4 sm:$0xff]   ;;  %v707_v60 = vld [vmem:[%s952_s1 + $0x120] ss:$16 sps:$4 sm:$0xff]  }
  0x15   :  { %463 = vmatprep.mubr.bf16.mxu0 %v550_v47  ;;  %504 = vmatprep.mubr.bf16.mxu1 %v550_v47  ;;  %v708_v61 = vld [vmem:[%s952_s1 + $0x128] ss:$16 sps:$4 sm:$0xff]   ;;  %v709_v62 = vld [vmem:[%s952_s1 + $0x104] ss:$16 sps:$4 sm:$0xff]   ;;  %v711_v63 = vld [vmem:[%s952_s1 + $0x10c] ss:$16 sps:$4 sm:$0xff]  }
  0x16   :  { %v713_v0 = vld [vmem:[%s952_s1 + $0x100] ss:$16 sps:$4 sm:$0xff]   ;;  %v714_v1 = vld [vmem:[%s952_s1 + $0x108] ss:$16 sps:$4 sm:$0xff]   ;;  %v86_v5 = vsub.s32 0, %v85_v4  ;;  %v94_v6 = vsub.s32 2, %v85_v4 }
  0x17   :  { %442 = vmatpush1.bf16.msra.mxu0 %v653_v22  ;;  %483 = vmatpush1.bf16.msra.mxu1 %v654_v23  ;;  %v82_v7 = vld [vmem:[%s954_s2] sm:$0xf]  ;;  %v90_v8 = vsub.s32 1, %v85_v4  ;;  %v98_v9 = vsub.s32 3, %v85_v4  ;;  %v514_v11 = vld [vmem:[%s955_s3 + $0x8] sm:$0xff] }
  0x18   :  { %443 = vmatprep.subr.bf16.mxu0 %v655_v24  ;;  %484 = vmatprep.subr.bf16.mxu1 %v657_v25  ;;  %v513_v10 = vld [vmem:[%s955_s3] sm:$0xff]  ;;  %v87_v12 = vrot.slane %v82_v7, %v86_v5  ;;  %v95_v13 = vrot.slane %v82_v7, %v94_v6  ;;  %v517_v15 = vunpack.c.l.bf16 %v514_v11  ;;  %v518_v23 = vunpack.c.h.bf16 %v514_v11 }
  0x19   :  { %v515_v14 = vunpack.c.l.bf16 %v513_v10  ;;  %v91_v16 = vrot.slane %v82_v7, %v90_v8  ;;  %v99_v17 = vrot.slane %v82_v7, %v98_v9  ;;  %v516_v22 = vunpack.c.h.bf16 %v513_v10 }
  0x1b   :  { %444 = vmatpush1.bf16.msra.mxu0 %v659_v26  ;;  %485 = vmatpush1.bf16.msra.mxu1 %v660_v27 }
  0x1c   :  { %445 = vmatprep.subr.bf16.mxu0 %v661_v28  ;;  %486 = vmatprep.subr.bf16.mxu1 %v663_v29 }
  0x1f   :  { %446 = vmatpush1.bf16.msra.mxu0 %v665_v30  ;;  %487 = vmatpush1.bf16.msra.mxu1 %v666_v31 }
  0x20   :  { %447 = vmatprep.subr.bf16.mxu0 %v667_v32  ;;  %488 = vmatprep.subr.bf16.mxu1 %v669_v33 }
  0x23   :  { %448 = vmatpush2.bf16.msra.mxu0 %v671_v34  ;;  %489 = vmatpush2.bf16.msra.mxu1 %v672_v35 }
  0x24   :  { %449 = vmatprep.subr.bf16.mxu0 %v673_v36  ;;  %490 = vmatprep.subr.bf16.mxu1 %v675_v37 }
  0x27   :  { %450 = vmatpush2.bf16.msra.mxu0 %v677_v38  ;;  %491 = vmatpush2.bf16.msra.mxu1 %v678_v39 }
  0x28   :  { %451 = vmatprep.subr.bf16.mxu0 %v679_v40  ;;  %492 = vmatprep.subr.bf16.mxu1 %v681_v41 }
  0x2b   :  { %452 = vmatpush2.bf16.msra.mxu0 %v683_v42  ;;  %493 = vmatpush2.bf16.msra.mxu1 %v684_v43 }
  0x2c   :  { %453 = vmatprep.subr.bf16.mxu0 %v685_v44  ;;  %494 = vmatprep.subr.bf16.mxu1 %v687_v45 }
  0x2f   :  { %454 = vmatpush2.bf16.msra.mxu0 %v689_v48  ;;  %495 = vmatpush2.bf16.msra.mxu1 %v690_v49 }
  0x30   :  { %455 = vmatprep.subr.bf16.mxu0 %v691_v50  ;;  %496 = vmatprep.subr.bf16.mxu1 %v693_v51 }
  0x33   :  { %456 = vmatpush2.bf16.msra.mxu0 %v695_v52  ;;  %497 = vmatpush2.bf16.msra.mxu1 %v696_v53 }
  0x34   :  { %457 = vmatprep.subr.bf16.mxu0 %v697_v54  ;;  %498 = vmatprep.subr.bf16.mxu1 %v699_v55 }
  0x37   :  { %458 = vmatpush2.bf16.msra.mxu0 %v701_v56  ;;  %499 = vmatpush2.bf16.msra.mxu1 %v702_v57 }
  0x38   :  { %459 = vmatprep.subr.bf16.mxu0 %v703_v58  ;;  %500 = vmatprep.subr.bf16.mxu1 %v705_v59 }
  0x3b   :  { %460 = vmatpush2.bf16.msra.mxu0 %v707_v60  ;;  %501 = vmatpush2.bf16.msra.mxu1 %v708_v61 }
  0x3c   :  { %461 = vmatprep.subr.bf16.mxu0 %v709_v62  ;;  %502 = vmatprep.subr.bf16.mxu1 %v711_v63 }
  0x3f   :  { %462 = vmatpush2.bf16.msra.mxu0 %v713_v0  ;;  %503 = vmatpush2.bf16.msra.mxu1 %v714_v1 }
  0x42   :  { %464 = vmatmul.mubr.bf16.vlgmr.msra.gmra.mxu0 %v549_v2  ;;  %505 = vmatmul.mubr.bf16.vlgmr.msra.gmra.mxu1 %v549_v2 }
 0x102   :  { %v465_v18 = vpop.f32.mrf.mxu0  ;;  %v506_v19 = vpop.f32.mrf.mxu1 }
 0x103   :  { %v466_v20 = vadd.f32 %v465_v18, %v87_v12  ;;  %v507_v21 = vadd.f32 %v506_v19, %v95_v13 }
 0x104   :  { %v467_v24 = vpop.f32.mrf.mxu0  ;;  %v508_v25 = vpop.f32.mrf.mxu1 }
 0x105   :  { %v519_v26 = vadd.f32 %v515_v14, %v466_v20  ;;  %v521_v27 = vadd.f32 %v517_v15, %v507_v21  ;;  %v468_v28 = vadd.f32 %v467_v24, %v91_v16  ;;  %v509_v29 = vadd.f32 %v508_v25, %v99_v17 }
 0x106   :  { %v469_v30 = vpop.f32.mrf.mxu0  ;;  %v510_v31 = vpop.f32.mrf.mxu1 }
 0x107   :  { %v520_v32 = vadd.f32 %v516_v22, %v468_v28  ;;  %v522_v33 = vadd.f32 %v518_v23, %v509_v29  ;;  %v523_v36 = vmax.f32 %v519_v26, 0.0  ;;  %v525_v37 = vmax.f32 %v521_v27, 0.0 }
 0x108   :  { %v470_v34 = vpop.f32.mrf.mxu0  ;;  %v511_v35 = vpop.f32.mrf.mxu1 }
 0x109   :  { %v524_v38 = vmax.f32 %v520_v32, 0.0  ;;  %v526_v39 = vmax.f32 %v522_v33, 0.0 }
 0x10b   :  { %v617_v40 = vpack.c.bf16 %v524_v38, %v523_v36  ;;  %v618_v41 = vpack.c.bf16 %v526_v39, %v525_v37 }
 0x10d   :  { %543 = vst [vmem:[%s956_s4] sm:$0xff] %v617_v40  ;;  %544 = vst [vmem:[%s956_s4 + $0x8] sm:$0xff] %v618_v41 }

// kernel: resnext_forward.33
= control target key start
LH: loop header
LB: loop body
LE: loop exit
PB: predicated region body
PF: predicated region fallthrough
CT: control target
= control target key end

     0   :  { %vm2378_vm0 = vmmov 0   ;;  %s2887_s1 = inlined_call_operand.vmem [shape: bf16[2,1152,128], index: 1, kind: input, shape index: {}]   ;;  %s2888_s0 = inlined_call_operand.vmem [shape: bf16[8,2304], index: 0, kind: input, shape index: {}]   ;;  %s2889_s2 = inlined_call_operand.vmem [shape: f32[1,256], index: 2, kind: input, shape index: {}]   ;;  %s2890_s3 = inlined_call_operand.vmem [shape: bf16[8,256], index: 3, kind: output, shape index: {}]  }
   0x1   :  { %v2215_v0 = vld [vmem:[%s2887_s1 + $0x78] sm:$0xff]   ;;  %v2219_v4 = vld [vmem:[%s2887_s1 + $0x70] sm:$0xff]   ;;  %v2223_v8 = vld [vmem:[%s2887_s1 + $0x68] sm:$0xff]  }
   0x2   :  { %v2216_v1 = vld [vmem:[%s2887_s1 + $0xf8] sm:$0xff]   ;;  %1979 = vmatprep.subr.bf16.mxu0 %v2215_v0  ;;  %v2220_v5 = vld [vmem:[%s2887_s1 + $0xf0] sm:$0xff]   ;;  %v2224_v9 = vld [vmem:[%s2887_s1 + $0xe8] sm:$0xff]  }
   0x3   :  { %v2217_v2 = vld [vmem:[%s2887_s1 + $0x38] sm:$0xff]   ;;  %2001 = vmatprep.subr.bf16.mxu1 %v2216_v1  ;;  %v2221_v6 = vld [vmem:[%s2887_s1 + $0x30] sm:$0xff]   ;;  %v2225_v10 = vld [vmem:[%s2887_s1 + $0x28] sm:$0xff]  }
   0x4   :  { %v2218_v3 = vld [vmem:[%s2887_s1 + $0xb8] sm:$0xff]   ;;  %1980 = vmatpush3.bf16.msra.mxu0 %v2217_v2  ;;  %v2222_v7 = vld [vmem:[%s2887_s1 + $0xb0] sm:$0xff]   ;;  %v2226_v11 = vld [vmem:[%s2887_s1 + $0xa8] sm:$0xff]  }
   0x5   :  { %2002 = vmatpush3.bf16.msra.mxu1 %v2218_v3  ;;  %1981 = vmatprep.subr.bf16.mxu0 %v2219_v4  ;;  %v2227_v12 = vld [vmem:[%s2887_s1 + $0x60] sm:$0xff]   ;;  %v2231_v16 = vld [vmem:[%s2887_s1 + $0x58] sm:$0xff]   ;;  %v2235_v20 = vld [vmem:[%s2887_s1 + $0x50] sm:$0xff]  }
   0x6   :  { %2003 = vmatprep.subr.bf16.mxu1 %v2220_v5  ;;  %v2228_v13 = vld [vmem:[%s2887_s1 + $0xe0] sm:$0xff]   ;;  %v2232_v17 = vld [vmem:[%s2887_s1 + $0xd8] sm:$0xff]   ;;  %v2236_v21 = vld [vmem:[%s2887_s1 + $0xd0] sm:$0xff]  }
   0x7   :  { %v2229_v14 = vld [vmem:[%s2887_s1 + $0x20] sm:$0xff]   ;;  %v2233_v18 = vld [vmem:[%s2887_s1 + $0x18] sm:$0xff]   ;;  %v2237_v22 = vld [vmem:[%s2887_s1 + $0x10] sm:$0xff]  }
   0x8   :  { %1982 = vmatpush3.bf16.msra.mxu0 %v2221_v6  ;;  %v2230_v15 = vld [vmem:[%s2887_s1 + $0xa0] sm:$0xff]   ;;  %v2234_v19 = vld [vmem:[%s2887_s1 + $0x98] sm:$0xff]   ;;  %v2238_v23 = vld [vmem:[%s2887_s1 + $0x90] sm:$0xff]  }
   0x9   :  { %2004 = vmatpush3.bf16.msra.mxu1 %v2222_v7  ;;  %1983 = vmatprep.subr.bf16.mxu0 %v2223_v8  ;;  %v2239_v24 = vld [vmem:[%s2887_s1 + $0x48] sm:$0xff]   ;;  %v2243_v28 = vld [vmem:[%s2887_s1 + $0x40] sm:$0xff]   ;;  %v2251_v38 = vld [vmem:[%s2887_s1 + $0x178] sm:$0xff]  }
   0xa   :  { %2005 = vmatprep.subr.bf16.mxu1 %v2224_v9  ;;  %v2240_v25 = vld [vmem:[%s2887_s1 + $0xc8] sm:$0xff]   ;;  %v2244_v29 = vld [vmem:[%s2887_s1 + $0xc0] sm:$0xff]   ;;  %v2252_v39 = vld [vmem:[%s2887_s1 + $0x1f8] sm:$0xff]  }
   0xb   :  { %v2241_v26 = vld [vmem:[%s2887_s1 + $0x8] sm:$0xff]   ;;  %v2245_v30 = vld [vmem:[%s2887_s1] sm:$0xff]   ;;  %v2253_v40 = vld [vmem:[%s2887_s1 + $0x138] sm:$0xff]  }
   0xc   :  { %1984 = vmatpush3.bf16.msra.mxu0 %v2225_v10  ;;  %v2242_v27 = vld [vmem:[%s2887_s1 + $0x88] sm:$0xff]   ;;  %v2246_v31 = vld [vmem:[%s2887_s1 + $0x80] sm:$0xff]   ;;  %v2254_v41 = vld [vmem:[%s2887_s1 + $0x1b8] sm:$0xff]  }
   0xd   :  { %2006 = vmatpush3.bf16.msra.mxu1 %v2226_v11  ;;  %1985 = vmatprep.subr.bf16.mxu0 %v2227_v12  ;;  %v15_v32 = vld [vmem:[%s2888_s0] sm:$0xff]  ;;  %v16_v33 = vld [vmem:[%s2888_s0 + $0x8] sm:$0xff]  ;;  %v2255_v42 = vld [vmem:[%s2887_s1 + $0x170] sm:$0xff]  }
   0xe   :  { %2007 = vmatprep.subr.bf16.mxu1 %v2228_v13  ;;  %v1671_v34 = vcombine.low %v15_v32, %v15_v32  ;;  %v1672_v35 = vcombine.high %v15_v32, %v15_v32  ;;  %v1673_v36 = vcombine.low %v16_v33, %v16_v33  ;;  %v1674_v37 = vcombine.high %v16_v33, %v16_v33  ;;  %v2256_v43 = vld [vmem:[%s2887_s1 + $0x1f0] sm:$0xff]   ;;  %v2259_v46 = vld [vmem:[%s2887_s1 + $0x168] sm:$0xff]   ;;  %v2263_v50 = vld [vmem:[%s2887_s1 + $0x160] sm:$0xff]  }
   0xf   :  { %v2257_v44 = vld [vmem:[%s2887_s1 + $0x130] sm:$0xff]   ;;  %v2260_v47 = vld [vmem:[%s2887_s1 + $0x1e8] sm:$0xff]   ;;  %v2264_v51 = vld [vmem:[%s2887_s1 + $0x1e0] sm:$0xff]   ;;  %v2377_v13 = vmov 0.0  }
  0x10   :  { %1986 = vmatpush3.bf16.msra.mxu0 %v2229_v14  ;;  %660 = vmatprep.mubr.bf16.mxu0 %v1672_v35  ;;  %v2258_v45 = vld [vmem:[%s2887_s1 + $0x1b0] sm:$0xff]   ;;  %v2261_v48 = vld [vmem:[%s2887_s1 + $0x128] sm:$0xff]   ;;  %v2265_v52 = vld [vmem:[%s2887_s1 + $0x120] sm:$0xff]  }
  0x11   :  { %2008 = vmatpush3.bf16.msra.mxu1 %v2230_v15  ;;  %1987 = vmatprep.subr.bf16.mxu0 %v2231_v16  ;;  %v2262_v49 = vld [vmem:[%s2887_s1 + $0x1a8] sm:$0xff]   ;;  %v2266_v53 = vld [vmem:[%s2887_s1 + $0x1a0] sm:$0xff]   ;;  %v2267_v54 = vld [vmem:[%s2887_s1 + $0x158] sm:$0xff]  }
  0x12   :  { %2009 = vmatprep.subr.bf16.mxu1 %v2232_v17  ;;  %700 = vmatprep.mubr.bf16.mxu1 %v1674_v37  ;;  %v2268_v55 = vld [vmem:[%s2887_s1 + $0x1d8] sm:$0xff]   ;;  %v2271_v58 = vld [vmem:[%s2887_s1 + $0x150] sm:$0xff]   ;;  %v2275_v62 = vld [vmem:[%s2887_s1 + $0x148] sm:$0xff]  }
  0x13   :  { %v2269_v56 = vld [vmem:[%s2887_s1 + $0x118] sm:$0xff]   ;;  %v2272_v59 = vld [vmem:[%s2887_s1 + $0x1d0] sm:$0xff]   ;;  %v2276_v63 = vld [vmem:[%s2887_s1 + $0x1c8] sm:$0xff]  }
  0x14   :  { %1988 = vmatpush3.bf16.msra.mxu0 %v2233_v18  ;;  %v2270_v57 = vld [vmem:[%s2887_s1 + $0x198] sm:$0xff]   ;;  %v2273_v60 = vld [vmem:[%s2887_s1 + $0x110] sm:$0xff]   ;;  %v2277_v0 = vld [vmem:[%s2887_s1 + $0x108] sm:$0xff]  }
  0x15   :  { %2010 = vmatpush3.bf16.msra.mxu1 %v2234_v19  ;;  %1989 = vmatprep.subr.bf16.mxu0 %v2235_v20  ;;  %v2274_v61 = vld [vmem:[%s2887_s1 + $0x190] sm:$0xff]   ;;  %v2278_v1 = vld [vmem:[%s2887_s1 + $0x188] sm:$0xff]   ;;  %v2279_v2 = vld [vmem:[%s2887_s1 + $0x140] sm:$0xff]  }
  0x16   :  { %2011 = vmatprep.subr.bf16.mxu1 %v2236_v21  ;;  %v2280_v3 = vld [vmem:[%s2887_s1 + $0x1c0] sm:$0xff]   ;;  %v17_v6 = vld [vmem:[%s2888_s0 + $0x10] sm:$0xff]  ;;  %v18_v9 = vld [vmem:[%s2888_s0 + $0x18] sm:$0xff] }
  0x17   :  { %v2281_v4 = vld [vmem:[%s2887_s1 + $0x100] sm:$0xff]   ;;  %v1675_v7 = vcombine.low %v17_v6, %v17_v6  ;;  %v1676_v8 = vcombine.high %v17_v6, %v17_v6  ;;  %v1677_v10 = vcombine.low %v18_v9, %v18_v9  ;;  %v1678_v11 = vcombine.high %v18_v9, %v18_v9  ;;  %v2287_v12 = vld [vmem:[%s2887_s1 + $0x2b8] sm:$0xff]   ;;  %v2290_v16 = vld [vmem:[%s2887_s1 + $0x2b0] sm:$0xff]  }
  0x18   :  { %1990 = vmatpush3.bf16.msra.mxu0 %v2237_v22  ;;  %v2282_v5 = vld [vmem:[%s2887_s1 + $0x180] sm:$0xff]   ;;  %v2288_v14 = vld [vmem:[%s2887_s1 + $0x238] sm:$0xff]   ;;  %v2291_v17 = vld [vmem:[%s2887_s1 + $0x230] sm:$0xff]  }
  0x19   :  { %2012 = vmatpush3.bf16.msra.mxu1 %v2238_v23  ;;  %1991 = vmatprep.subr.bf16.mxu0 %v2239_v24  ;;  %v2289_v15 = vld [vmem:[%s2887_s1 + $0x278] sm:$0xff]   ;;  %v2292_v18 = vld [vmem:[%s2887_s1 + $0x270] sm:$0xff]   ;;  %v2293_v19 = vld [vmem:[%s2887_s1 + $0x2a8] sm:$0xff]  }
  0x1a   :  { %2013 = vmatprep.subr.bf16.mxu1 %v2240_v25  ;;  %v2294_v20 = vld [vmem:[%s2887_s1 + $0x228] sm:$0xff]   ;;  %v2296_v22 = vld [vmem:[%s2887_s1 + $0x2a0] sm:$0xff]   ;;  %v2299_v25 = vld [vmem:[%s2887_s1 + $0x298] sm:$0xff]  }
  0x1b   :  { %v2295_v21 = vld [vmem:[%s2887_s1 + $0x268] sm:$0xff]   ;;  %v2297_v23 = vld [vmem:[%s2887_s1 + $0x220] sm:$0xff]  }
  0x1c   :  { %1992 = vmatpush3.bf16.msra.mxu0 %v2241_v26  ;;  %v2298_v24 = vld [vmem:[%s2887_s1 + $0x260] sm:$0xff]   ;;  %v2300_v26 = vld [vmem:[%s2887_s1 + $0x218] sm:$0xff]   ;;  %v2306_v32 = vld [vmem:[%s2887_s1 + $0x208] sm:$0xff]  }
  0x1d   :  { %2014 = vmatpush3.bf16.msra.mxu1 %v2242_v27  ;;  %1993 = vmatprep.subr.bf16.mxu0 %v2243_v28  ;;  %v2301_v27 = vld [vmem:[%s2887_s1 + $0x258] sm:$0xff]   ;;  %v2302_v28 = vld [vmem:[%s2887_s1 + $0x290] sm:$0xff]   ;;  %v2307_v33 = vld [vmem:[%s2887_s1 + $0x248] sm:$0xff]  }
  0x1e   :  { %2015 = vmatprep.subr.bf16.mxu1 %v2244_v29  ;;  %v2303_v29 = vld [vmem:[%s2887_s1 + $0x210] sm:$0xff]   ;;  %v2308_v35 = vld [vmem:[%s2887_s1 + $0x280] sm:$0xff]  }
  0x1f   :  { %v2309_v37 = vld [vmem:[%s2887_s1 + $0x200] sm:$0xff]   ;;  %v829_v6 = vld [vmem:[%s2888_s0 + $0x2c] sm:$0xff] }
  0x20   :  { %1994 = vmatpush3.bf16.msra.mxu0 %v2245_v30  ;;  %v2304_v30 = vld [vmem:[%s2887_s1 + $0x250] sm:$0xff]   ;;  %v1899_v9 = vcombine.high %v829_v6, %v829_v6 }
  0x21   :  { %2016 = vmatpush3.bf16.msra.mxu1 %v2246_v31  ;;  %2023 = vmatprep.subr.bf16.mxu0 %v2251_v38  ;;  %v2305_v31 = vld [vmem:[%s2887_s1 + $0x288] sm:$0xff]   ;;  %v2310_v38 = vld [vmem:[%s2887_s1 + $0x240] sm:$0xff]  }
  0x22   :  { %2045 = vmatprep.subr.bf16.mxu1 %v2252_v39  ;;  %v2314_v39 = vld [vmem:[%s2887_s1 + $0x338] sm:$0xff]  }
  0x23   :  { %661 = vmatmul.mubr.bf16.vlgmr.msra.gmra.mxu0 %v1671_v34  ;;  %v828_v34 = vld [vmem:[%s2888_s0 + $0x24] sm:$0xff] }
  0x24   :  { %701 = vmatmul.mubr.bf16.vlgmr.msra.gmra.mxu1 %v1673_v36  ;;  %2024 = vmatpush3.bf16.msra.mxu0 %v2253_v40  ;;  %v1897_v36 = vcombine.high %v828_v34, %v828_v34  ;;  %v2311_v40 = vld [vmem:[%s2888_s0 + $0x20] ss:$0 sps:$4 sm:$0xff]  }
  0x25   :  { %2046 = vmatpush3.bf16.msra.mxu1 %v2254_v41  ;;  %2025 = vmatprep.subr.bf16.mxu0 %v2255_v42  ;;  %v2315_v41 = vld [vmem:[%s2887_s1 + $0x3b8] sm:$0xff]  }
  0x26   :  { %2047 = vmatprep.subr.bf16.mxu1 %v2256_v43  ;;  %740 = vmatprep.mubr.bf16.mxu0 %v1676_v8  ;;  %v2316_v42 = vld [vmem:[%s2887_s1 + $0x2f8] sm:$0xff]   ;;  %v1896_v43 = vcombine.low %v828_v34, %v828_v34  ;;  %v2343_v8 = vld [vmem:[%s2887_s1 + $0x380] sm:$0xff]   ;;  %v2366_v34 = vld [vmem:[%s2887_s1 + $0x3d0] sm:$0xff]  }
  0x27   :  { %780 = vmatprep.mubr.bf16.mxu1 %v1678_v11  ;;  %v2344_v11 = vld [vmem:[%s2887_s1 + $0x2c0] sm:$0xff]  }
  0x28   :  { %2026 = vmatpush3.bf16.msra.mxu0 %v2257_v44  ;;  %v2317_v44 = vld [vmem:[%s2887_s1 + $0x378] sm:$0xff]  }
  0x29   :  { %2048 = vmatpush3.bf16.msra.mxu1 %v2258_v45  ;;  %2027 = vmatprep.subr.bf16.mxu0 %v2259_v46  ;;  %v2318_v45 = vld [vmem:[%s2887_s1 + $0x330] sm:$0xff]  }
  0x2a   :  { %2049 = vmatprep.subr.bf16.mxu1 %v2260_v47  ;;  %v2319_v46 = vld [vmem:[%s2887_s1 + $0x3b0] sm:$0xff]  }
  0x2b   :  { %v2320_v47 = vld [vmem:[%s2887_s1 + $0x2f0] sm:$0xff]  }
  0x2c   :  { %2028 = vmatpush3.bf16.msra.mxu0 %v2261_v48  ;;  %v2321_v48 = vld [vmem:[%s2887_s1 + $0x370] sm:$0xff]  }
  0x2d   :  { %2050 = vmatpush3.bf16.msra.mxu1 %v2262_v49  ;;  %2029 = vmatprep.subr.bf16.mxu0 %v2263_v50  ;;  %v2322_v49 = vld [vmem:[%s2887_s1 + $0x328] sm:$0xff]  }
  0x2e   :  { %2051 = vmatprep.subr.bf16.mxu1 %v2264_v51  ;;  %v2323_v50 = vld [vmem:[%s2887_s1 + $0x3a8] sm:$0xff]  }
  0x2f   :  { %v2324_v51 = vld [vmem:[%s2887_s1 + $0x2e8] sm:$0xff]  }
  0x30   :  { %2030 = vmatpush3.bf16.msra.mxu0 %v2265_v52  ;;  %v2325_v52 = vld [vmem:[%s2887_s1 + $0x368] sm:$0xff]  }
  0x31   :  { %2052 = vmatpush3.bf16.msra.mxu1 %v2266_v53  ;;  %2031 = vmatprep.subr.bf16.mxu0 %v2267_v54  ;;  %v2326_v53 = vld [vmem:[%s2887_s1 + $0x320] sm:$0xff]  }
  0x32   :  { %2053 = vmatprep.subr.bf16.mxu1 %v2268_v55  ;;  %v2327_v54 = vld [vmem:[%s2887_s1 + $0x3a0] sm:$0xff]  }
  0x33   :  { %v2328_v55 = vld [vmem:[%s2887_s1 + $0x2e0] sm:$0xff]  }
  0x34   :  { %2032 = vmatpush3.bf16.msra.mxu0 %v2269_v56  ;;  %v2329_v56 = vld [vmem:[%s2887_s1 + $0x360] sm:$0xff]  }
  0x35   :  { %2054 = vmatpush3.bf16.msra.mxu1 %v2270_v57  ;;  %2033 = vmatprep.subr.bf16.mxu0 %v2271_v58  ;;  %v2330_v57 = vld [vmem:[%s2887_s1 + $0x318] sm:$0xff]  }
  0x36   :  { %2055 = vmatprep.subr.bf16.mxu1 %v2272_v59  ;;  %v2331_v58 = vld [vmem:[%s2887_s1 + $0x398] sm:$0xff]  }
  0x37   :  { %v2332_v59 = vld [vmem:[%s2887_s1 + $0x2d8] sm:$0xff]  }
  0x38   :  { %2034 = vmatpush3.bf16.msra.mxu0 %v2273_v60  ;;  %v2333_v60 = vld [vmem:[%s2887_s1 + $0x358] sm:$0xff]  }
  0x39   :  { %2056 = vmatpush3.bf16.msra.mxu1 %v2274_v61  ;;  %2035 = vmatprep.subr.bf16.mxu0 %v2275_v62  ;;  %v2334_v61 = vld [vmem:[%s2887_s1 + $0x310] sm:$0xff]  }
  0x3a   :  { %2057 = vmatprep.subr.bf16.mxu1 %v2276_v63  ;;  %v2335_v62 = vld [vmem:[%s2887_s1 + $0x390] sm:$0xff]  }
  0x3b   :  { %v2336_v63 = vld [vmem:[%s2887_s1 + $0x2d0] sm:$0xff]  }
  0x3c   :  { %2036 = vmatpush3.bf16.msra.mxu0 %v2277_v0  ;;  %v2337_v0 = vld [vmem:[%s2887_s1 + $0x350] sm:$0xff]  }
  0x3d   :  { %2058 = vmatpush3.bf16.msra.mxu1 %v2278_v1  ;;  %2037 = vmatprep.subr.bf16.mxu0 %v2279_v2  ;;  %v2338_v1 = vld [vmem:[%s2887_s1 + $0x308] sm:$0xff]  }
  0x3e   :  { %2059 = vmatprep.subr.bf16.mxu1 %v2280_v3  ;;  %v2339_v2 = vld [vmem:[%s2887_s1 + $0x388] sm:$0xff]  }
  0x3f   :  { %v2340_v3 = vld [vmem:[%s2887_s1 + $0x2c8] sm:$0xff]  }
  0x40   :  { %2038 = vmatpush3.bf16.msra.mxu0 %v2281_v4  ;;  %v2341_v4 = vld [vmem:[%s2887_s1 + $0x348] sm:$0xff]  }
  0x41   :  { %2060 = vmatpush3.bf16.msra.mxu1 %v2282_v5  ;;  %2173 = vmatprep.subr.bf16.mxu0 %v2377_v13  ;;  %v2342_v5 = vld [vmem:[%s2887_s1 + $0x300] sm:$0xff]  }
  0x42   :  { %2076 = vmatprep.subr.bf16.mxu1 %v2287_v12  ;;  %v2345_v12 = vld [vmem:[%s2887_s1 + $0x340] sm:$0xff]  }
  0x43   :  { %741 = vmatmul.mubr.bf16.vlgmr.msra.gmra.mxu0 %v1675_v7  ;;  %v830_v7 = vld [vmem:[%s2888_s0 + $0x34] sm:$0xff] }
  0x44   :  { %781 = vmatmul.mubr.bf16.vlgmr.msra.gmra.mxu1 %v1677_v10  ;;  %2174 = vmatpush3.bf16.msra.mxu0 %v2288_v14  ;;  %v1901_v10 = vcombine.high %v830_v7, %v830_v7  ;;  %v2350_v14 = vld [vmem:[%s2887_s1 + $0x438] sm:$0xff]  }
  0x45   :  { %2077 = vmatpush3.bf16.msra.mxu1 %v2289_v15  ;;  %2175 = vmatprep.subr.bf16.mxu0 %v2377_v13  ;;  %v1898_v15 = vcombine.low %v829_v6, %v829_v6 }
  0x46   :  { %2078 = vmatprep.subr.bf16.mxu1 %v2290_v16  ;;  %2189 = vmatprep.mubr.msk.bf16.mxu0 %vm2378_vm0, %v2377_v13  ;;  %v1900_v16 = vcombine.low %v830_v7, %v830_v7 }
  0x47   :  { %1474 = vmatprep.mubr.bf16.mxu1 %v1897_v36  ;;  %v2368_v36 = vld [vmem:[%s2887_s1 + $0x408] sm:$0xff]  }
  0x48   :  { %2176 = vmatpush3.bf16.msra.mxu0 %v2291_v17  ;;  %v2351_v17 = vld [vmem:[%s2887_s1 + $0x3f8] sm:$0xff]  }
  0x49   :  { %2079 = vmatpush3.bf16.msra.mxu1 %v2292_v18  ;;  %2177 = vmatprep.subr.bf16.mxu0 %v2377_v13  ;;  %v2352_v18 = vld [vmem:[%s2887_s1 + $0x478] sm:$0xff]  }
  0x4a   :  { %2080 = vmatprep.subr.bf16.mxu1 %v2293_v19  ;;  %v2353_v19 = vld [vmem:[%s2887_s1 + $0x430] sm:$0xff]  }
  0x4c   :  { %2178 = vmatpush3.bf16.msra.mxu0 %v2294_v20  ;;  %v2354_v20 = vld [vmem:[%s2887_s1 + $0x3f0] sm:$0xff]  }
  0x4d   :  { %2081 = vmatpush3.bf16.msra.mxu1 %v2295_v21  ;;  %2179 = vmatprep.subr.bf16.mxu0 %v2377_v13  ;;  %v2355_v21 = vld [vmem:[%s2887_s1 + $0x470] sm:$0xff]  }
  0x4e   :  { %2082 = vmatprep.subr.bf16.mxu1 %v2296_v22  ;;  %v2356_v22 = vld [vmem:[%s2887_s1 + $0x428] sm:$0xff]  }
  0x50   :  { %2180 = vmatpush3.bf16.msra.mxu0 %v2297_v23  ;;  %v2357_v23 = vld [vmem:[%s2887_s1 + $0x3e8] sm:$0xff]  }
  0x51   :  { %2083 = vmatpush3.bf16.msra.mxu1 %v2298_v24  ;;  %2181 = vmatprep.subr.bf16.mxu0 %v2377_v13  ;;  %v2358_v24 = vld [vmem:[%s2887_s1 + $0x468] sm:$0xff]  }
  0x52   :  { %2084 = vmatprep.subr.bf16.mxu1 %v2299_v25  ;;  %v2359_v25 = vld [vmem:[%s2887_s1 + $0x420] sm:$0xff]  }
  0x54   :  { %2182 = vmatpush3.bf16.msra.mxu0 %v2300_v26  ;;  %v2360_v26 = vld [vmem:[%s2887_s1 + $0x3e0] sm:$0xff]  }
  0x55   :  { %2085 = vmatpush3.bf16.msra.mxu1 %v2301_v27  ;;  %2183 = vmatprep.subr.bf16.mxu0 %v2377_v13  ;;  %v2361_v27 = vld [vmem:[%s2887_s1 + $0x460] sm:$0xff]  }
  0x56   :  { %2086 = vmatprep.subr.bf16.mxu1 %v2302_v28  ;;  %v2362_v28 = vld [vmem:[%s2887_s1 + $0x418] sm:$0xff]  }
  0x58   :  { %2184 = vmatpush3.bf16.msra.mxu0 %v2303_v29  ;;  %v2363_v29 = vld [vmem:[%s2887_s1 + $0x3d8] sm:$0xff]  }
  0x59   :  { %2087 = vmatpush3.bf16.msra.mxu1 %v2304_v30  ;;  %2185 = vmatprep.subr.bf16.mxu0 %v2377_v13  ;;  %v2364_v30 = vld [vmem:[%s2887_s1 + $0x458] sm:$0xff]  }
  0x5a   :  { %2088 = vmatprep.subr.bf16.mxu1 %v2305_v31  ;;  %v2365_v31 = vld [vmem:[%s2887_s1 + $0x410] sm:$0xff]  }
  0x5c   :  { %2186 = vmatpush3.bf16.msra.mxu0 %v2306_v32  ;;  %v831_v32 = vld [vmem:[%s2888_s0 + $0x3c] sm:$0xff] }
  0x5d   :  { %2089 = vmatpush3.bf16.msra.mxu1 %v2307_v33  ;;  %2187 = vmatprep.subr.bf16.mxu0 %v2377_v13  ;;  %v1903_v33 = vcombine.high %v831_v32, %v831_v32 }
  0x5e   :  { %2090 = vmatprep.subr.bf16.mxu1 %v2308_v35  ;;  %v2367_v35 = vld [vmem:[%s2887_s1 + $0x450] sm:$0xff]  }
  0x60   :  { %2188 = vmatpush3.bf16.msra.mxu0 %v2309_v37  ;;  %v2369_v37 = vld [vmem:[%s2887_s1 + $0x3c8] sm:$0xff]  }
  0x61   :  { %2091 = vmatpush3.bf16.msra.mxu1 %v2310_v38  ;;  %2098 = vmatprep.subr.bf16.mxu0 %v2314_v39  ;;  %v2370_v38 = vld [vmem:[%s2887_s1 + $0x448] sm:$0xff]   ;;  %v2371_v39 = vld [vmem:[%s2887_s1 + $0x400] sm:$0xff]  }
  0x62   :  { %2120 = vmatprep.subr.bf16.mxu1 %v2315_v41  ;;  %v2373_v41 = vld [vmem:[%s2887_s1 + $0x440] sm:$0xff]  }
  0x63   :  { %2190 = vmatmul.mubr.bf16.vlgmr.msra.gmra.mxu0 %v2311_v40  ;;  %v2372_v40 = vld [vmem:[%s2887_s1 + $0x3c0] sm:$0xff]  }
  0x64   :  { %1475 = vmatmul.mubr.bf16.vlgmr.msra.gmra.mxu1 %v1896_v43  ;;  %2099 = vmatpush3.bf16.msra.mxu0 %v2316_v42  ;;  %v1902_v42 = vcombine.low %v831_v32, %v831_v32  ;;  %v2376_v43 = vld [vmem:[%s2888_s0 + $0x44] ss:$0 sps:$4 sm:$0xff]  }
  0x65   :  { %2121 = vmatpush3.bf16.msra.mxu1 %v2317_v44  ;;  %2100 = vmatprep.subr.bf16.mxu0 %v2318_v45 }
  0x66   :  { %2122 = vmatprep.subr.bf16.mxu1 %v2319_v46  ;;  %1514 = vmatprep.mubr.bf16.mxu0 %v1899_v9 }
  0x67   :  { %1554 = vmatprep.mubr.bf16.mxu1 %v1901_v10 }
  0x68   :  { %2101 = vmatpush3.bf16.msra.mxu0 %v2320_v47 }
  0x69   :  { %2123 = vmatpush3.bf16.msra.mxu1 %v2321_v48  ;;  %2102 = vmatprep.subr.bf16.mxu0 %v2322_v49 }
  0x6a   :  { %2124 = vmatprep.subr.bf16.mxu1 %v2323_v50 }
  0x6c   :  { %2103 = vmatpush3.bf16.msra.mxu0 %v2324_v51 }
  0x6d   :  { %2125 = vmatpush3.bf16.msra.mxu1 %v2325_v52  ;;  %2104 = vmatprep.subr.bf16.mxu0 %v2326_v53 }
  0x6e   :  { %2126 = vmatprep.subr.bf16.mxu1 %v2327_v54 }
  0x70   :  { %2105 = vmatpush3.bf16.msra.mxu0 %v2328_v55 }
  0x71   :  { %2127 = vmatpush3.bf16.msra.mxu1 %v2329_v56  ;;  %2106 = vmatprep.subr.bf16.mxu0 %v2330_v57 }
  0x72   :  { %2128 = vmatprep.subr.bf16.mxu1 %v2331_v58 }
  0x74   :  { %2107 = vmatpush3.bf16.msra.mxu0 %v2332_v59 }
  0x75   :  { %2129 = vmatpush3.bf16.msra.mxu1 %v2333_v60  ;;  %2108 = vmatprep.subr.bf16.mxu0 %v2334_v61 }
  0x76   :  { %2130 = vmatprep.subr.bf16.mxu1 %v2335_v62 }
  0x78   :  { %2109 = vmatpush3.bf16.msra.mxu0 %v2336_v63 }
  0x79   :  { %2131 = vmatpush3.bf16.msra.mxu1 %v2337_v0  ;;  %2110 = vmatprep.subr.bf16.mxu0 %v2338_v1 }
  0x7a   :  { %2132 = vmatprep.subr.bf16.mxu1 %v2339_v2 }
  0x7c   :  { %2111 = vmatpush3.bf16.msra.mxu0 %v2340_v3 }
  0x7d   :  { %2133 = vmatpush3.bf16.msra.mxu1 %v2341_v4  ;;  %2112 = vmatprep.subr.bf16.mxu0 %v2342_v5 }
  0x7e   :  { %2134 = vmatprep.subr.bf16.mxu1 %v2343_v8 }
  0x80   :  { %2113 = vmatpush3.bf16.msra.mxu0 %v2344_v11 }
  0x81   :  { %2135 = vmatpush3.bf16.msra.mxu1 %v2345_v12  ;;  %2142 = vmatprep.subr.bf16.mxu0 %v2350_v14 }
  0x82   :  { %2193 = vmatprep.subr.bf16.mxu1 %v2377_v13 }
  0x83   :  { %1515 = vmatmul.mubr.bf16.vlgmr.msra.gmra.mxu0 %v1898_v15 }
  0x84   :  { %1555 = vmatmul.mubr.bf16.vlgmr.msra.gmra.mxu1 %v1900_v16  ;;  %2143 = vmatpush3.bf16.msra.mxu0 %v2351_v17 }
  0x85   :  { %2194 = vmatpush3.bf16.msra.mxu1 %v2352_v18  ;;  %2144 = vmatprep.subr.bf16.mxu0 %v2353_v19 }
  0x86   :  { %2195 = vmatprep.subr.bf16.mxu1 %v2377_v13  ;;  %2209 = vmatprep.mubr.msk.bf16.mxu1 %vm2378_vm0, %v2377_v13 }
  0x87   :  { %1594 = vmatprep.mubr.bf16.mxu0 %v1903_v33 }
  0x88   :  { %2145 = vmatpush3.bf16.msra.mxu0 %v2354_v20  ;;  %v1644_v20 = vlaneseq }
  0x89   :  { %2196 = vmatpush3.bf16.msra.mxu1 %v2355_v21  ;;  %2146 = vmatprep.subr.bf16.mxu0 %v2356_v22 }
  0x8a   :  { %2197 = vmatprep.subr.bf16.mxu1 %v2377_v13  ;;  %v1645_v21 = vshrl.u32 %v1644_v20, 7 }
  0x8c   :  { %2147 = vmatpush3.bf16.msra.mxu0 %v2357_v23 }
  0x8d   :  { %2198 = vmatpush3.bf16.msra.mxu1 %v2358_v24  ;;  %2148 = vmatprep.subr.bf16.mxu0 %v2359_v25  ;;  %v1646_v24 = vsub.s32 0, %v1645_v21 }
  0x8e   :  { %2199 = vmatprep.subr.bf16.mxu1 %v2377_v13 }
  0x90   :  { %2149 = vmatpush3.bf16.msra.mxu0 %v2360_v26 }
  0x91   :  { %2200 = vmatpush3.bf16.msra.mxu1 %v2361_v27  ;;  %2150 = vmatprep.subr.bf16.mxu0 %v2362_v28  ;;  %v1642_v27 = vld [vmem:[%s2889_s2] sm:$0x3] }
  0x92   :  { %2201 = vmatprep.subr.bf16.mxu1 %v2377_v13  ;;  %v1647_v33 = vrot.slane %v1642_v27, %v1646_v24 }
  0x94   :  { %2151 = vmatpush3.bf16.msra.mxu0 %v2363_v29 }
  0x95   :  { %2202 = vmatpush3.bf16.msra.mxu1 %v2364_v30  ;;  %2152 = vmatprep.subr.bf16.mxu0 %v2365_v31  ;;  %v1650_v30 = vsub.s32 1, %v1645_v21 }
  0x96   :  { %2203 = vmatprep.subr.bf16.mxu1 %v2377_v13 }
  0x98   :  { %2153 = vmatpush3.bf16.msra.mxu0 %v2366_v34 }
  0x99   :  { %2204 = vmatpush3.bf16.msra.mxu1 %v2367_v35  ;;  %2154 = vmatprep.subr.bf16.mxu0 %v2368_v36 }
  0x9a   :  { %2205 = vmatprep.subr.bf16.mxu1 %v2377_v13 }
  0x9c   :  { %2155 = vmatpush3.bf16.msra.mxu0 %v2369_v37 }
  0x9d   :  { %2206 = vmatpush3.bf16.msra.mxu1 %v2370_v38  ;;  %2156 = vmatprep.subr.bf16.mxu0 %v2371_v39  ;;  %v1651_v38 = vrot.slane %v1642_v27, %v1650_v30 }
  0x9e   :  { %2207 = vmatprep.subr.bf16.mxu1 %v2377_v13 }
  0xa0   :  { %2157 = vmatpush3.bf16.msra.mxu0 %v2372_v40 }
  0xa1   :  { %2208 = vmatpush3.bf16.msra.mxu1 %v2373_v41 }
  0xa3   :  { %1595 = vmatmul.mubr.bf16.vlgmr.msra.gmra.mxu0 %v1902_v42 }
  0xa4   :  { %2210 = vmatmul.mubr.bf16.vlgmr.msra.gmra.mxu1 %v2376_v43 }
  0xe3   :  { %v1995_v44 = vpop.f32.mrf.mxu0 }
  0xe4   :  { %v2017_v45 = vpop.f32.mrf.mxu1 }
  0xe5   :  { %v1996_v46 = vpop.f32.mrf.mxu0 }
  0xe6   :  { %v2018_v47 = vpop.f32.mrf.mxu1  ;;  %v1997_v48 = vadd.f32 %v1996_v46, %v1995_v44 }
  0xe7   :  { %v2019_v49 = vadd.f32 %v2018_v47, %v2017_v45  ;;  %v1998_v50 = vpop.f32.mrf.mxu0 }
  0xe8   :  { %v2020_v51 = vpop.f32.mrf.mxu1 }
  0xe9   :  { %v703_v52 = vadd.f32 %v2019_v49, %v1997_v48  ;;  %v1999_v53 = vpop.f32.mrf.mxu0 }
  0xea   :  { %v2021_v13 = vpop.f32.mrf.mxu1 }
 0x103   :  { %v2039_v54 = vpop.f32.mrf.mxu0 }
 0x104   :  { %v2061_v55 = vpop.f32.mrf.mxu1 }
 0x105   :  { %v2040_v56 = vpop.f32.mrf.mxu0 }
 0x106   :  { %v2062_v57 = vpop.f32.mrf.mxu1  ;;  %v2041_v58 = vadd.f32 %v2040_v56, %v2039_v54 }
 0x107   :  { %v2063_v59 = vadd.f32 %v2062_v57, %v2061_v55  ;;  %v2042_v60 = vpop.f32.mrf.mxu0 }
 0x108   :  { %v2064_v61 = vpop.f32.mrf.mxu1  ;;  %v743_v62 = vadd.f32 %v2041_v58, %v703_v52 }
 0x109   :  { %v2043_v63 = vpop.f32.mrf.mxu0 }
 0x10a   :  { %v2065_v0 = vpop.f32.mrf.mxu1  ;;  %v783_v1 = vadd.f32 %v2063_v59, %v743_v62 }
 0x123   :  { %v822_v2 = vpop.f32.mrf.mxu0 }
 0x124   :  { %v2092_v3 = vpop.f32.mrf.mxu1  ;;  %v823_v4 = vadd.f32 %v822_v2, %v783_v1 }
 0x125   :  { %v2191_v5 = vpop.f32.mrf.mxu0 }
 0x126   :  { %v2093_v6 = vpop.f32.mrf.mxu1  ;;  %v1654_v42 = vadd.f32 %v1647_v33, %v823_v4 }
 0x127   :  { %v825_v7 = vpop.f32.mrf.mxu0  ;;  %v2094_v23 = vadd.f32 %v2093_v6, %v2092_v3 }
 0x128   :  { %v2095_v8 = vpop.f32.mrf.mxu1  ;;  %v1656_v45 = vmax.f32 %v1654_v42, 0.0 }
 0x129   :  { %v2192_v9 = vpop.f32.mrf.mxu0 }
 0x12a   :  { %v2096_v10 = vpop.f32.mrf.mxu1 }
 0x143   :  { %v2114_v11 = vpop.f32.mrf.mxu0 }
 0x144   :  { %v2136_v12 = vpop.f32.mrf.mxu1 }
 0x145   :  { %v2115_v14 = vpop.f32.mrf.mxu0 }
 0x146   :  { %v2137_v15 = vpop.f32.mrf.mxu1  ;;  %v2116_v22 = vadd.f32 %v2115_v14, %v2114_v11 }
 0x147   :  { %v2117_v16 = vpop.f32.mrf.mxu0  ;;  %v2138_v26 = vadd.f32 %v2137_v15, %v2136_v12 }
 0x148   :  { %v2139_v17 = vpop.f32.mrf.mxu1  ;;  %v1517_v25 = vadd.f32 %v2116_v22, %v2094_v23 }
 0x149   :  { %v2118_v18 = vpop.f32.mrf.mxu0 }
 0x14a   :  { %v2140_v19 = vpop.f32.mrf.mxu1  ;;  %v1557_v34 = vadd.f32 %v2138_v26, %v1517_v25 }
 0x163   :  { %v2158_v28 = vpop.f32.mrf.mxu0 }
 0x164   :  { %v1636_v29 = vpop.f32.mrf.mxu1 }
 0x165   :  { %v2159_v31 = vpop.f32.mrf.mxu0 }
 0x166   :  { %v2211_v32 = vpop.f32.mrf.mxu1  ;;  %v2160_v35 = vadd.f32 %v2159_v31, %v2158_v28 }
 0x167   :  { %v2161_v36 = vpop.f32.mrf.mxu0 }
 0x168   :  { %v1639_v37 = vpop.f32.mrf.mxu1  ;;  %v1597_v39 = vadd.f32 %v2160_v35, %v1557_v34 }
 0x169   :  { %v2162_v40 = vpop.f32.mrf.mxu0 }
 0x16a   :  { %v2212_v41 = vpop.f32.mrf.mxu1  ;;  %v1637_v43 = vadd.f32 %v1636_v29, %v1597_v39 }
 0x16c   :  { %v1655_v44 = vadd.f32 %v1651_v38, %v1637_v43 }
 0x16e   :  { %v1657_v46 = vmax.f32 %v1655_v44, 0.0 }
 0x170   :  { %v1978_v47 = vpack.c.bf16 %v1657_v46, %v1656_v45 }
 0x172   :  { %1666 = vst [vmem:[%s2890_s3] sm:$0xff] %v1978_v47 }

// kernel: resnext_forward.37
= control target key start
LH: loop header
LB: loop body
LE: loop exit
PB: predicated region body
PF: predicated region fallthrough
CT: control target
= control target key end

     0   :  { %s624_s1 = inlined_call_operand.vmem [shape: bf16[1,512,128], index: 1, kind: input, shape index: {}]   ;;  %s625_s0 = inlined_call_operand.vmem [shape: bf16[8,512], index: 0, kind: input, shape index: {}]   ;;  %s626_s2 = inlined_call_operand.vmem [shape: f32[1,128], index: 2, kind: input, shape index: {}]   ;;  %s627_s3 = inlined_call_operand.vmem [shape: f32[8,128], index: 3, kind: output, shape index: {}]  }
   0x1   :  { %v460_v0 = vld [vmem:[%s624_s1 + $0x78] sm:$0xff]   ;;  %v464_v4 = vld [vmem:[%s624_s1 + $0x70] sm:$0xff]   ;;  %v468_v8 = vld [vmem:[%s624_s1 + $0x68] sm:$0xff]  }
   0x2   :  { %v461_v1 = vld [vmem:[%s624_s1 + $0xf8] sm:$0xff]   ;;  %416 = vmatprep.subr.bf16.mxu0 %v460_v0  ;;  %v465_v5 = vld [vmem:[%s624_s1 + $0xf0] sm:$0xff]   ;;  %v469_v9 = vld [vmem:[%s624_s1 + $0xe8] sm:$0xff]  }
   0x3   :  { %v462_v2 = vld [vmem:[%s624_s1 + $0x38] sm:$0xff]   ;;  %438 = vmatprep.subr.bf16.mxu1 %v461_v1  ;;  %v466_v6 = vld [vmem:[%s624_s1 + $0x30] sm:$0xff]   ;;  %v470_v10 = vld [vmem:[%s624_s1 + $0x28] sm:$0xff]  }
   0x4   :  { %v463_v3 = vld [vmem:[%s624_s1 + $0xb8] sm:$0xff]   ;;  %417 = vmatpush3.bf16.msra.mxu0 %v462_v2  ;;  %v467_v7 = vld [vmem:[%s624_s1 + $0xb0] sm:$0xff]   ;;  %v471_v11 = vld [vmem:[%s624_s1 + $0xa8] sm:$0xff]  }
   0x5   :  { %439 = vmatpush3.bf16.msra.mxu1 %v463_v3  ;;  %418 = vmatprep.subr.bf16.mxu0 %v464_v4  ;;  %v472_v12 = vld [vmem:[%s624_s1 + $0x60] sm:$0xff]   ;;  %v476_v16 = vld [vmem:[%s624_s1 + $0x58] sm:$0xff]   ;;  %v480_v20 = vld [vmem:[%s624_s1 + $0x50] sm:$0xff]  }
   0x6   :  { %440 = vmatprep.subr.bf16.mxu1 %v465_v5  ;;  %v473_v13 = vld [vmem:[%s624_s1 + $0xe0] sm:$0xff]   ;;  %v477_v17 = vld [vmem:[%s624_s1 + $0xd8] sm:$0xff]   ;;  %v481_v21 = vld [vmem:[%s624_s1 + $0xd0] sm:$0xff]  }
   0x7   :  { %v474_v14 = vld [vmem:[%s624_s1 + $0x20] sm:$0xff]   ;;  %v478_v18 = vld [vmem:[%s624_s1 + $0x18] sm:$0xff]   ;;  %v482_v22 = vld [vmem:[%s624_s1 + $0x10] sm:$0xff]  }
   0x8   :  { %419 = vmatpush3.bf16.msra.mxu0 %v466_v6  ;;  %v475_v15 = vld [vmem:[%s624_s1 + $0xa0] sm:$0xff]   ;;  %v479_v19 = vld [vmem:[%s624_s1 + $0x98] sm:$0xff]   ;;  %v483_v23 = vld [vmem:[%s624_s1 + $0x90] sm:$0xff]  }
   0x9   :  { %441 = vmatpush3.bf16.msra.mxu1 %v467_v7  ;;  %420 = vmatprep.subr.bf16.mxu0 %v468_v8  ;;  %v484_v24 = vld [vmem:[%s624_s1 + $0x48] sm:$0xff]   ;;  %v488_v28 = vld [vmem:[%s624_s1 + $0x40] sm:$0xff]  }
   0xa   :  { %442 = vmatprep.subr.bf16.mxu1 %v469_v9  ;;  %v485_v25 = vld [vmem:[%s624_s1 + $0xc8] sm:$0xff]   ;;  %v489_v29 = vld [vmem:[%s624_s1 + $0xc0] sm:$0xff]  }
   0xb   :  { %v486_v26 = vld [vmem:[%s624_s1 + $0x8] sm:$0xff]   ;;  %v490_v30 = vld [vmem:[%s624_s1] sm:$0xff]  }
   0xc   :  { %421 = vmatpush3.bf16.msra.mxu0 %v470_v10  ;;  %v487_v27 = vld [vmem:[%s624_s1 + $0x88] sm:$0xff]   ;;  %v491_v31 = vld [vmem:[%s624_s1 + $0x80] sm:$0xff]  }
   0xd   :  { %443 = vmatpush3.bf16.msra.mxu1 %v471_v11  ;;  %422 = vmatprep.subr.bf16.mxu0 %v472_v12  ;;  %v15_v32 = vld [vmem:[%s625_s0] sm:$0xff]  ;;  %v16_v33 = vld [vmem:[%s625_s0 + $0x8] sm:$0xff] }
   0xe   :  { %444 = vmatprep.subr.bf16.mxu1 %v473_v13  ;;  %v380_v34 = vcombine.low %v15_v32, %v15_v32  ;;  %v381_v35 = vcombine.high %v15_v32, %v15_v32  ;;  %v382_v36 = vcombine.low %v16_v33, %v16_v33  ;;  %v383_v37 = vcombine.high %v16_v33, %v16_v33  ;;  %v379_v40 = vld [vmem:[%s626_s2] ss:$0 sm:$0xff] }
  0x10   :  { %423 = vmatpush3.bf16.msra.mxu0 %v474_v14  ;;  %326 = vmatprep.mubr.bf16.mxu0 %v381_v35 }
  0x11   :  { %445 = vmatpush3.bf16.msra.mxu1 %v475_v15  ;;  %424 = vmatprep.subr.bf16.mxu0 %v476_v16 }
  0x12   :  { %446 = vmatprep.subr.bf16.mxu1 %v477_v17  ;;  %366 = vmatprep.mubr.bf16.mxu1 %v383_v37 }
  0x14   :  { %425 = vmatpush3.bf16.msra.mxu0 %v478_v18 }
  0x15   :  { %447 = vmatpush3.bf16.msra.mxu1 %v479_v19  ;;  %426 = vmatprep.subr.bf16.mxu0 %v480_v20 }
  0x16   :  { %448 = vmatprep.subr.bf16.mxu1 %v481_v21 }
  0x18   :  { %427 = vmatpush3.bf16.msra.mxu0 %v482_v22 }
  0x19   :  { %449 = vmatpush3.bf16.msra.mxu1 %v483_v23  ;;  %428 = vmatprep.subr.bf16.mxu0 %v484_v24 }
  0x1a   :  { %450 = vmatprep.subr.bf16.mxu1 %v485_v25 }
  0x1c   :  { %429 = vmatpush3.bf16.msra.mxu0 %v486_v26 }
  0x1d   :  { %451 = vmatpush3.bf16.msra.mxu1 %v487_v27  ;;  %430 = vmatprep.subr.bf16.mxu0 %v488_v28 }
  0x1e   :  { %452 = vmatprep.subr.bf16.mxu1 %v489_v29 }
  0x20   :  { %431 = vmatpush3.bf16.msra.mxu0 %v490_v30 }
  0x21   :  { %453 = vmatpush3.bf16.msra.mxu1 %v491_v31 }
  0x23   :  { %327 = vmatmul.mubr.bf16.vlgmr.msra.gmra.mxu0 %v380_v34 }
  0x24   :  { %367 = vmatmul.mubr.bf16.vlgmr.msra.gmra.mxu1 %v382_v36 }
  0xe3   :  { %v432_v38 = vpop.f32.mrf.mxu0 }
  0xe4   :  { %v454_v39 = vpop.f32.mrf.mxu1 }
  0xe5   :  { %v433_v41 = vpop.f32.mrf.mxu0 }
  0xe6   :  { %v455_v42 = vpop.f32.mrf.mxu1  ;;  %v434_v43 = vadd.f32 %v433_v41, %v432_v38 }
  0xe7   :  { %v435_v44 = vpop.f32.mrf.mxu0  ;;  %v456_v47 = vadd.f32 %v455_v42, %v454_v39 }
  0xe8   :  { %v457_v45 = vpop.f32.mrf.mxu1  ;;  %v329_v46 = vadd.f32 %v434_v43, %v379_v40 }
  0xe9   :  { %v436_v48 = vpop.f32.mrf.mxu0 }
  0xea   :  { %v458_v49 = vpop.f32.mrf.mxu1  ;;  %v369_v50 = vadd.f32 %v456_v47, %v329_v46 }
  0xec   :  { %374 = vst [vmem:[%s627_s3] sm:$0xff] %v369_v50 }

</bundles_post_ra>
